<compile_context>
chip_gen: v5e
topology: v5e:2x2
jax: 0.10.0
libtpu: 0.0.40
codegen_flags: <defaults>
</compile_context>

<pallas_src>
import jax
import jax.numpy as jnp
from jax import lax
from jax.experimental import pallas as pl
from jax.experimental.pallas import tpu as pltpu

IMAGE_ENCODER_DIM = 2048   # resnet50 feature dim (self.encoder.fc = Identity)
TEXT_ENCODER_DIM = 768     # BERT hidden / pooler_output dim
PROJECTION_DIM = 256
VOCAB_SIZE = 1000
K_STEPS = 2                # common K-tiling: 2048 -> 2x1024, 768 -> 2x384 (both 128-multiples)


# ---------------------------------------------------------------------------
# Pallas kernel: pooler + projection heads + L2 norm + contrastive logits.
# Grid axis 0 tiles the reduction (K) dim of the image projection and the pooler.
# ---------------------------------------------------------------------------
def matching_head_kernel(inv_temp_ref, img_ref, txtm_ref, wi_ref, wp_ref, wt_ref,
                         bi_ref, bp_ref, bt_ref, logits_ref, img_acc, pool_acc):
    k = pl.program_id(0)

    @pl.when(k == 0)
    def _init():
        img_acc[...] = jnp.zeros_like(img_acc)
        pool_acc[...] = jnp.zeros_like(pool_acc)

    # Partial products for this K chunk (bf16 operands, f32 MXU accumulation).
    img_acc[...] += jnp.dot(img_ref[...], wi_ref[...],
                            preferred_element_type=jnp.float32)
    pool_acc[...] += jnp.dot(txtm_ref[...], wp_ref[...],
                             preferred_element_type=jnp.float32)

    @pl.when(k == pl.num_programs(0) - 1)
    def _finalize():
        # Image projection head: x @ W^T + b (weights pre-transposed in the wrapper).
        img_p = img_acc[...] + bi_ref[...]

        # BERT pooler (stand-in): tanh(mean @ Wp + bp), tanh rides the EUP slot.
        txt_feat = jnp.tanh(pool_acc[...] + bp_ref[...])

        # Text projection head.
        txt_p = jnp.dot(txt_feat.astype(wt_ref.dtype), wt_ref[...],
                        preferred_element_type=jnp.float32) + bt_ref[...]

        # TODO(synk): self.cross_attention is None in the reference __init__ (calling it
        # would raise in PyTorch); treated as an identity pass-through here.

        # x / x.norm(dim=1, keepdim=True) via rsqrt (EUP); fold 1/temp into image scale.
        img_scale = lax.rsqrt(jnp.sum(img_p * img_p, axis=1, keepdims=True)) * inv_temp_ref[0, 0]
        txt_scale = lax.rsqrt(jnp.sum(txt_p * txt_p, axis=1, keepdims=True))
        img_n = img_p * img_scale
        txt_n = txt_p * txt_scale

        # logits = image_features @ text_features.T / temp  (temp already folded in).
        logits_ref[...] = lax.dot_general(img_n, txt_n, (((1,), (1,)), ((), ())),
                                          preferred_element_type=jnp.float32)


def matching_head(img_feat, txt_mean, w_img, b_img, w_pool, b_pool, w_txt, b_txt, temp):
    B = img_feat.shape[0]
    BP = max(8, ((B + 7) // 8) * 8)          # sublane-aligned batch (lane-dense when B >= 128)
    pad = BP - B

    # bf16 streaming of activations/weights (weights already stored bf16); accumulate f32.
    img_feat_p = jnp.pad(img_feat, ((0, pad), (0, 0))).astype(jnp.bfloat16)
    txt_mean_p = jnp.pad(txt_mean, ((0, pad), (0, 0))).astype(jnp.bfloat16)
    inv_temp = jnp.reshape(1.0 / jnp.asarray(temp, jnp.float32), (1, 1))

    tk_img = IMAGE_ENCODER_DIM // K_STEPS    # 1024
    tk_pool = TEXT_ENCODER_DIM // K_STEPS    # 384

    flops = 2 * BP * (IMAGE_ENCODER_DIM * PROJECTION_DIM
                      + TEXT_ENCODER_DIM * TEXT_ENCODER_DIM
                      + TEXT_ENCODER_DIM * PROJECTION_DIM
                      + BP * PROJECTION_DIM)
    bytes_accessed = (2 * (w_img.size + w_pool.size + w_txt.size)
                      + 2 * (img_feat_p.size + txt_mean_p.size)
                      + 4 * (b_img.size + b_pool.size + b_txt.size)
                      + 4 * BP * BP)
    transcendentals = BP * (TEXT_ENCODER_DIM + 2)   # tanh + 2 rsqrt rows

    grid_spec = pltpu.PrefetchScalarGridSpec(
        num_scalar_prefetch=0,
        grid=(K_STEPS,),
        in_specs=[
            # 1/temp scalar in SMEM.
            pl.BlockSpec((1, 1), lambda k: (0, 0), memory_space=pltpu.MemorySpace.SMEM),
            # K-tiled activations.
            pl.BlockSpec((BP, tk_img), lambda k: (0, k)),
            pl.BlockSpec((BP, tk_pool), lambda k: (0, k)),
            # K-tiled weights (double-buffered by the pipeline).
            pl.BlockSpec((tk_img, PROJECTION_DIM), lambda k: (k, 0)),
            pl.BlockSpec((tk_pool, TEXT_ENCODER_DIM), lambda k: (k, 0)),
            # Text-projection weight: resident across the K loop (used at finalize only).
            pl.BlockSpec((TEXT_ENCODER_DIM, PROJECTION_DIM), lambda k: (0, 0)),
            # Biases (f32, resident).
            pl.BlockSpec((1, PROJECTION_DIM), lambda k: (0, 0)),
            pl.BlockSpec((1, TEXT_ENCODER_DIM), lambda k: (0, 0)),
            pl.BlockSpec((1, PROJECTION_DIM), lambda k: (0, 0)),
        ],
        out_specs=pl.BlockSpec((BP, BP), lambda k: (0, 0)),
        scratch_shapes=[pltpu.VMEM((BP, PROJECTION_DIM), jnp.float32),
                        pltpu.VMEM((BP, TEXT_ENCODER_DIM), jnp.float32)],
    )

    # TODO(synk): for very large contrastive batches on v7x (64 MiB VMEM / 2 TCs) the
    # batch dims should additionally be tiled with "parallel" semantics; at the sizes
    # this module is trained with, whole-batch residency fits comfortably.
    logits_p = pl.pallas_call(
        matching_head_kernel,
        out_shape=jax.ShapeDtypeStruct((BP, BP), jnp.float32),
        grid_spec=grid_spec,
        compiler_params=pltpu.CompilerParams(dimension_semantics=("arbitrary",)),
        cost_estimate=pl.CostEstimate(flops=flops,
                                      transcendentals=transcendentals,
                                      bytes_accessed=bytes_accessed),
    )(inv_temp, img_feat_p, txt_mean_p, w_img, w_pool, w_txt, b_img, b_pool, b_txt)

    return logits_p[:B, :B]


# ---------------------------------------------------------------------------
# Deterministic parameter init (shapes implied by the module __init__).
# Matmul weights are stored pre-transposed and in bf16 for MXU-native streaming.
# ---------------------------------------------------------------------------
def init_params(key):
    ks = jax.random.split(key, 8)
    s = 0.02
    return {
        # stand-in resnet50 trunk: GAP(image) @ W -> (B, 2048)
        "w_img_backbone": s * jax.random.normal(ks[0], (3, IMAGE_ENCODER_DIM), jnp.float32),
        # stand-in BERT trunk: embedding + masked mean pool; pooler matmul lives in the kernel
        "tok_embed": s * jax.random.normal(ks[1], (VOCAB_SIZE, TEXT_ENCODER_DIM), jnp.float32),
        "w_pooler": (s * jax.random.normal(ks[2], (TEXT_ENCODER_DIM, TEXT_ENCODER_DIM),
                                           jnp.float32)).astype(jnp.bfloat16),
        "b_pooler": jnp.zeros((1, TEXT_ENCODER_DIM), jnp.float32),
        # projection heads nn.Linear(encoder_dim, projection_dim), stored pre-transposed
        "w_img_proj": (s * jax.random.normal(ks[3], (IMAGE_ENCODER_DIM, PROJECTION_DIM),
                                             jnp.float32)).astype(jnp.bfloat16),
        "b_img_proj": s * jax.random.normal(ks[4], (1, PROJECTION_DIM), jnp.float32),
        "w_txt_proj": (s * jax.random.normal(ks[5], (TEXT_ENCODER_DIM, PROJECTION_DIM),
                                             jnp.float32)).astype(jnp.bfloat16),
        "b_txt_proj": s * jax.random.normal(ks[6], (1, PROJECTION_DIM), jnp.float32),
        # self.temp = nn.Parameter(torch.ones([]) * 0.07)
        "temp": jnp.array(0.07, jnp.float32),
    }


# ---------------------------------------------------------------------------
# Full forward (trunk glue in JAX, matching head fused in the Pallas kernel).
# ---------------------------------------------------------------------------
def image_text_matching_forward(params, image, input_ids, attention_mask):
    # TODO(synk): models.resnet50(pretrained=True) backbone replaced by a deterministic
    # stand-in (global average pool over H,W + linear to 2048 + relu); no checkpoint loading.
    pooled = jnp.mean(image, axis=(2, 3))                                   # (B, C)
    img_feat = jnp.maximum(pooled @ params["w_img_backbone"], 0.0)          # (B, 2048)

    # TODO(synk): BertModel('bert-base-uncased') replaced by a deterministic stand-in
    # (token embedding + masked mean pool); its tanh pooler matmul is fused in the kernel.
    emb = params["tok_embed"][input_ids]                                    # (B, S, 768)
    mask = attention_mask[..., None].astype(jnp.float32)
    txt_mean = jnp.sum(emb * mask, axis=1) / jnp.maximum(jnp.sum(mask, axis=1), 1.0)  # (B, 768)

    return matching_head(img_feat, txt_mean,
                         params["w_img_proj"], params["b_img_proj"],
                         params["w_pooler"], params["b_pooler"],
                         params["w_txt_proj"], params["b_txt_proj"],
                         params["temp"])


if __name__ == "__main__":
    key = jax.random.PRNGKey(0)
    pkey, ikey, tkey = jax.random.split(key, 3)
    params = init_params(pkey)

    B, C, H, W, S = 2, 3, 16, 16, 8
    image = jax.random.normal(ikey, (B, C, H, W), jnp.float32)              # NCHW
    input_ids = jax.random.randint(tkey, (B, S), 0, VOCAB_SIZE, jnp.int32)
    attention_mask = jnp.ones((B, S), jnp.int32)

    logits = image_text_matching_forward(params, image, input_ids, attention_mask)
    logits = jax.block_until_ready(logits)
    assert logits.shape == (B, B) and logits.dtype == jnp.float32
    assert bool(jnp.all(jnp.isfinite(logits)))
    print("KERNEL_OK")
</pallas_src>

<mosaic_0001>
module attributes {stable_mosaic.version = 11 : i64} {
  func.func @matching_head_kernel(%arg0: i32, %arg1: memref<1x1xf32, #tpu.memory_space<smem>>, %arg2: memref<8x1024xbf16, #tpu.memory_space<vmem>>, %arg3: memref<8x384xbf16, #tpu.memory_space<vmem>>, %arg4: memref<1024x256xbf16, #tpu.memory_space<vmem>>, %arg5: memref<384x768xbf16, #tpu.memory_space<vmem>>, %arg6: memref<768x256xbf16, #tpu.memory_space<vmem>>, %arg7: memref<1x256xf32, #tpu.memory_space<vmem>>, %arg8: memref<1x768xf32, #tpu.memory_space<vmem>>, %arg9: memref<1x256xf32, #tpu.memory_space<vmem>>, %arg10: memref<8x8xf32, #tpu.memory_space<vmem>>, %arg11: memref<8x256xf32, #tpu.memory_space<vmem>>, %arg12: memref<8x768xf32, #tpu.memory_space<vmem>>) attributes {dimension_semantics = [#tpu.dimension_semantics<arbitrary>], iteration_bounds = array<i64: 2>, scalar_prefetch = 0 : i64, scratch_operands = 2 : i64, tpu.core_type = #tpu.core_type<tc>, window_params = [{transform_indices = @transform_0, window_bounds = array<i64: 1, 1>}, {transform_indices = @transform_1, window_bounds = array<i64: 8, 1024>}, {transform_indices = @transform_2, window_bounds = array<i64: 8, 384>}, {transform_indices = @transform_3, window_bounds = array<i64: 1024, 256>}, {transform_indices = @transform_4, window_bounds = array<i64: 384, 768>}, {pipeline_mode = #tpu.pipeline_mode<synchronous>, transform_indices = @transform_5, window_bounds = array<i64: 768, 256>}, {pipeline_mode = #tpu.pipeline_mode<synchronous>, transform_indices = @transform_6, window_bounds = array<i64: 1, 256>}, {pipeline_mode = #tpu.pipeline_mode<synchronous>, transform_indices = @transform_7, window_bounds = array<i64: 1, 768>}, {pipeline_mode = #tpu.pipeline_mode<synchronous>, transform_indices = @transform_8, window_bounds = array<i64: 1, 256>}, {pipeline_mode = #tpu.pipeline_mode<synchronous>, transform_indices = @transform_9, window_bounds = array<i64: 8, 8>}]} {
    %c0_i32 = arith.constant 0 : i32
    %0 = arith.cmpi eq, %arg0, %c0_i32 : i32
    %1 = arith.extui %0 : i1 to i32
    %c0_i32_0 = arith.constant 0 : i32
    %2 = arith.cmpi ne, %1, %c0_i32_0 : i32
    scf.if %2 {
      %cst_18 = arith.constant 0.000000e+00 : f32
      %18 = vector.broadcast %cst_18 : f32 to vector<8x256xf32>
      %c0_19 = arith.constant 0 : index
      %c0_20 = arith.constant 0 : index
      %19 = vector.load %arg11[%c0_19, %c0_20] : memref<8x256xf32, #tpu.memory_space<vmem>>, vector<8x256xf32>
      tpu.vector_store %arg11[%c0_19, %c0_20], %18 {strides = array<i32>} : memref<8x256xf32, #tpu.memory_space<vmem>>, vector<8x256xf32>,
      %cst_21 = arith.constant 0.000000e+00 : f32
      %20 = vector.broadcast %cst_21 : f32 to vector<8x768xf32>
      %c0_22 = arith.constant 0 : index
      %c0_23 = arith.constant 0 : index
      %21 = vector.load %arg12[%c0_22, %c0_23] : memref<8x768xf32, #tpu.memory_space<vmem>>, vector<8x768xf32>
      tpu.vector_store %arg12[%c0_22, %c0_23], %20 {strides = array<i32>} : memref<8x768xf32, #tpu.memory_space<vmem>>, vector<8x768xf32>,
    } else {
    }
    %c0 = arith.constant 0 : index
    %c0_1 = arith.constant 0 : index
    %3 = vector.load %arg11[%c0, %c0_1] : memref<8x256xf32, #tpu.memory_space<vmem>>, vector<8x256xf32>
    %c0_2 = arith.constant 0 : index
    %c0_3 = arith.constant 0 : index
    %4 = vector.load %arg2[%c0_2, %c0_3] : memref<8x1024xbf16, #tpu.memory_space<vmem>>, vector<8x1024xbf16>
    %c0_4 = arith.constant 0 : index
    %c0_5 = arith.constant 0 : index
    %5 = vector.load %arg4[%c0_4, %c0_5] : memref<1024x256xbf16, #tpu.memory_space<vmem>>, vector<1024x256xbf16>
    %cst = arith.constant dense<0.000000e+00> : vector<8x256xf32>
    %6 = tpu.matmul %4, %5, %cst {dimension_numbers = #tpu.dot_dimension_numbers<[1], [0], [0], [1], [0, 0, 1, 1], [], []>} : vector<8x1024xbf16>, vector<1024x256xbf16>, vector<8x256xf32> -> vector<8x256xf32>
    %7 = arith.addf %3, %6 : vector<8x256xf32>
    %c0_6 = arith.constant 0 : index
    %c0_7 = arith.constant 0 : index
    %8 = vector.load %arg11[%c0_6, %c0_7] : memref<8x256xf32, #tpu.memory_space<vmem>>, vector<8x256xf32>
    tpu.vector_store %arg11[%c0_6, %c0_7], %7 {strides = array<i32>} : memref<8x256xf32, #tpu.memory_space<vmem>>, vector<8x256xf32>,
    %c0_8 = arith.constant 0 : index
    %c0_9 = arith.constant 0 : index
    %9 = vector.load %arg12[%c0_8, %c0_9] : memref<8x768xf32, #tpu.memory_space<vmem>>, vector<8x768xf32>
    %c0_10 = arith.constant 0 : index
    %c0_11 = arith.constant 0 : index
    %10 = vector.load %arg3[%c0_10, %c0_11] : memref<8x384xbf16, #tpu.memory_space<vmem>>, vector<8x384xbf16>
    %c0_12 = arith.constant 0 : index
    %c0_13 = arith.constant 0 : index
    %11 = vector.load %arg5[%c0_12, %c0_13] : memref<384x768xbf16, #tpu.memory_space<vmem>>, vector<384x768xbf16>
    %cst_14 = arith.constant dense<0.000000e+00> : vector<8x768xf32>
    %12 = tpu.matmul %10, %11, %cst_14 {dimension_numbers = #tpu.dot_dimension_numbers<[1], [0], [0], [1], [0, 0, 1, 1], [], []>} : vector<8x384xbf16>, vector<384x768xbf16>, vector<8x768xf32> -> vector<8x768xf32>
    %13 = arith.addf %9, %12 : vector<8x768xf32>
    %c0_15 = arith.constant 0 : index
    %c0_16 = arith.constant 0 : index
    %14 = vector.load %arg12[%c0_15, %c0_16] : memref<8x768xf32, #tpu.memory_space<vmem>>, vector<8x768xf32>
    tpu.vector_store %arg12[%c0_15, %c0_16], %13 {strides = array<i32>} : memref<8x768xf32, #tpu.memory_space<vmem>>, vector<8x768xf32>,
    %c1_i32 = arith.constant 1 : i32
    %15 = arith.cmpi eq, %arg0, %c1_i32 : i32
    %16 = arith.extui %15 : i1 to i32
    %c0_i32_17 = arith.constant 0 : i32
    %17 = arith.cmpi ne, %16, %c0_i32_17 : i32
    scf.if %17 {
      %c0_18 = arith.constant 0 : index
      %c0_19 = arith.constant 0 : index
      %18 = vector.load %arg11[%c0_18, %c0_19] : memref<8x256xf32, #tpu.memory_space<vmem>>, vector<8x256xf32>
      %c0_20 = arith.constant 0 : index
      %c0_21 = arith.constant 0 : index
      %19 = vector.load %arg7[%c0_20, %c0_21] : memref<1x256xf32, #tpu.memory_space<vmem>>, vector<1x256xf32>
      %20 = vector.broadcast %19 : vector<1x256xf32> to vector<8x256xf32>
      %21 = arith.addf %18, %20 : vector<8x256xf32>
      %c0_22 = arith.constant 0 : index
      %c0_23 = arith.constant 0 : index
      %22 = vector.load %arg12[%c0_22, %c0_23] : memref<8x768xf32, #tpu.memory_space<vmem>>, vector<8x768xf32>
      %c0_24 = arith.constant 0 : index
      %c0_25 = arith.constant 0 : index
      %23 = vector.load %arg8[%c0_24, %c0_25] : memref<1x768xf32, #tpu.memory_space<vmem>>, vector<1x768xf32>
      %24 = vector.broadcast %23 : vector<1x768xf32> to vector<8x768xf32>
      %25 = arith.addf %22, %24 : vector<8x768xf32>
      %26 = math.tanh %25 : vector<8x768xf32>
      %27 = arith.truncf %26 : vector<8x768xf32> to vector<8x768xbf16>
      %c0_26 = arith.constant 0 : index
      %c0_27 = arith.constant 0 : index
      %28 = vector.load %arg6[%c0_26, %c0_27] : memref<768x256xbf16, #tpu.memory_space<vmem>>, vector<768x256xbf16>
      %cst_28 = arith.constant dense<0.000000e+00> : vector<8x256xf32>
      %29 = tpu.matmul %27, %28, %cst_28 {dimension_numbers = #tpu.dot_dimension_numbers<[1], [0], [0], [1], [0, 0, 1, 1], [], []>} : vector<8x768xbf16>, vector<768x256xbf16>, vector<8x256xf32> -> vector<8x256xf32>
      %c0_29 = arith.constant 0 : index
      %c0_30 = arith.constant 0 : index
      %30 = vector.load %arg9[%c0_29, %c0_30] : memref<1x256xf32, #tpu.memory_space<vmem>>, vector<1x256xf32>
      %31 = vector.broadcast %30 : vector<1x256xf32> to vector<8x256xf32>
      %32 = arith.addf %29, %31 : vector<8x256xf32>
      %33 = arith.mulf %21, %21 : vector<8x256xf32>
      %cst_31 = arith.constant dense<0.000000e+00> : vector<8xf32>
      %34 = vector.multi_reduction <add>, %33, %cst_31 [1] : vector<8x256xf32> to vector<8xf32>
      %35 = vector.shape_cast %34 : vector<8xf32> to vector<8x1xf32>
      %36 = math.rsqrt %35 : vector<8x1xf32>
      %c0_32 = arith.constant 0 : index
      %c0_33 = arith.constant 0 : index
      %37 = memref.load %arg1[%c0_32, %c0_33] : memref<1x1xf32, #tpu.memory_space<smem>>
      %38 = vector.broadcast %37 : f32 to vector<8x1xf32>
      %39 = arith.mulf %36, %38 : vector<8x1xf32>
      %40 = arith.mulf %32, %32 : vector<8x256xf32>
      %cst_34 = arith.constant dense<0.000000e+00> : vector<8xf32>
      %41 = vector.multi_reduction <add>, %40, %cst_34 [1] : vector<8x256xf32> to vector<8xf32>
      %42 = vector.shape_cast %41 : vector<8xf32> to vector<8x1xf32>
      %43 = math.rsqrt %42 : vector<8x1xf32>
      %44 = vector.broadcast %39 : vector<8x1xf32> to vector<8x256xf32>
      %45 = arith.mulf %21, %44 : vector<8x256xf32>
      %46 = vector.broadcast %43 : vector<8x1xf32> to vector<8x256xf32>
      %47 = arith.mulf %32, %46 : vector<8x256xf32>
      %cst_35 = arith.constant dense<0.000000e+00> : vector<8x8xf32>
      %48 = tpu.matmul %45, %47, %cst_35 {dimension_numbers = #tpu.dot_dimension_numbers<[1], [1], [0], [0], [0, 0, 1, 0], [], []>} : vector<8x256xf32>, vector<8x256xf32>, vector<8x8xf32> -> vector<8x8xf32>
      %c0_36 = arith.constant 0 : index
      %c0_37 = arith.constant 0 : index
      %49 = vector.load %arg10[%c0_36, %c0_37] : memref<8x8xf32, #tpu.memory_space<vmem>>, vector<8x8xf32>
      tpu.vector_store %arg10[%c0_36, %c0_37], %48 {strides = array<i32>} : memref<8x8xf32, #tpu.memory_space<vmem>>, vector<8x8xf32>,
    } else {
    }
    return
  }
  func.func @transform_0(%arg0: i32) -> (i32, i32) {
    %c0_i32 = arith.constant 0 : i32
    %c0_i32_0 = arith.constant 0 : i32
    %c0_i32_1 = arith.constant 0 : i32
    return %c0_i32, %c0_i32_0 : i32, i32
  }
  func.func @transform_1(%arg0: i32) -> (i32, i32) {
    %c0_i32 = arith.constant 0 : i32
    %c0_i32_0 = arith.constant 0 : i32
    return %c0_i32, %arg0 : i32, i32
  }
  func.func @transform_2(%arg0: i32) -> (i32, i32) {
    %c0_i32 = arith.constant 0 : i32
    %c0_i32_0 = arith.constant 0 : i32
    return %c0_i32, %arg0 : i32, i32
  }
  func.func @transform_3(%arg0: i32) -> (i32, i32) {
    %c0_i32 = arith.constant 0 : i32
    %c0_i32_0 = arith.constant 0 : i32
    return %arg0, %c0_i32 : i32, i32
  }
  func.func @transform_4(%arg0: i32) -> (i32, i32) {
    %c0_i32 = arith.constant 0 : i32
    %c0_i32_0 = arith.constant 0 : i32
    return %arg0, %c0_i32 : i32, i32
  }
  func.func @transform_5(%arg0: i32) -> (i32, i32) {
    %c0_i32 = arith.constant 0 : i32
    %c0_i32_0 = arith.constant 0 : i32
    %c0_i32_1 = arith.constant 0 : i32
    return %c0_i32, %c0_i32_0 : i32, i32
  }
  func.func @transform_6(%arg0: i32) -> (i32, i32) {
    %c0_i32 = arith.constant 0 : i32
    %c0_i32_0 = arith.constant 0 : i32
    %c0_i32_1 = arith.constant 0 : i32
    return %c0_i32, %c0_i32_0 : i32, i32
  }
  func.func @transform_7(%arg0: i32) -> (i32, i32) {
    %c0_i32 = arith.constant 0 : i32
    %c0_i32_0 = arith.constant 0 : i32
    %c0_i32_1 = arith.constant 0 : i32
    return %c0_i32, %c0_i32_0 : i32, i32
  }
  func.func @transform_8(%arg0: i32) -> (i32, i32) {
    %c0_i32 = arith.constant 0 : i32
    %c0_i32_0 = arith.constant 0 : i32
    %c0_i32_1 = arith.constant 0 : i32
    return %c0_i32, %c0_i32_0 : i32, i32
  }
  func.func @transform_9(%arg0: i32) -> (i32, i32) {
    %c0_i32 = arith.constant 0 : i32
    %c0_i32_0 = arith.constant 0 : i32
    %c0_i32_1 = arith.constant 0 : i32
    return %c0_i32, %c0_i32_0 : i32, i32
  }
}

</mosaic_0001>

<bundles_post_ra>
// kernel: tpu_custom_call.1
= control target key start
LH: loop header
LB: loop body
LE: loop exit
PB: predicated region body
PF: predicated region fallthrough
CT: control target
= control target key end

     0   :  { %s6982_s0 = inlined_call_operand.<no memory space> [shape: f32[1,1], index: 0, kind: input, shape index: {}]   ;;  %s6983_s1 = inlined_call_operand.hbm [shape: bf16[8,2048], index: 1, kind: input, shape index: {}]   ;;  %s6984_s2 = inlined_call_operand.hbm [shape: bf16[8,768], index: 2, kind: input, shape index: {}]   ;;  %s6985_s3 = inlined_call_operand.hbm [shape: bf16[2048,256], index: 3, kind: input, shape index: {}]   ;;  %s6986_s4 = inlined_call_operand.hbm [shape: bf16[768,768], index: 4, kind: input, shape index: {}]   ;;  %s6987_s5 = inlined_call_operand.hbm [shape: bf16[768,256], index: 5, kind: input, shape index: {}]   ;;  %s6988_s6 = inlined_call_operand.hbm [shape: f32[1,256], index: 6, kind: input, shape index: {}]   ;;  %s6989_s7 = inlined_call_operand.hbm [shape: f32[1,768], index: 7, kind: input, shape index: {}]   ;;  %s6990_s8 = inlined_call_operand.hbm [shape: f32[1,256], index: 8, kind: input, shape index: {}]   ;;  %s6991_s9 = inlined_call_operand.hbm [shape: f32[8,8], index: 9, kind: output, shape index: {}]  }
   0x1   :  { %6995 = sst [smem:[#allocation29_spill]] %s6984_s2 }
   0x2   :  { %6996 = sst [smem:[#allocation30_spill]] %s6987_s5 }
   0x3   :  { %6997 = sst [smem:[#allocation31_spill]] %s6988_s6 }
   0x4   :  { %14 = sst [smem:[#allocation4]] %s6982_s0 }
   0x5   :  { %15 = vsyncpa [#allocation6], 0 }
   0x6   :  { %17 = vsyncpa [#allocation6 + $0x1], 0 }
   0x7   :  { %18 = vsyncpa [#allocation9], 0 }
   0x8   :  { %20 = vsyncpa [#allocation9 + $0x1], 0 }
   0x9   :  { %21 = vsyncpa [#allocation12], 0 }
   0xa   :  { %23 = vsyncpa [#allocation12 + $0x1], 0 }
   0xb   :  { %24 = vsyncpa [#allocation15], 0 }
   0xc   :  { %25 = vsyncpa [#allocation18], 0 }
   0xd   :  { %26 = vsyncpa [#allocation7], 0  ;;  %s6107_s11 = smov 0   ;;  %s6109_s12 = smov 0  }
   0xe   :  { %s6111_s13 = smov 0   ;;  %s6113_s14 = smov 0  }
   0xf LB: > { %6998 = sst [smem:[#allocation27_spill]] %s6038_s13  ;;  %s6126_s0 = sadd.s32 4294967295, %s6042_s14   ;;  %s6042_s14 = sphi %s6113_s14, %s7015_s14   ;;  %s6038_s13 = sphi %s6111_s13, %s7012_s13   ;;  %s6034_s12 = sphi %s6109_s12, %s7014_s12   ;;  %s6030_s11 = sphi %s6107_s11, %s7013_s11  }
  0x10   : > { %p73_p0 = scmp.ne.s32.totalorder %s6034_s12, %s6030_s11  ;;  %p74_p1 = scmp.eq.s32.totalorder %s6126_s0, 0 }
  0x11   : > { %p3715_p2 = scmp.ge.s32.totalorder %s6042_s14, 1  ;;  %p267_p3 = scmp.lt.s32.totalorder %s6042_s14, 3 }
  0x12   : > { %p3716_p4 = scmp.ne.s32.totalorder %s6126_s0, 0  ;;  %p6135_p5 = por %p74_p1, %p73_p0 }
  0x13   : > { %s7000_s5 = sld [smem:[#allocation30_spill]]  ;;  %p6142_p6 = pnand %p3715_p2, %p267_p3 }
  0x14   : > { %s6044_s20 = smov [#allocation13]   ;;  %s7003_s6 = sld [smem:[#allocation31_spill]] }
  0x15   : > { %p5620_p7 = pneg %p6142_p6  ;;  %s283_s21 = sshll.u32 %s6044_s20, 4  ;;  %s284_s21 = int_to_ptr.vmem [resolvable:$true] %s283_s21 }
  0x16   : > { %s6992_s26 = smov 128   ;;  %s6993_s27 = smov 8  }
  0x17   : > { %p6150_p8 = pnand %p5620_p7, %p74_p1  ;;  %s6047_s28 = smov [#allocation14]  }
  0x18   : > { %s298_s29 = sshll.u32 %s6047_s28, 4  ;;  %s6163_s30 = sadd.s32 1, %s6042_s14   ;;  %s299_s29 = int_to_ptr.vmem [resolvable:$true] %s298_s29 }
  0x19   : > { %s281_s18 = sshll.u32 %s7000_s5, 4  ;;  %s57_s10 = ssub.s32 %s6042_s14, %s6163_s30  ;;  %s282_s18 = int_to_ptr.hbm [resolvable:$true] %s281_s18 }
  0x1a   : > { %s296_s25 = sshll.u32 %s7003_s6, 4  ;;  %s60_s11 = sadd.s32 1, %s6038_s13  ;;  %s297_s25 = int_to_ptr.hbm [resolvable:$true] %s296_s25 }
  0x1b   : > { %5623 = dma.hbm_to_vmem [thread:$0]  (!%p6150_p8), %s282_s18, 12288, %s284_s21, [#allocation12], %s6992_s26, %s6992_s26, %s6993_s27  }
  0x1c   : > { %5626 = dma.hbm_to_vmem [thread:$0]  (!%p6150_p8), %s297_s25, 32, %s299_s29, [#allocation15]  }
  0x1d   : > { %p58_p9 = scmp.eq.s32.totalorder %s57_s10, 0  ;;  %p67_p10 = scmp.ne.s32.totalorder %s6038_s13, %s6034_s12 }
  0x1e   : > { %p68_p11 = scmp.eq.s32.totalorder %s6042_s14, 0  ;;  %p5650_p12 = scmp.lt.s32.totalorder %s6042_s14, 2 }
  0x1f   : > { %s6175_s16 = scalar_select %p58_p9, %s6038_s13, %s60_s11  }
  0x20   : > { %p69_p13 = por %p68_p11, %p67_p10  ;;  %s6178_s17 = sand.u32 1, %s6038_s13  }
  0x21   : > { %7004 = sst [smem:[#allocation28_spill]] %s6175_s16  ;;  %s5587_s20 = smul.u32 12, %s6178_s17 }
  0x22   : > { %p6182_p0 = pnand %p5650_p12, %p69_p13  ;;  %s5216_s23 = smul.u32 12, %s6042_s14 }
  0x23   : > { %s357_s24 = scalar_lea.vmem [#allocation8], %s5587_s20  ;;  %s7006_s2 = sld [smem:[#allocation29_spill]] }
  0x24   : > { %s366_s25 = sshll.u32 %s357_s24, 4  ;;  %s308_s18 = sshll.u32 %s6989_s7, 4  ;;  %s367_s25 = int_to_ptr.vmem [resolvable:$true] %s366_s25  ;;  %s309_s18 = int_to_ptr.hbm [resolvable:$true] %s308_s18 }
  0x25   : > { %s7007_s5 = sand.u32 1, %s6042_s14   ;;  %p5780_p3 = pneg %p6182_p0 }
  0x26   : > { %s6195_s6 = scalar_lea.sflag [#allocation9], %s7007_s5 }
  0x29   : > { %s362_s10 = scalar_lea.hbm %s7006_s2, %s5216_s23  ;;  %s5783_s24 = scalar_lea.hbm %s7006_s2, 24 }
  0x2a   : > { %s364_s11 = sshll.u32 %s362_s10, 4  ;;  %s365_s11 = int_to_ptr.hbm [resolvable:$true] %s364_s11 }
  0x2b   : > { %s5776_s16 = sshra.s32 %s365_s11, 4  ;;  %s5777_s16 = int_to_ptr.hbm [resolvable:$true] %s5776_s16 }
  0x2c   : > { %s5778_s13 = scalar_lea.hbm %s5777_s16, 12  ;;  %p5784_p10 = scmp.lt.s32.totalorder %s5777_s16, %s7006_s2 }
  0x2d   : > { %p5779_p2 = scmp.ne.s32.totalorder %s5777_s16, %s5778_s13  ;;  %p5785_p11 = scmp.lt.s32.totalorder %s5783_s24, %s5778_s13 }
  0x2f   : > { %p5781_p7 = pnand %p5780_p3, %p5779_p2  ;;  %p5786_p12 = por %p5785_p11, %p5784_p10 }
  0x31   : > { %p5782_p9 = pneg %p5781_p7 }
  0x33   : > { %p5787_p13 = pnand %p5786_p12, %p5782_p9 }
  0x35   : > { %5790 = shalt.err (!%p5787_p13)
}
  0x36   : > { %5639 = dma.hbm_to_vmem [thread:$0]  (!%p6182_p0), %s365_s11, 192, %s367_s25, %s6195_s6  }
  0x37   : > { %s6048_s5 = smov [#allocation16]   ;;  %s320_s16 = sshll.u32 %s6990_s8, 4  ;;  %s321_s16 = int_to_ptr.hbm [resolvable:$true] %s320_s16 }
  0x38   : > { %s310_s27 = sshll.u32 %s6048_s5, 4  ;;  %s6049_s13 = smov [#allocation17]   ;;  %s311_s27 = int_to_ptr.vmem [resolvable:$true] %s310_s27 }
  0x39   : > { %5629 = dma.hbm_to_vmem [thread:$0]  (!%p6150_p8), %s309_s18, 96, %s311_s27, [#allocation15]  }
  0x3a   : > { %s322_s20 = sshll.u32 %s6049_s13, 4  ;;  %s3721_s23 = sshll.u32 %s6178_s17, 5  ;;  %s323_s20 = int_to_ptr.vmem [resolvable:$true] %s322_s20 }
  0x3b   : > { %5632 = dma.hbm_to_vmem [thread:$0]  (!%p6150_p8), %s321_s16, 32, %s323_s20, [#allocation18]  }
  0x3c   : > { %s5215_s25 = sshll.u32 %s6042_s14, 5  ;;  %s337_s11 = scalar_lea.vmem [#allocation5], %s3721_s23 }
  0x3d   : > { %s346_s24 = sshll.u32 %s337_s11, 4  ;;  %s342_s5 = scalar_lea.hbm %s6983_s1, %s5215_s25  ;;  %s347_s24 = int_to_ptr.vmem [resolvable:$true] %s346_s24 }
  0x3e   : > { %s344_s29 = sshll.u32 %s342_s5, 4  ;;  %s3725_s10 = sshll.u32 %s6178_s17, 10  ;;  %s345_s29 = int_to_ptr.hbm [resolvable:$true] %s344_s29 }
  0x3f   : > { %s334_s2 = scalar_lea.sflag [#allocation6], %s6178_s17  ;;  %s5866_s18 = sshra.s32 %s345_s29, 4  ;;  %s5867_s18 = int_to_ptr.hbm [resolvable:$true] %s5866_s18 }
  0x40   : > { %s5868_s27 = scalar_lea.hbm %s5867_s18, 32  ;;  %s5873_s13 = scalar_lea.hbm %s6983_s1, 64 }
  0x41   : > { %p5869_p2 = scmp.ne.s32.totalorder %s5867_s18, %s5868_s27  ;;  %p5874_p9 = scmp.lt.s32.totalorder %s5867_s18, %s6983_s1 }
  0x42   : > { %p5875_p10 = scmp.lt.s32.totalorder %s5873_s13, %s5868_s27 }
  0x43   : > { %p5871_p7 = pnand %p5869_p2, %p5780_p3 }
  0x44   : > { %p5876_p11 = por %p5875_p10, %p5874_p9 }
  0x45   : > { %p5872_p8 = pneg %p5871_p7 }
  0x47   : > { %p5877_p12 = pnand %p5876_p11, %p5872_p8 }
  0x49   : > { %5880 = shalt.err (!%p5877_p12)
}
  0x4a   : > { %5636 = dma.hbm_to_vmem [thread:$0]  (!%p6182_p0), %s345_s29, 512, %s347_s24, %s334_s2  }
  0x4b   : > { %s5218_s25 = sshll.u32 %s6042_s14, 10  ;;  %s377_s11 = scalar_lea.vmem [#allocation10], %s3725_s10 }
  0x4c   : > { %s386_s28 = sshll.u32 %s377_s11, 4  ;;  %s383_s22 = scalar_lea.hbm %s6985_s3, %s5218_s25  ;;  %s387_s28 = int_to_ptr.vmem [resolvable:$true] %s386_s28 }
  0x4d   : > { %s384_s18 = sshll.u32 %s383_s22, 4  ;;  %s5588_s27 = smul.u32 1152, %s6178_s17  ;;  %s385_s18 = int_to_ptr.hbm [resolvable:$true] %s384_s18 }
  0x4e   : > { %s5651_s16 = smul.u32 1152, %s6042_s14  ;;  %s5896_s13 = sshra.s32 %s385_s18, 4  ;;  %s5897_s13 = int_to_ptr.hbm [resolvable:$true] %s5896_s13 }
  0x4f   : > { %s5898_s20 = scalar_lea.hbm %s5897_s13, 1024  ;;  %s5903_s29 = scalar_lea.hbm %s6985_s3, 2048 }
  0x50   : > { %p5899_p13 = scmp.ne.s32.totalorder %s5897_s13, %s5898_s20  ;;  %p5904_p8 = scmp.lt.s32.totalorder %s5897_s13, %s6985_s3 }
  0x51   : > { %p5905_p9 = scmp.lt.s32.totalorder %s5903_s29, %s5898_s20 }
  0x52   : > { %p5901_p2 = pnand %p5899_p13, %p5780_p3 }
  0x53   : > { %p5906_p10 = por %p5905_p9, %p5904_p8 }
  0x54   : > { %p5902_p7 = pneg %p5901_p2 }
  0x56   : > { %p5907_p11 = pnand %p5906_p10, %p5902_p7 }
  0x58   : > { %5910 = shalt.err (!%p5907_p11)
}
  0x59   : > { %s7008_s17 = smov 8   ;;  %s7009_s25 = smov 128  }
  0x5a   : > { %5642 = dma.hbm_to_vmem [thread:$0]  (!%p6182_p0), %s385_s18, 16384, %s387_s28, %s6195_s6, %s7009_s25, %s7009_s25, %s7008_s17  }
  0x5b   : > { %s406_s5 = scalar_lea.hbm %s6986_s4, %s5651_s16  ;;  %s400_s2 = scalar_lea.vmem [#allocation11], %s5588_s27 }
  0x5c   : > { %s407_s22 = sshll.u32 %s406_s5, 4  ;;  %s409_s13 = sshll.u32 %s400_s2, 4  ;;  %s408_s22 = int_to_ptr.hbm [resolvable:$true] %s407_s22  ;;  %s410_s13 = int_to_ptr.vmem [resolvable:$true] %s409_s13 }
  0x5d   : > { %s7010_s20 = sand.u32 1, %s6042_s14   ;;  %s5926_s29 = sshra.s32 %s408_s22, 4  ;;  %s5927_s29 = int_to_ptr.hbm [resolvable:$true] %s5926_s29 }
  0x5e   : > { %s397_s24 = scalar_lea.sflag [#allocation12], %s7010_s20  ;;  %s5928_s10 = scalar_lea.hbm %s5927_s29, 1152 }
  0x5f   : > { %p5929_p12 = scmp.ne.s32.totalorder %s5927_s29, %s5928_s10  ;;  %s5933_s18 = scalar_lea.hbm %s6986_s4, 2304 }
  0x60   : > { %p5934_p7 = scmp.lt.s32.totalorder %s5927_s29, %s6986_s4  ;;  %p5935_p8 = scmp.lt.s32.totalorder %s5933_s18, %s5928_s10 }
  0x61   : > { %p5931_p13 = pnand %p5929_p12, %p5780_p3 }
  0x62   : > { %p5936_p9 = por %p5935_p8, %p5934_p7 }
  0x63   : > { %p5932_p2 = pneg %p5931_p13 }
  0x65   : > { %p5937_p10 = pnand %p5936_p9, %p5932_p2 }
  0x67   : > { %5940 = shalt.err (!%p5937_p10)
}
  0x68   : > { %s6050_s14 = smov 384   ;;  %s6051_s27 = smov 24  }
  0x69   : > { %5645 = dma.hbm_to_vmem [thread:$0]  (!%p6182_p0), %s408_s22, 18432, %s410_s13, %s397_s24, %s6050_s14, %s6050_s14, %s6051_s27  }
  0x6a   : > { %421 = sbr.rel (%p6142_p6) target bundleno = 1085 (0x43d), region = 56  ;;  %s423_s17 = sand.u32 (!%p6142_p6), 1, %s6034_s12  }
  0x6b   : > { %s3731_s25 = sshll.u32 (!%p6142_p6), %s423_s17, 5  ;;  %s424_s11 = scalar_lea.sflag (!%p6142_p6), [#allocation6], %s423_s17 }
  0x6c   : > { %s6276_s26 = scalar_lea.vmem (!%p6142_p6), [#allocation5], %s3731_s25 }
  0x6f   : > { %6001 = dma.done.wait (%p6135_p5), %s424_s11, 512  }
  0x70   : > { %6003 = vsyncadd (%p6135_p5), %s424_s11, 4294966784  ;;  %s433_s5 = sand.u32 1, %s6126_s0   ;;  %s5590_s21 = smul.u32 12, %s423_s17 }
  0x71   : > { %s434_s22 = scalar_lea.sflag [#allocation9], %s433_s5 }
  0x72   : > { %s6283_s2 = scalar_lea.vmem [#allocation8], %s5590_s21 }
  0x73   : > { %6005 = dma.done.wait (%p6135_p5), %s434_s22, 16576  }
  0x74   : > { %6007 = vsyncadd (%p6135_p5), %s434_s22, 4294950720  ;;  %s3732_s19 = sshll.u32 %s423_s17, 10  ;;  %s5591_s13 = smul.u32 1152, %s423_s17 }
  0x75   : > { %s6289_s20 = scalar_lea.vmem [#allocation10], %s3732_s19  ;;  %s454_s24 = scalar_lea.sflag [#allocation12], %s433_s5 }
  0x76   : > { %s6291_s29 = scalar_lea.vmem [#allocation11], %s5591_s13 }
  0x77   : > { %6009 = dma.done.wait (%p6135_p5), %s454_s24, 18432  }
  0x78   : > { %6011 = vsyncadd (%p6135_p5), %s454_s24, 4294948864 }
  0x79   : > { %6013 = dma.done.wait (%p74_p1), [#allocation12], 12288  }
  0x7a   : > { %6015 = vsyncadd (%p74_p1), [#allocation12], 4294955008 }
  0x7b   : > { %6017 = dma.done.wait (%p74_p1), [#allocation15], 128  }
  0x7c   : > { %6019 = vsyncadd (%p74_p1), [#allocation15], 4294967168 }
  0x7d   : > { %6021 = dma.done.wait (%p74_p1), [#allocation18], 32  }
  0x7e   : > { %6023 = vsyncadd (%p74_p1), [#allocation18], 4294967264  ;;  %530 = sbr.rel (%p3716_p4) target bundleno = 140 (0x8c), region = 92 }
  0x83   : > { %v6052_v0 = vmov 0.0  }
  0x84   : > { %531 = vst [vmem:[#allocation2] sm:$0xff] %v6052_v0 }
  0x85   : > { %532 = vst [vmem:[#allocation2 + $0x8] sm:$0xff] %v6052_v0 }
  0x86   : > { %533 = vst [vmem:[#allocation3 + $0x28] sm:$0xff] %v6052_v0 }
  0x87   : > { %534 = vst [vmem:[#allocation3 + $0x10] sm:$0xff] %v6052_v0 }
  0x88   : > { %535 = vst [vmem:[#allocation3 + $0x8] sm:$0xff] %v6052_v0 }
  0x89   : > { %536 = vst [vmem:[#allocation3] sm:$0xff] %v6052_v0 }
  0x8a   : > { %537 = vst [vmem:[#allocation3 + $0x18] sm:$0xff] %v6052_v0 }
  0x8b   : > { %538 = vst [vmem:[#allocation3 + $0x20] sm:$0xff] %v6052_v0 }
  0x8c PF: > { %v3796_v1 = vld [vmem:[%s6289_s20 + $0x70] sm:$0xf]  ;;  %v5234_v2 = vld [vmem:[%s6289_s20 + $0x74] sm:$0xf0]  ;;  %v3788_v10 = vld [vmem:[%s6289_s20 + $0x60] sm:$0xf] }
  0x8d   : > { %v3860_v3 = vld [vmem:[%s6289_s20 + $0xf0] sm:$0xf]  ;;  %v3797_v4 = vor.u32 %v5234_v2, %v3796_v1  ;;  %v5250_v5 = vld [vmem:[%s6289_s20 + $0xf4] sm:$0xf0]  ;;  %v5232_v11 = vld [vmem:[%s6289_s20 + $0x64] sm:$0xf0] }
  0x8e   : > { %v3924_v6 = vld [vmem:[%s6289_s20 + $0x170] sm:$0xf]  ;;  %v5266_v7 = vld [vmem:[%s6289_s20 + $0x174] sm:$0xf0]  ;;  %v3861_v8 = vor.u32 %v5250_v5, %v3860_v3  ;;  %v3852_v12 = vld [vmem:[%s6289_s20 + $0xe0] sm:$0xf]  ;;  %v3789_v13 = vor.u32 %v5232_v11, %v3788_v10 }
  0x8f   : > { %v3925_v9 = vor.u32 %v5266_v7, %v3924_v6  ;;  %1341 = vmatpush.bf16.msra.mxu0 %v3797_v4  ;;  %v5248_v14 = vld [vmem:[%s6289_s20 + $0xe4] sm:$0xf0]  ;;  %v3988_v15 = vld [vmem:[%s6289_s20 + $0x1f0] sm:$0xf]  ;;  %v5282_v16 = vld [vmem:[%s6289_s20 + $0x1f4] sm:$0xf0] }
  0x90   : > { %1354 = vmatpush.bf16.msra.mxu1 %v3861_v8  ;;  %v3853_v17 = vor.u32 %v5248_v14, %v3852_v12  ;;  %v3989_v18 = vor.u32 %v5282_v16, %v3988_v15  ;;  %v3916_v19 = vld [vmem:[%s6289_s20 + $0x160] sm:$0xf]  ;;  %v5264_v20 = vld [vmem:[%s6289_s20 + $0x164] sm:$0xf0]  ;;  %v3780_v21 = vld [vmem:[%s6289_s20 + $0x50] sm:$0xf] }
  0x91   : > { %1367 = vmatpush.bf16.msra.mxu2 %v3925_v9  ;;  %v3917_v22 = vor.u32 %v5264_v20, %v3916_v19  ;;  %v5230_v23 = vld [vmem:[%s6289_s20 + $0x54] sm:$0xf0]  ;;  %v3844_v24 = vld [vmem:[%s6289_s20 + $0xd0] sm:$0xf]  ;;  %v3980_v26 = vld [vmem:[%s6289_s20 + $0x1e0] sm:$0xf] }
  0x92   : > { %v5246_v25 = vld [vmem:[%s6289_s20 + $0xd4] sm:$0xf0]  ;;  %1380 = vmatpush.bf16.msra.mxu3 %v3989_v18  ;;  %v5280_v27 = vld [vmem:[%s6289_s20 + $0x1e4] sm:$0xf0]  ;;  %v3908_v28 = vld [vmem:[%s6289_s20 + $0x150] sm:$0xf]  ;;  %v3781_v29 = vor.u32 %v5230_v23, %v3780_v21 }
  0x93   : > { %1342 = vmatpush.bf16.msra.mxu0 %v3789_v13  ;;  %v3981_v30 = vor.u32 %v5280_v27, %v3980_v26  ;;  %v5262_v31 = vld [vmem:[%s6289_s20 + $0x154] sm:$0xf0]  ;;  %v3772_v32 = vld [vmem:[%s6289_s20 + $0x40] sm:$0xf]  ;;  %v5228_v33 = vld [vmem:[%s6289_s20 + $0x44] sm:$0xf0]  ;;  %v3845_v34 = vor.u32 %v5246_v25, %v3844_v24 }
  0x94   : > { %1355 = vmatpush.bf16.msra.mxu1 %v3853_v17  ;;  %v3909_v35 = vor.u32 %v5262_v31, %v3908_v28  ;;  %v3836_v36 = vld [vmem:[%s6289_s20 + $0xc0] sm:$0xf]  ;;  %v5244_v37 = vld [vmem:[%s6289_s20 + $0xc4] sm:$0xf0]  ;;  %v3972_v38 = vld [vmem:[%s6289_s20 + $0x1d0] sm:$0xf]  ;;  %v3773_v43 = vor.u32 %v5228_v33, %v3772_v32 }
  0x95   : > { %1368 = vmatpush.bf16.msra.mxu2 %v3917_v22  ;;  %v5278_v39 = vld [vmem:[%s6289_s20 + $0x1d4] sm:$0xf0]  ;;  %v3900_v40 = vld [vmem:[%s6289_s20 + $0x140] sm:$0xf]  ;;  %v5260_v41 = vld [vmem:[%s6289_s20 + $0x144] sm:$0xf0]  ;;  %v3837_v46 = vor.u32 %v5244_v37, %v3836_v36 }
  0x96   : > { %1381 = vmatpush.bf16.msra.mxu3 %v3981_v30  ;;  %v3973_v42 = vor.u32 %v5278_v39, %v3972_v38  ;;  %v3964_v44 = vld [vmem:[%s6289_s20 + $0x1c0] sm:$0xf]  ;;  %v5276_v45 = vld [vmem:[%s6289_s20 + $0x1c4] sm:$0xf0]  ;;  %v3901_v47 = vor.u32 %v5260_v41, %v3900_v40  ;;  %v3764_v48 = vld [vmem:[%s6289_s20 + $0x30] sm:$0xf] }
  0x97   : > { %1343 = vmatpush.bf16.msra.mxu0 %v3781_v29  ;;  %v5226_v49 = vld [vmem:[%s6289_s20 + $0x34] sm:$0xf0]  ;;  %v3828_v50 = vld [vmem:[%s6289_s20 + $0xb0] sm:$0xf]  ;;  %v3965_v54 = vor.u32 %v5276_v45, %v3964_v44  ;;  %v3756_v60 = vld [vmem:[%s6289_s20 + $0x20] sm:$0xf] }
  0x98   : > { %1356 = vmatpush.bf16.msra.mxu1 %v3845_v34  ;;  %v5242_v51 = vld [vmem:[%s6289_s20 + $0xb4] sm:$0xf0]  ;;  %v3892_v52 = vld [vmem:[%s6289_s20 + $0x130] sm:$0xf]  ;;  %v3765_v55 = vor.u32 %v5226_v49, %v3764_v48  ;;  %v5224_v61 = vld [vmem:[%s6289_s20 + $0x24] sm:$0xf0] }
  0x99   : > { %1369 = vmatpush.bf16.msra.mxu2 %v3909_v35  ;;  %v5258_v53 = vld [vmem:[%s6289_s20 + $0x134] sm:$0xf0]  ;;  %v3956_v56 = vld [vmem:[%s6289_s20 + $0x1b0] sm:$0xf]  ;;  %v3829_v58 = vor.u32 %v5242_v51, %v3828_v50  ;;  %v3820_v62 = vld [vmem:[%s6289_s20 + $0xa0] sm:$0xf]  ;;  %v3757_v3 = vor.u32 %v5224_v61, %v3756_v60 }
  0x9a   : > { %1382 = vmatpush.bf16.msra.mxu3 %v3973_v42  ;;  %v5274_v57 = vld [vmem:[%s6289_s20 + $0x1b4] sm:$0xf0]  ;;  %v3893_v59 = vor.u32 %v5258_v53, %v3892_v52  ;;  %v5240_v63 = vld [vmem:[%s6289_s20 + $0xa4] sm:$0xf0]  ;;  %v3884_v0 = vld [vmem:[%s6289_s20 + $0x120] sm:$0xf] }
  0x9b   : > { %1344 = vmatpush.bf16.msra.mxu0 %v3773_v43  ;;  %v5256_v1 = vld [vmem:[%s6289_s20 + $0x124] sm:$0xf0]  ;;  %v3957_v2 = vor.u32 %v5274_v57, %v3956_v56  ;;  %v3948_v4 = vld [vmem:[%s6289_s20 + $0x1a0] sm:$0xf]  ;;  %v3821_v6 = vor.u32 %v5240_v63, %v3820_v62  ;;  %v3748_v8 = vld [vmem:[%s6289_s20 + $0x10] sm:$0xf] }
  0x9c   : > { %1357 = vmatpush.bf16.msra.mxu1 %v3837_v46  ;;  %v5272_v5 = vld [vmem:[%s6289_s20 + $0x1a4] sm:$0xf0]  ;;  %v3885_v7 = vor.u32 %v5256_v1, %v3884_v0  ;;  %v5222_v9 = vld [vmem:[%s6289_s20 + $0x14] sm:$0xf0]  ;;  %v3812_v10 = vld [vmem:[%s6289_s20 + $0x90] sm:$0xf] }
  0x9d   : > { %1370 = vmatpush.bf16.msra.mxu2 %v3901_v47  ;;  %v5238_v11 = vld [vmem:[%s6289_s20 + $0x94] sm:$0xf0]  ;;  %v3876_v12 = vld [vmem:[%s6289_s20 + $0x110] sm:$0xf]  ;;  %v3949_v14 = vor.u32 %v5272_v5, %v3948_v4  ;;  %v3740_v15 = vld [vmem:[%s6289_s20] sm:$0xf]  ;;  %v3749_v16 = vor.u32 %v5222_v9, %v3748_v8 }
  0x9e   : > { %1383 = vmatpush.bf16.msra.mxu3 %v3965_v54  ;;  %v5254_v13 = vld [vmem:[%s6289_s20 + $0x114] sm:$0xf0]  ;;  %v5220_v17 = vld [vmem:[%s6289_s20 + $0x4] sm:$0xf0]  ;;  %v3940_v18 = vld [vmem:[%s6289_s20 + $0x190] sm:$0xf]  ;;  %v3813_v20 = vor.u32 %v5238_v11, %v3812_v10 }
  0x9f   : > { %1345 = vmatpush.bf16.msra.mxu0 %v3765_v55  ;;  %v5270_v19 = vld [vmem:[%s6289_s20 + $0x194] sm:$0xf0]  ;;  %v3877_v21 = vor.u32 %v5254_v13, %v3876_v12  ;;  %v3804_v22 = vld [vmem:[%s6289_s20 + $0x80] sm:$0xf]  ;;  %v5236_v23 = vld [vmem:[%s6289_s20 + $0x84] sm:$0xf0]  ;;  %v3741_v32 = vor.u32 %v5220_v17, %v3740_v15 }
  0xa0   : > { %1358 = vmatpush.bf16.msra.mxu1 %v3829_v58  ;;  %v4052_v24 = vld [vmem:[%s6289_s20 + $0x270] sm:$0xf]  ;;  %v5298_v25 = vld [vmem:[%s6289_s20 + $0x274] sm:$0xf0]  ;;  %v3941_v28 = vor.u32 %v5270_v19, %v3940_v18  ;;  %v3868_v29 = vld [vmem:[%s6289_s20 + $0x100] sm:$0xf]  ;;  %v3805_v36 = vor.u32 %v5236_v23, %v3804_v22 }
  0xa1   : > { %1371 = vmatpush.bf16.msra.mxu2 %v3893_v59  ;;  %v4116_v26 = vld [vmem:[%s6289_s20 + $0x2f0] sm:$0xf]  ;;  %v5314_v27 = vld [vmem:[%s6289_s20 + $0x2f4] sm:$0xf0]  ;;  %v5252_v30 = vld [vmem:[%s6289_s20 + $0x104] sm:$0xf0]  ;;  %v4053_v37 = vor.u32 %v5298_v25, %v4052_v24 }
  0xa2   : > { %1384 = vmatpush.bf16.msra.mxu3 %v3957_v2  ;;  %v4180_v31 = vld [vmem:[%s6289_s20 + $0x370] sm:$0xf]  ;;  %v5330_v33 = vld [vmem:[%s6289_s20 + $0x374] sm:$0xf0]  ;;  %v3932_v34 = vld [vmem:[%s6289_s20 + $0x180] sm:$0xf]  ;;  %v4117_v40 = vor.u32 %v5314_v27, %v4116_v26  ;;  %v3869_v41 = vor.u32 %v5252_v30, %v3868_v29 }
  0xa3   : > { %1346 = vmatpush.bf16.msra.mxu0 %v3757_v3  ;;  %v5268_v35 = vld [vmem:[%s6289_s20 + $0x184] sm:$0xf0]  ;;  %v4244_v38 = vld [vmem:[%s6289_s20 + $0x3f0] sm:$0xf]  ;;  %v5346_v39 = vld [vmem:[%s6289_s20 + $0x3f4] sm:$0xf0]  ;;  %v4181_v44 = vor.u32 %v5330_v33, %v4180_v31 }
  0xa4   : > { %1359 = vmatpush.bf16.msra.mxu1 %v3821_v6  ;;  %v4044_v42 = vld [vmem:[%s6289_s20 + $0x260] sm:$0xf]  ;;  %v5296_v43 = vld [vmem:[%s6289_s20 + $0x264] sm:$0xf0]  ;;  %v3933_v45 = vor.u32 %v5268_v35, %v3932_v34  ;;  %v4245_v48 = vor.u32 %v5346_v39, %v4244_v38  ;;  %v4036_v55 = vld [vmem:[%s6289_s20 + $0x250] sm:$0xf] }
  0xa5   : > { %1372 = vmatpush.bf16.msra.mxu2 %v3885_v7  ;;  %v4108_v46 = vld [vmem:[%s6289_s20 + $0x2e0] sm:$0xf]  ;;  %v5312_v47 = vld [vmem:[%s6289_s20 + $0x2e4] sm:$0xf0]  ;;  %v4045_v51 = vor.u32 %v5296_v43, %v4044_v42  ;;  %v5294_v56 = vld [vmem:[%s6289_s20 + $0x254] sm:$0xf0] }
  0xa6   : > { %1385 = vmatpush.bf16.msra.mxu3 %v3949_v14  ;;  %v4172_v49 = vld [vmem:[%s6289_s20 + $0x360] sm:$0xf]  ;;  %v5328_v50 = vld [vmem:[%s6289_s20 + $0x364] sm:$0xf0]  ;;  %v4109_v54 = vor.u32 %v5312_v47, %v4108_v46  ;;  %v542_v57 = vld [vmem:[%s6276_s26 + $0x8] sm:$0xff]  ;;  %v4037_v5 = vor.u32 %v5294_v56, %v4036_v55  ;;  %p4826_p1 = scmp.ne.s32.totalorder %s6126_s0, 1 }
  0xa7   : > { %1347 = vmatpush.bf16.msra.mxu0 %v3749_v16  ;;  %v4236_v52 = vld [vmem:[%s6289_s20 + $0x3e0] sm:$0xf]  ;;  %v5344_v53 = vld [vmem:[%s6289_s20 + $0x3e4] sm:$0xf0]  ;;  %v4173_v58 = vor.u32 %v5328_v50, %v4172_v49  ;;  %v4100_v59 = vld [vmem:[%s6289_s20 + $0x2d0] sm:$0xf]  ;;  %v679_v61 = vunpack.c.l.b16 %v542_v57  ;;  %v680_v63 = vunpack.c.h.b16 %v542_v57 }
  0xa8   : > { %1360 = vmatpush.bf16.msra.mxu1 %v3813_v20  ;;  %v5310_v60 = vld [vmem:[%s6289_s20 + $0x2d4] sm:$0xf0]  ;;  %v541_v62 = vld [vmem:[%s6276_s26] sm:$0xff]  ;;  %v4237_v0 = vor.u32 %v5344_v53, %v4236_v52  ;;  %v4164_v1 = vld [vmem:[%s6289_s20 + $0x350] sm:$0xf]  ;;  %s3487_s15 = sld [smem:[#allocation4]] (!%p4826_p1) }
  0xa9   : > { %1373 = vmatpush.bf16.msra.mxu2 %v3877_v21  ;;  %v5326_v2 = vld [vmem:[%s6289_s20 + $0x354] sm:$0xf0]  ;;  %v677_v3 = vunpack.c.l.b16 %v541_v62  ;;  %v678_v4 = vunpack.c.h.b16 %v541_v62  ;;  %v4228_v6 = vld [vmem:[%s6289_s20 + $0x3d0] sm:$0xf]  ;;  %v6401_v8 = vpack.c.b16 %v679_v61, %v679_v61  ;;  %v6403_v9 = vpack.c.b16 %v680_v63, %v680_v63  ;;  %v4028_v11 = vld [vmem:[%s6289_s20 + $0x240] sm:$0xf] }
  0xaa   : > { %1386 = vmatpush.bf16.msra.mxu3 %v3941_v28  ;;  %v5342_v7 = vld [vmem:[%s6289_s20 + $0x3d4] sm:$0xf0]  ;;  %v4101_v10 = vor.u32 %v5310_v60, %v4100_v59  ;;  %v5292_v12 = vld [vmem:[%s6289_s20 + $0x244] sm:$0xf0]  ;;  %v4165_v15 = vor.u32 %v5326_v2, %v4164_v1  ;;  %v4092_v16 = vld [vmem:[%s6289_s20 + $0x2c0] sm:$0xf] }
  0xab   : > { %1348 = vmatpush.bf16.msra.mxu0 %v3741_v32  ;;  %v6407_v13 = vpack.c.b16 %v677_v3, %v677_v3  ;;  %v6409_v14 = vpack.c.b16 %v678_v4, %v678_v4  ;;  %v5308_v17 = vld [vmem:[%s6289_s20 + $0x2c4] sm:$0xf0]  ;;  %v4229_v18 = vor.u32 %v5342_v7, %v4228_v6  ;;  %v4156_v19 = vld [vmem:[%s6289_s20 + $0x340] sm:$0xf]  ;;  %v4029_v21 = vor.u32 %v5292_v12, %v4028_v11  ;;  %v4020_v25 = vld [vmem:[%s6289_s20 + $0x230] sm:$0xf] }
  0xac   : > { %1361 = vmatpush.bf16.msra.mxu1 %v3805_v36  ;;  %v5324_v20 = vld [vmem:[%s6289_s20 + $0x344] sm:$0xf0]  ;;  %v4220_v22 = vld [vmem:[%s6289_s20 + $0x3c0] sm:$0xf]  ;;  %v4093_v24 = vor.u32 %v5308_v17, %v4092_v16  ;;  %v5290_v26 = vld [vmem:[%s6289_s20 + $0x234] sm:$0xf0] }
  0xad   : > { %1374 = vmatpush.bf16.msra.mxu2 %v3869_v41  ;;  %v5340_v23 = vld [vmem:[%s6289_s20 + $0x3c4] sm:$0xf0]  ;;  %v4157_v27 = vor.u32 %v5324_v20, %v4156_v19  ;;  %v4084_v28 = vld [vmem:[%s6289_s20 + $0x2b0] sm:$0xf]  ;;  %v5306_v29 = vld [vmem:[%s6289_s20 + $0x2b4] sm:$0xf0]  ;;  %v4021_v33 = vor.u32 %v5290_v26, %v4020_v25 }
  0xae   : > { %1387 = vmatpush.bf16.msra.mxu3 %v3933_v45  ;;  %1349 = vmatmul.bf16.vlgmr.msra.gmra.mxu0 %v6407_v13  ;;  %v4221_v30 = vor.u32 %v5340_v23, %v4220_v22  ;;  %v4148_v31 = vld [vmem:[%s6289_s20 + $0x330] sm:$0xf]  ;;  %v5322_v32 = vld [vmem:[%s6289_s20 + $0x334] sm:$0xf0]  ;;  %v4085_v36 = vor.u32 %v5306_v29, %v4084_v28  ;;  %v5288_v38 = vld [vmem:[%s6289_s20 + $0x224] sm:$0xf0] }
  0xaf   : > { %1393 = vmatpush.bf16.msrb.mxu0 %v4053_v37  ;;  %1362 = vmatmul.bf16.vlgmr.msra.gmra.mxu1 %v6409_v14  ;;  %v4212_v34 = vld [vmem:[%s6289_s20 + $0x3b0] sm:$0xf]  ;;  %v5338_v35 = vld [vmem:[%s6289_s20 + $0x3b4] sm:$0xf0]  ;;  %v4012_v37 = vld [vmem:[%s6289_s20 + $0x220] sm:$0xf]  ;;  %v4149_v39 = vor.u32 %v5322_v32, %v4148_v31 }
  0xb0   : > { %1406 = vmatpush.bf16.msrb.mxu1 %v4117_v40  ;;  %1375 = vmatmul.bf16.vlgmr.msra.gmra.mxu2 %v6401_v8  ;;  %v4076_v40 = vld [vmem:[%s6289_s20 + $0x2a0] sm:$0xf]  ;;  %v5304_v41 = vld [vmem:[%s6289_s20 + $0x2a4] sm:$0xf0]  ;;  %v4213_v42 = vor.u32 %v5338_v35, %v4212_v34  ;;  %v4013_v45 = vor.u32 %v5288_v38, %v4012_v37  ;;  %v4004_v49 = vld [vmem:[%s6289_s20 + $0x210] sm:$0xf] }
  0xb1   : > { %1419 = vmatpush.bf16.msrb.mxu2 %v4181_v44  ;;  %1388 = vmatmul.bf16.vlgmr.msra.gmra.mxu3 %v6403_v9  ;;  %v4140_v43 = vld [vmem:[%s6289_s20 + $0x320] sm:$0xf]  ;;  %v5320_v44 = vld [vmem:[%s6289_s20 + $0x324] sm:$0xf0]  ;;  %v5286_v50 = vld [vmem:[%s6289_s20 + $0x214] sm:$0xf0] }
  0xb2   : > { %1432 = vmatpush.bf16.msrb.mxu3 %v4245_v48  ;;  %v4204_v46 = vld [vmem:[%s6289_s20 + $0x3a0] sm:$0xf]  ;;  %v5336_v47 = vld [vmem:[%s6289_s20 + $0x3a4] sm:$0xf0]  ;;  %v4077_v48 = vor.u32 %v5304_v41, %v4076_v40  ;;  %v4068_v52 = vld [vmem:[%s6289_s20 + $0x290] sm:$0xf]  ;;  %v4005_v59 = vor.u32 %v5286_v50, %v4004_v49 }
  0xb3   : > { %1394 = vmatpush.bf16.msrb.mxu0 %v4045_v51  ;;  %v4141_v51 = vor.u32 %v5320_v44, %v4140_v43  ;;  %v5302_v53 = vld [vmem:[%s6289_s20 + $0x294] sm:$0xf0]  ;;  %v4205_v55 = vor.u32 %v5336_v47, %v4204_v46  ;;  %v3996_v57 = vld [vmem:[%s6289_s20 + $0x200] sm:$0xf]  ;;  %v5300_v61 = vld [vmem:[%s6289_s20 + $0x284] sm:$0xf0] }
  0xb4   : > { %1407 = vmatpush.bf16.msrb.mxu1 %v4109_v54  ;;  %v4132_v54 = vld [vmem:[%s6289_s20 + $0x310] sm:$0xf]  ;;  %v5318_v56 = vld [vmem:[%s6289_s20 + $0x314] sm:$0xf0]  ;;  %v4060_v60 = vld [vmem:[%s6289_s20 + $0x280] sm:$0xf] }
  0xb5   : > { %1420 = vmatpush.bf16.msrb.mxu2 %v4173_v58  ;;  %v5284_v58 = vld [vmem:[%s6289_s20 + $0x204] sm:$0xf0]  ;;  %v4196_v62 = vld [vmem:[%s6289_s20 + $0x390] sm:$0xf]  ;;  %v5334_v63 = vld [vmem:[%s6289_s20 + $0x394] sm:$0xf0]  ;;  %v4133_v4 = vor.u32 %v5318_v56, %v4132_v54 }
  0xb6   : > { %1433 = vmatpush.bf16.msrb.mxu3 %v4237_v0  ;;  %v4069_v0 = vor.u32 %v5302_v53, %v4068_v52  ;;  %v5233_v1 = vld [vmem:[%s6289_s20 + $0x74] sm:$0xf]  ;;  %v3798_v2 = vld [vmem:[%s6289_s20 + $0x78] sm:$0xf0]  ;;  %v544_v7 = vld [vmem:[%s6276_s26 + $0x18] sm:$0xff]  ;;  %v3997_v16 = vor.u32 %v5284_v58, %v3996_v57 }
  0xb7   : > { %1395 = vmatpush.bf16.msrb.mxu0 %v4037_v5  ;;  %v543_v3 = vld [vmem:[%s6276_s26 + $0x10] sm:$0xff]  ;;  %v5249_v5 = vld [vmem:[%s6289_s20 + $0xf4] sm:$0xf]  ;;  %v4124_v11 = vld [vmem:[%s6289_s20 + $0x300] sm:$0xf]  ;;  %v3801_v22 = vor.u32 %v5233_v1, %v3798_v2  ;;  %v683_v23 = vunpack.c.l.b16 %v544_v7 }
  0xb8   : > { %1408 = vmatpush.bf16.msrb.mxu1 %v4101_v10  ;;  %v3862_v6 = vld [vmem:[%s6289_s20 + $0xf8] sm:$0xf0]  ;;  %v4197_v10 = vor.u32 %v5334_v63, %v4196_v62  ;;  %v5316_v12 = vld [vmem:[%s6289_s20 + $0x304] sm:$0xf0]  ;;  %v681_v20 = vunpack.c.l.b16 %v543_v3  ;;  %v5231_v28 = vld [vmem:[%s6289_s20 + $0x64] sm:$0xf]  ;;  %v682_v35 = vunpack.c.h.b16 %v543_v3 }
  0xb9   : > { %1421 = vmatpush.bf16.msrb.mxu2 %v4165_v15  ;;  %v5265_v15 = vld [vmem:[%s6289_s20 + $0x174] sm:$0xf]  ;;  %v3926_v17 = vld [vmem:[%s6289_s20 + $0x178] sm:$0xf0]  ;;  %v5332_v19 = vld [vmem:[%s6289_s20 + $0x384] sm:$0xf0]  ;;  %v3865_v26 = vor.u32 %v5249_v5, %v3862_v6  ;;  %v6471_v40 = vpack.c.b16 %v683_v23, %v683_v23 }
  0xba   : > { %1434 = vmatpush.bf16.msrb.mxu3 %v4229_v18  ;;  %v4188_v18 = vld [vmem:[%s6289_s20 + $0x380] sm:$0xf]  ;;  %v3990_v25 = vld [vmem:[%s6289_s20 + $0x1f8] sm:$0xf0]  ;;  %v3790_v29 = vld [vmem:[%s6289_s20 + $0x68] sm:$0xf0]  ;;  %v3929_v31 = vor.u32 %v5265_v15, %v3926_v17  ;;  %v6467_v37 = vpack.c.b16 %v681_v20, %v681_v20  ;;  %v6479_v49 = vpack.c.b16 %v682_v35, %v682_v35 }
  0xbb   : > { %1396 = vmatpush.bf16.msrb.mxu0 %v4029_v21  ;;  %v4061_v21 = vor.u32 %v5300_v61, %v4060_v60  ;;  %v4189_v32 = vor.u32 %v5332_v19, %v4188_v18  ;;  %v3854_v34 = vld [vmem:[%s6289_s20 + $0xe8] sm:$0xf0]  ;;  %v5263_v38 = vld [vmem:[%s6289_s20 + $0x164] sm:$0xf]  ;;  %v3793_v41 = vor.u32 %v5231_v28, %v3790_v29  ;;  %v5229_v46 = vld [vmem:[%s6289_s20 + $0x54] sm:$0xf] }
  0xbc   : > { %1409 = vmatpush.bf16.msrb.mxu1 %v4093_v24  ;;  %v5281_v24 = vld [vmem:[%s6289_s20 + $0x1f4] sm:$0xf]  ;;  %v3982_v43 = vld [vmem:[%s6289_s20 + $0x1e8] sm:$0xf0]  ;;  %v3782_v47 = vld [vmem:[%s6289_s20 + $0x58] sm:$0xf0] }
  0xbd   : > { %1422 = vmatpush.bf16.msrb.mxu2 %v4157_v27  ;;  %v4125_v27 = vor.u32 %v5316_v12, %v4124_v11  ;;  %v5245_v50 = vld [vmem:[%s6289_s20 + $0xd4] sm:$0xf]  ;;  %v3910_v54 = vld [vmem:[%s6289_s20 + $0x158] sm:$0xf0]  ;;  %v3774_v60 = vld [vmem:[%s6289_s20 + $0x48] sm:$0xf0] }
  0xbe   : > { %1435 = vmatpush.bf16.msrb.mxu3 %v4221_v30  ;;  %v684_v30 = vunpack.c.h.b16 %v544_v7  ;;  %v5261_v53 = vld [vmem:[%s6289_s20 + $0x154] sm:$0xf]  ;;  %v3974_v57 = vld [vmem:[%s6289_s20 + $0x1d8] sm:$0xf0]  ;;  %v5243_v62 = vld [vmem:[%s6289_s20 + $0xc4] sm:$0xf] }
  0xbf   : > { %1397 = vmatpush.bf16.msrb.mxu0 %v4021_v33  ;;  %v5247_v33 = vld [vmem:[%s6289_s20 + $0xe4] sm:$0xf]  ;;  %v5277_v56 = vld [vmem:[%s6289_s20 + $0x1d4] sm:$0xf]  ;;  %v3913_v61 = vor.u32 %v5261_v53, %v3910_v54  ;;  %v3838_v63 = vld [vmem:[%s6289_s20 + $0xc8] sm:$0xf0] }
  0xc0   : > { %1410 = vmatpush.bf16.msrb.mxu1 %v4085_v36  ;;  %v3993_v36 = vor.u32 %v5281_v24, %v3990_v25  ;;  %v3857_v44 = vor.u32 %v5247_v33, %v3854_v34  ;;  %v5259_v1 = vld [vmem:[%s6289_s20 + $0x144] sm:$0xf]  ;;  %v3902_v2 = vld [vmem:[%s6289_s20 + $0x148] sm:$0xf0]  ;;  %v3841_v6 = vor.u32 %v5243_v62, %v3838_v63  ;;  %v5225_v7 = vld [vmem:[%s6289_s20 + $0x34] sm:$0xf] }
  0xc1   : > { %1423 = vmatpush.bf16.msrb.mxu2 %v4149_v39  ;;  %v3918_v39 = vld [vmem:[%s6289_s20 + $0x168] sm:$0xf0]  ;;  %v3905_v11 = vor.u32 %v5259_v1, %v3902_v2  ;;  %v5241_v12 = vld [vmem:[%s6289_s20 + $0xb4] sm:$0xf]  ;;  %v3830_v15 = vld [vmem:[%s6289_s20 + $0xb8] sm:$0xf0] }
  0xc2   : > { %1436 = vmatpush.bf16.msrb.mxu3 %v4213_v42  ;;  %v5279_v42 = vld [vmem:[%s6289_s20 + $0x1e4] sm:$0xf]  ;;  %v3966_v5 = vld [vmem:[%s6289_s20 + $0x1c8] sm:$0xf0]  ;;  %v5257_v17 = vld [vmem:[%s6289_s20 + $0x134] sm:$0xf] }
  0xc3   : > { %1398 = vmatpush.bf16.msrb.mxu0 %v4013_v45  ;;  %v6475_v45 = vpack.c.b16 %v684_v30, %v684_v30  ;;  %v3985_v52 = vor.u32 %v5279_v42, %v3982_v43  ;;  %v3894_v18 = vld [vmem:[%s6289_s20 + $0x138] sm:$0xf0]  ;;  %v5273_v20 = vld [vmem:[%s6289_s20 + $0x1b4] sm:$0xf]  ;;  %v5223_v23 = vld [vmem:[%s6289_s20 + $0x24] sm:$0xf] }
  0xc4   : > { %1411 = vmatpush.bf16.msrb.mxu1 %v4077_v48  ;;  %v3921_v48 = vor.u32 %v5263_v38, %v3918_v39  ;;  %v3758_v24 = vld [vmem:[%s6289_s20 + $0x28] sm:$0xf0]  ;;  %v3897_v25 = vor.u32 %v5257_v17, %v3894_v18  ;;  %v5255_v29 = vld [vmem:[%s6289_s20 + $0x124] sm:$0xf]  ;;  %v5221_v35 = vld [vmem:[%s6289_s20 + $0x14] sm:$0xf] }
  0xc5   : > { %1424 = vmatpush.bf16.msrb.mxu2 %v4141_v51  ;;  %v3846_v51 = vld [vmem:[%s6289_s20 + $0xd8] sm:$0xf0]  ;;  %v3886_v30 = vld [vmem:[%s6289_s20 + $0x128] sm:$0xf0]  ;;  %v5237_v39 = vld [vmem:[%s6289_s20 + $0x94] sm:$0xf] }
  0xc6   : > { %1437 = vmatpush.bf16.msrb.mxu3 %v4205_v55  ;;  %v3785_v55 = vor.u32 %v5229_v46, %v3782_v47  ;;  %v3849_v58 = vor.u32 %v5245_v50, %v3846_v51  ;;  %v3950_v33 = vld [vmem:[%s6289_s20 + $0x1a8] sm:$0xf0]  ;;  %v3889_v38 = vor.u32 %v5255_v29, %v3886_v30  ;;  %v5253_v43 = vld [vmem:[%s6289_s20 + $0x114] sm:$0xf]  ;;  %v5219_v46 = vld [vmem:[%s6289_s20 + $0x4] sm:$0xf] }
  0xc7   : > { %1399 = vmatpush.bf16.msrb.mxu0 %v4005_v59  ;;  %v5227_v59 = vld [vmem:[%s6289_s20 + $0x44] sm:$0xf]  ;;  %v5269_v50 = vld [vmem:[%s6289_s20 + $0x194] sm:$0xf]  ;;  %v3942_v51 = vld [vmem:[%s6289_s20 + $0x198] sm:$0xf0] }
  0xc8   : > { %1412 = vmatpush.bf16.msrb.mxu1 %v4069_v0  ;;  %v3977_v0 = vor.u32 %v5277_v56, %v3974_v57  ;;  %v3777_v3 = vor.u32 %v5227_v59, %v3774_v60  ;;  %v5235_v53 = vld [vmem:[%s6289_s20 + $0x84] sm:$0xf]  ;;  %v3806_v54 = vld [vmem:[%s6289_s20 + $0x88] sm:$0xf0]  ;;  %v4054_v57 = vld [vmem:[%s6289_s20 + $0x278] sm:$0xf0]  ;;  %v3945_v60 = vor.u32 %v5269_v50, %v3942_v51 }
  0xc9   : > { %1425 = vmatpush.bf16.msrb.mxu2 %v4133_v4  ;;  %v5275_v4 = vld [vmem:[%s6289_s20 + $0x1c4] sm:$0xf]  ;;  %v4118_v59 = vld [vmem:[%s6289_s20 + $0x2f8] sm:$0xf0]  ;;  %v3870_v62 = vld [vmem:[%s6289_s20 + $0x108] sm:$0xf0] }
  0xca   : > { %1438 = vmatpush.bf16.msrb.mxu3 %v4197_v10  ;;  %v3766_v10 = vld [vmem:[%s6289_s20 + $0x38] sm:$0xf0]  ;;  %v5329_v63 = vld [vmem:[%s6289_s20 + $0x374] sm:$0xf]  ;;  %v5267_v2 = vld [vmem:[%s6289_s20 + $0x184] sm:$0xf] }
  0xcb   : > { %1400 = vmatpush.bf16.msrb.mxu0 %v3997_v16  ;;  %v3969_v16 = vor.u32 %v5275_v4, %v3966_v5  ;;  %v3769_v19 = vor.u32 %v5225_v7, %v3766_v10  ;;  %v4182_v1 = vld [vmem:[%s6289_s20 + $0x378] sm:$0xf0]  ;;  %v3809_v4 = vor.u32 %v5235_v53, %v3806_v54  ;;  %v5311_v18 = vld [vmem:[%s6289_s20 + $0x2e4] sm:$0xf]  ;;  %v5309_v30 = vld [vmem:[%s6289_s20 + $0x2d4] sm:$0xf] }
  0xcc   : > { %1413 = vmatpush.bf16.msrb.mxu1 %v4061_v21  ;;  %v3958_v21 = vld [vmem:[%s6289_s20 + $0x1b8] sm:$0xf0]  ;;  %v5339_v50 = vld [vmem:[%s6289_s20 + $0x3c4] sm:$0xf]  ;;  %v5305_v54 = vld [vmem:[%s6289_s20 + $0x2b4] sm:$0xf] }
  0xcd   : > { %1426 = vmatpush.bf16.msrb.mxu2 %v4125_v27  ;;  %v3822_v27 = vld [vmem:[%s6289_s20 + $0xa8] sm:$0xf0]  ;;  %v3961_v28 = vor.u32 %v5273_v20, %v3958_v21  ;;  %v4246_v7 = vld [vmem:[%s6289_s20 + $0x3f8] sm:$0xf0]  ;;  %v5327_v21 = vld [vmem:[%s6289_s20 + $0x364] sm:$0xf] }
  0xce   : > { %1439 = vmatpush.bf16.msrb.mxu3 %v4189_v32  ;;  %1401 = vmatmul.bf16.vlgmr.msrb.gmra.mxu0 %v6467_v37  ;;  %v5271_v32 = vld [vmem:[%s6289_s20 + $0x1a4] sm:$0xf]  ;;  %v4022_v53 = vld [vmem:[%s6289_s20 + $0x238] sm:$0xf0] }
  0xcf   : > { %1445 = vmatpush.bf16.msra.mxu0 %v3801_v22  ;;  %1414 = vmatmul.bf16.vlgmr.msrb.gmra.mxu1 %v6479_v49  ;;  %v3833_v22 = vor.u32 %v5241_v12, %v3830_v15  ;;  %v3953_v42 = vor.u32 %v5271_v32, %v3950_v33  ;;  %v5295_v12 = vld [vmem:[%s6289_s20 + $0x264] sm:$0xf]  ;;  %v4046_v15 = vld [vmem:[%s6289_s20 + $0x268] sm:$0xf0]  ;;  %v5325_v33 = vld [vmem:[%s6289_s20 + $0x354] sm:$0xf] }
  0xd0   : > { %1458 = vmatpush.bf16.msra.mxu1 %v3865_v26  ;;  %1427 = vmatmul.bf16.vlgmr.msrb.gmra.mxu2 %v6471_v40  ;;  %v5239_v26 = vld [vmem:[%s6289_s20 + $0xa4] sm:$0xf] }
  0xd1   : > { %1471 = vmatpush.bf16.msra.mxu2 %v3929_v31  ;;  %1440 = vmatmul.bf16.vlgmr.msrb.gmra.mxu3 %v6475_v45  ;;  %v3761_v31 = vor.u32 %v5223_v23, %v3758_v24  ;;  %v3825_v34 = vor.u32 %v5239_v26, %v3822_v27  ;;  %v4049_v23 = vor.u32 %v5295_v12, %v4046_v15  ;;  %v5343_v24 = vld [vmem:[%s6289_s20 + $0x3e4] sm:$0xf]  ;;  %v5293_v27 = vld [vmem:[%s6289_s20 + $0x254] sm:$0xf] }
  0xd2   : > { %1484 = vmatpush.bf16.msra.mxu3 %v3993_v36  ;;  %v3750_v36 = vld [vmem:[%s6289_s20 + $0x18] sm:$0xf0]  ;;  %v5285_v15 = vld [vmem:[%s6289_s20 + $0x214] sm:$0xf] }
  0xd3   : > { %1446 = vmatpush.bf16.msra.mxu0 %v3793_v41  ;;  %v3814_v41 = vld [vmem:[%s6289_s20 + $0x98] sm:$0xf0]  ;;  %v3753_v47 = vor.u32 %v5221_v35, %v3750_v36  ;;  %v5341_v36 = vld [vmem:[%s6289_s20 + $0x3d4] sm:$0xf] }
  0xd4   : > { %1459 = vmatpush.bf16.msra.mxu1 %v3857_v44  ;;  %v3878_v44 = vld [vmem:[%s6289_s20 + $0x118] sm:$0xf0] }
  0xd5   : > { %1472 = vmatpush.bf16.msra.mxu2 %v3921_v48  ;;  %v3742_v48 = vld [vmem:[%s6289_s20 + $0x8] sm:$0xf0]  ;;  %v3881_v56 = vor.u32 %v5253_v43, %v3878_v44  ;;  %v5307_v43 = vld [vmem:[%s6289_s20 + $0x2c4] sm:$0xf] }
  0xd6   : > { %1485 = vmatpush.bf16.msra.mxu3 %v3985_v52  ;;  %v3817_v52 = vor.u32 %v5237_v39, %v3814_v41  ;;  %v5291_v41 = vld [vmem:[%s6289_s20 + $0x244] sm:$0xf]  ;;  %v4094_v44 = vld [vmem:[%s6289_s20 + $0x2c8] sm:$0xf0] }
  0xd7   : > { %1447 = vmatpush.bf16.msra.mxu0 %v3785_v55  ;;  %v5297_v55 = vld [vmem:[%s6289_s20 + $0x274] sm:$0xf]  ;;  %v4097_v51 = vor.u32 %v5307_v43, %v4094_v44 }
  0xd8   : > { %1460 = vmatpush.bf16.msra.mxu1 %v3849_v58  ;;  %v5313_v58 = vld [vmem:[%s6289_s20 + $0x2f4] sm:$0xf]  ;;  %v4057_v5 = vor.u32 %v5297_v55, %v4054_v57  ;;  %v4086_v55 = vld [vmem:[%s6289_s20 + $0x2b8] sm:$0xf0] }
  0xd9   : > { %1473 = vmatpush.bf16.msra.mxu2 %v3913_v61  ;;  %v5251_v61 = vld [vmem:[%s6289_s20 + $0x104] sm:$0xf]  ;;  %v4121_v10 = vor.u32 %v5313_v58, %v4118_v59  ;;  %v5321_v57 = vld [vmem:[%s6289_s20 + $0x334] sm:$0xf]  ;;  %v4150_v58 = vld [vmem:[%s6289_s20 + $0x338] sm:$0xf0] }
  0xda   : > { %1486 = vmatpush.bf16.msra.mxu3 %v3977_v0  ;;  %v3745_v0 = vor.u32 %v5219_v46, %v3742_v48  ;;  %v5323_v46 = vld [vmem:[%s6289_s20 + $0x344] sm:$0xf] }
  0xdb   : > { %1448 = vmatpush.bf16.msra.mxu0 %v3777_v3  ;;  %v3934_v3 = vld [vmem:[%s6289_s20 + $0x188] sm:$0xf0] }
  0xdc   : > { %1461 = vmatpush.bf16.msra.mxu1 %v3841_v6  ;;  %v5345_v6 = vld [vmem:[%s6289_s20 + $0x3f4] sm:$0xf]  ;;  %v3937_v17 = vor.u32 %v5267_v2, %v3934_v3  ;;  %v5303_v2 = vld [vmem:[%s6289_s20 + $0x2a4] sm:$0xf]  ;;  %v4078_v3 = vld [vmem:[%s6289_s20 + $0x2a8] sm:$0xf0] }
  0xdd   : > { %1474 = vmatpush.bf16.msra.mxu2 %v3905_v11  ;;  %v3873_v11 = vor.u32 %v5251_v61, %v3870_v62  ;;  %v4249_v20 = vor.u32 %v5345_v6, %v4246_v7  ;;  %v4214_v61 = vld [vmem:[%s6289_s20 + $0x3b8] sm:$0xf0]  ;;  %v4089_v62 = vor.u32 %v5305_v54, %v4086_v55  ;;  %v4142_v6 = vld [vmem:[%s6289_s20 + $0x328] sm:$0xf0]  ;;  %v4081_v12 = vor.u32 %v5303_v2, %v4078_v3  ;;  %v5389_v54 = vld [vmem:[%s6291_s29 + $0x154] sm:$0xf] }
  0xde   : > { %1487 = vmatpush.bf16.msra.mxu3 %v3969_v16  ;;  %v4185_v16 = vor.u32 %v5329_v63, %v4182_v1  ;;  %v5287_v63 = vld [vmem:[%s6289_s20 + $0x224] sm:$0xf]  ;;  %v4153_v1 = vor.u32 %v5321_v57, %v4150_v58  ;;  %v4422_v55 = vld [vmem:[%s6291_s29 + $0x168] sm:$0xf0]  ;;  %v4780_v57 = vld [vmem:[%s6291_s29 + $0x420] sm:$0xf] }
  0xdf   : > { %1449 = vmatpush.bf16.msra.mxu0 %v3769_v19  ;;  %v4110_v19 = vld [vmem:[%s6289_s20 + $0x2e8] sm:$0xf0]  ;;  %v5482_v58 = vld [vmem:[%s6291_s29 + $0x434] sm:$0xf0]  ;;  %v5383_v2 = vld [vmem:[%s6291_s29 + $0x124] sm:$0xf] }
  0xe0   : > { %1462 = vmatpush.bf16.msra.mxu1 %v3833_v22  ;;  %v4174_v22 = vld [vmem:[%s6289_s20 + $0x368] sm:$0xf0]  ;;  %v4113_v26 = vor.u32 %v5311_v18, %v4110_v19  ;;  %v5301_v18 = vld [vmem:[%s6289_s20 + $0x294] sm:$0xf]  ;;  %v4070_v19 = vld [vmem:[%s6289_s20 + $0x298] sm:$0xf0] }
  0xe1   : > { %1475 = vmatpush.bf16.msra.mxu2 %v3897_v25  ;;  %v4238_v25 = vld [vmem:[%s6289_s20 + $0x3e8] sm:$0xf0]  ;;  %v4177_v29 = vor.u32 %v5327_v21, %v4174_v22  ;;  %v5317_v21 = vld [vmem:[%s6289_s20 + $0x314] sm:$0xf]  ;;  %v4134_v22 = vld [vmem:[%s6289_s20 + $0x318] sm:$0xf0] }
  0xe2   : > { %1488 = vmatpush.bf16.msra.mxu3 %v3961_v28  ;;  %v4038_v28 = vld [vmem:[%s6289_s20 + $0x258] sm:$0xf0]  ;;  %v4241_v32 = vor.u32 %v5343_v24, %v4238_v25  ;;  %v5283_v24 = vld [vmem:[%s6289_s20 + $0x204] sm:$0xf]  ;;  %v5333_v25 = vld [vmem:[%s6289_s20 + $0x394] sm:$0xf] }
  0xe3   : > { %1450 = vmatpush.bf16.msra.mxu0 %v3761_v31  ;;  %v4102_v31 = vld [vmem:[%s6289_s20 + $0x2d8] sm:$0xf0]  ;;  %v4041_v35 = vor.u32 %v5293_v27, %v4038_v28  ;;  %v4073_v27 = vor.u32 %v5301_v18, %v4070_v19  ;;  %v3998_v28 = vld [vmem:[%s6289_s20 + $0x208] sm:$0xf0]  ;;  %v5470_v18 = vld [vmem:[%s6291_s29 + $0x3d4] sm:$0xf0] }
  0xe4   : > { %1463 = vmatpush.bf16.msra.mxu1 %v3825_v34  ;;  %v4166_v34 = vld [vmem:[%s6289_s20 + $0x358] sm:$0xf0]  ;;  %v4105_v39 = vor.u32 %v5309_v30, %v4102_v31  ;;  %v4062_v30 = vld [vmem:[%s6289_s20 + $0x288] sm:$0xf0]  ;;  %v4137_v31 = vor.u32 %v5317_v21, %v4134_v22  ;;  %v5368_v21 = vld [vmem:[%s6291_s29 + $0xa4] sm:$0xf0] }
  0xe5   : > { %1476 = vmatpush.bf16.msra.mxu2 %v3889_v38  ;;  %v4230_v38 = vld [vmem:[%s6289_s20 + $0x3d8] sm:$0xf0]  ;;  %v4516_v22 = vld [vmem:[%s6291_s29 + $0x210] sm:$0xf] }
  0xe6   : > { %1489 = vmatpush.bf16.msra.mxu3 %v3953_v42  ;;  %v4030_v42 = vld [vmem:[%s6289_s20 + $0x248] sm:$0xf0]  ;;  %v4398_v3 = vld [vmem:[%s6291_s29 + $0x138] sm:$0xf0] }
  0xe7   : > { %1451 = vmatpush.bf16.msra.mxu0 %v3753_v47  ;;  %v4158_v47 = vld [vmem:[%s6289_s20 + $0x348] sm:$0xf0]  ;;  %v4033_v48 = vor.u32 %v5291_v41, %v4030_v42  ;;  %v4001_v41 = vor.u32 %v5283_v24, %v3998_v28  ;;  %v5331_v42 = vld [vmem:[%s6289_s20 + $0x384] sm:$0xf] }
  0xe8   : > { %1464 = vmatpush.bf16.msra.mxu1 %v3817_v52  ;;  %v5289_v52 = vld [vmem:[%s6289_s20 + $0x234] sm:$0xf] }
  0xe9   : > { %1477 = vmatpush.bf16.msra.mxu2 %v3881_v56  ;;  %v4025_v59 = vor.u32 %v5289_v52, %v4022_v53  ;;  %v4588_v52 = vld [vmem:[%s6291_s29 + $0x2a0] sm:$0xf]  ;;  %v5434_v53 = vld [vmem:[%s6291_s29 + $0x2b4] sm:$0xf0] }
  0xea   : > { %1490 = vmatpush.bf16.msra.mxu3 %v3945_v60  ;;  %v5337_v60 = vld [vmem:[%s6289_s20 + $0x3b4] sm:$0xf] }
  0xeb   : > { %1452 = vmatpush.bf16.msra.mxu0 %v3745_v0  ;;  %v4014_v0 = vld [vmem:[%s6289_s20 + $0x228] sm:$0xf0] }
  0xec   : > { %1465 = vmatpush.bf16.msra.mxu1 %v3809_v4  ;;  %v4217_v4 = vor.u32 %v5337_v60, %v4214_v61  ;;  %v4017_v7 = vor.u32 %v5287_v63, %v4014_v0  ;;  %v4372_v60 = vld [vmem:[%s6291_s29 + $0xf0] sm:$0xf]  ;;  %v5380_v61 = vld [vmem:[%s6291_s29 + $0x104] sm:$0xf0]  ;;  %v4425_v0 = vor.u32 %v5389_v54, %v4422_v55 }
  0xed   : > { %1478 = vmatpush.bf16.msra.mxu2 %v3873_v11  ;;  %v4206_v11 = vld [vmem:[%s6289_s20 + $0x3a8] sm:$0xf0]  ;;  %v5428_v63 = vld [vmem:[%s6291_s29 + $0x284] sm:$0xf0]  ;;  %v4660_v54 = vld [vmem:[%s6291_s29 + $0x330] sm:$0xf] }
  0xee   : > { %1491 = vmatpush.bf16.msra.mxu3 %v3937_v17  ;;  %1453 = vmatmul.bf16.vlgmr.msra.gmra.mxu0 %v6407_v13  ;;  %v4169_v13 = vor.u32 %v5325_v33, %v4166_v34  ;;  %v5392_v33 = vld [vmem:[%s6291_s29 + $0x164] sm:$0xf0]  ;;  %v4612_v34 = vld [vmem:[%s6291_s29 + $0x2d0] sm:$0xf] }
  0xef   : > { %1497 = vmatpush.bf16.msrb.mxu0 %v4057_v5  ;;  %1466 = vmatmul.bf16.vlgmr.msra.gmra.mxu1 %v6409_v14  ;;  %v4161_v14 = vor.u32 %v5323_v46, %v4158_v47  ;;  %v5319_v5 = vld [vmem:[%s6289_s20 + $0x324] sm:$0xf]  ;;  %v5488_v46 = vld [vmem:[%s6291_s29 + $0x464] sm:$0xf0] }
  0xf0   : > { %1510 = vmatpush.bf16.msrb.mxu1 %v4121_v10  ;;  %1479 = vmatmul.bf16.vlgmr.msra.gmra.mxu2 %v6401_v8  ;;  %v4233_v8 = vor.u32 %v5341_v36, %v4230_v38  ;;  %v5335_v10 = vld [vmem:[%s6289_s20 + $0x3a4] sm:$0xf]  ;;  %v4145_v17 = vor.u32 %v5319_v5, %v4142_v6  ;;  %v5440_v36 = vld [vmem:[%s6291_s29 + $0x2e4] sm:$0xf0] }
  0xf1   : > { %1523 = vmatpush.bf16.msrb.mxu2 %v4185_v16  ;;  %1492 = vmatmul.bf16.vlgmr.msra.gmra.mxu3 %v6403_v9  ;;  %v4222_v9 = vld [vmem:[%s6289_s20 + $0x3c8] sm:$0xf0]  ;;  %v4006_v16 = vld [vmem:[%s6289_s20 + $0x218] sm:$0xf0]  ;;  %v5315_v38 = vld [vmem:[%s6289_s20 + $0x304] sm:$0xf]  ;;  %v4613_v47 = vor.u32 %v5440_v36, %v4612_v34 }
  0xf2   : > { %1536 = vmatpush.bf16.msrb.mxu3 %v4249_v20  ;;  %v4225_v56 = vor.u32 %v5339_v50, %v4222_v9  ;;  %v4209_v20 = vor.u32 %v5335_v10, %v4206_v11  ;;  %v4396_v50 = vld [vmem:[%s6291_s29 + $0x120] sm:$0xf]  ;;  %v5386_v9 = vld [vmem:[%s6291_s29 + $0x134] sm:$0xf0]  ;;  %v5476_v5 = vld [vmem:[%s6291_s29 + $0x404] sm:$0xf0] }
  0xf3   : > { %1498 = vmatpush.bf16.msrb.mxu0 %v4049_v23  ;;  %v4009_v23 = vor.u32 %v5285_v15, %v4006_v16  ;;  %v4540_v10 = vld [vmem:[%s6291_s29 + $0x240] sm:$0xf]  ;;  %v5422_v11 = vld [vmem:[%s6291_s29 + $0x254] sm:$0xf0]  ;;  %v5377_v15 = vld [vmem:[%s6291_s29 + $0xf4] sm:$0xf] }
  0xf4   : > { %1511 = vmatpush.bf16.msrb.mxu1 %v4113_v26  ;;  %v4198_v26 = vld [vmem:[%s6289_s20 + $0x398] sm:$0xf0]  ;;  %v4374_v16 = vld [vmem:[%s6291_s29 + $0x108] sm:$0xf0]  ;;  %v4541_v19 = vor.u32 %v5422_v11, %v4540_v10  ;;  %v4492_v34 = vld [vmem:[%s6291_s29 + $0x1e0] sm:$0xf] }
  0xf5   : > { %1524 = vmatpush.bf16.msrb.mxu2 %v4177_v29  ;;  %v5299_v29 = vld [vmem:[%s6289_s20 + $0x284] sm:$0xf]  ;;  %v4377_v24 = vor.u32 %v5377_v15, %v4374_v16  ;;  %v5452_v55 = vld [vmem:[%s6291_s29 + $0x344] sm:$0xf0]  ;;  %v1560_v10 = vld [vmem:[%s6283_s2 + $0x8] sm:$0xf] }
  0xf6   : > { %1537 = vmatpush.bf16.msrb.mxu3 %v4241_v32  ;;  %v4420_v32 = vld [vmem:[%s6291_s29 + $0x150] sm:$0xf]  ;;  %v4065_v43 = vor.u32 %v5299_v29, %v4062_v30  ;;  %v5464_v30 = vld [vmem:[%s6291_s29 + $0x3a4] sm:$0xf0] }
  0xf7   : > { %1499 = vmatpush.bf16.msrb.mxu0 %v4041_v35  ;;  %v4201_v35 = vor.u32 %v5333_v25, %v4198_v26  ;;  %v4421_v44 = vor.u32 %v5392_v33, %v4420_v32  ;;  %v5371_v26 = vld [vmem:[%s6291_s29 + $0xc4] sm:$0xf]  ;;  %v4708_v29 = vld [vmem:[%s6291_s29 + $0x390] sm:$0xf]  ;;  %v4300_v32 = vld [vmem:[%s6291_s29 + $0x60] sm:$0xf] }
  0xf8   : > { %1512 = vmatpush.bf16.msrb.mxu1 %v4105_v39  ;;  %v4126_v39 = vld [vmem:[%s6289_s20 + $0x308] sm:$0xf0]  ;;  %v5362_v33 = vld [vmem:[%s6291_s29 + $0x74] sm:$0xf0]  ;;  %v5393_v15 = vld [vmem:[%s6291_s29 + $0x16c] sm:$0xf0] }
  0xf9   : > { %1525 = vmatpush.bf16.msrb.mxu2 %v4169_v13  ;;  %v4190_v13 = vld [vmem:[%s6289_s20 + $0x388] sm:$0xf0] }
  0xfa   : > { %1538 = vmatpush.bf16.msrb.mxu3 %v4233_v8  ;;  %v4804_v8 = vld [vmem:[%s6291_s29 + $0x450] sm:$0xf] }
  0xfb   : > { %1500 = vmatpush.bf16.msrb.mxu0 %v4033_v48  ;;  %v4129_v48 = vor.u32 %v5315_v38, %v4126_v39  ;;  %v4709_v38 = vor.u32 %v5464_v30, %v4708_v29  ;;  %v5365_v39 = vld [vmem:[%s6291_s29 + $0x94] sm:$0xf] }
  0xfc   : > { %1513 = vmatpush.bf16.msrb.mxu1 %v4097_v51  ;;  %v4193_v51 = vor.u32 %v5331_v42, %v4190_v13  ;;  %v4301_v42 = vor.u32 %v5362_v33, %v4300_v32  ;;  %v4684_v13 = vld [vmem:[%s6291_s29 + $0x360] sm:$0xf] }
  0xfd   : > { %1526 = vmatpush.bf16.msrb.mxu2 %v4161_v14  ;;  %v4805_v14 = vor.u32 %v5488_v46, %v4804_v8  ;;  %v4276_v8 = vld [vmem:[%s6291_s29 + $0x30] sm:$0xf]  ;;  %v5356_v46 = vld [vmem:[%s6291_s29 + $0x44] sm:$0xf0]  ;;  %v5387_v32 = vld [vmem:[%s6291_s29 + $0x13c] sm:$0xf0] }
  0xfe   : > { %1539 = vmatpush.bf16.msrb.mxu3 %v4225_v56  ;;  %v4397_v56 = vor.u32 %v5386_v9, %v4396_v50  ;;  %v4252_v9 = vld [vmem:[%s6291_s29] sm:$0xf] }
  0xff   : > { %1501 = vmatpush.bf16.msrb.mxu0 %v4025_v59  ;;  %v4589_v59 = vor.u32 %v5434_v53, %v4588_v52  ;;  %v5359_v52 = vld [vmem:[%s6291_s29 + $0x64] sm:$0xf]  ;;  %v4302_v53 = vld [vmem:[%s6291_s29 + $0x78] sm:$0xf0] }
 0x100   : > { %1514 = vmatpush.bf16.msrb.mxu1 %v4089_v62  ;;  %v4564_v62 = vld [vmem:[%s6291_s29 + $0x270] sm:$0xf] }
 0x101   : > { %1527 = vmatpush.bf16.msrb.mxu2 %v4153_v1  ;;  %v4781_v1 = vor.u32 %v5482_v58, %v4780_v57  ;;  %v4565_v6 = vor.u32 %v5428_v63, %v4564_v62  ;;  %v5350_v58 = vld [vmem:[%s6291_s29 + $0x14] sm:$0xf0]  ;;  %v4614_v62 = vld [vmem:[%s6291_s29 + $0x2e8] sm:$0xf0]  ;;  %v5485_v63 = vld [vmem:[%s6291_s29 + $0x454] sm:$0xf] }
 0x102   : > { %1540 = vmatpush.bf16.msrb.mxu3 %v4217_v4  ;;  %v4373_v4 = vor.u32 %v5380_v61, %v4372_v60  ;;  %v5398_v60 = vld [vmem:[%s6291_s29 + $0x194] sm:$0xf0]  ;;  %v5437_v61 = vld [vmem:[%s6291_s29 + $0x2d4] sm:$0xf] }
 0x103   : > { %1502 = vmatpush.bf16.msrb.mxu0 %v4017_v7  ;;  %v5374_v7 = vld [vmem:[%s6291_s29 + $0xd4] sm:$0xf0] }
 0x104   : > { %1515 = vmatpush.bf16.msrb.mxu1 %v4081_v12 }
 0x105   : > { %1528 = vmatpush.bf16.msrb.mxu2 %v4145_v17 }
 0x106   : > { %1541 = vmatpush.bf16.msrb.mxu3 %v4209_v20  ;;  %v4324_v20 = vld [vmem:[%s6291_s29 + $0x90] sm:$0xf] }
 0x107   : > { %1503 = vmatpush.bf16.msrb.mxu0 %v4009_v23  ;;  %v5416_v23 = vld [vmem:[%s6291_s29 + $0x224] sm:$0xf0]  ;;  %v4325_v28 = vor.u32 %v5368_v21, %v4324_v20  ;;  %v4782_v20 = vld [vmem:[%s6291_s29 + $0x438] sm:$0xf0] }
 0x108   : > { %1516 = vmatpush.bf16.msrb.mxu1 %v4073_v27  ;;  %v4350_v27 = vld [vmem:[%s6291_s29 + $0xd8] sm:$0xf0] }
 0x109   : > { %1529 = vmatpush.bf16.msrb.mxu2 %v4137_v31  ;;  %v4517_v31 = vor.u32 %v5416_v23, %v4516_v22  ;;  %v4353_v36 = vor.u32 %v5371_v26, %v4350_v27  ;;  %v5347_v22 = vld [vmem:[%s6291_s29 + $0x4] sm:$0xf]  ;;  %v4254_v23 = vld [vmem:[%s6291_s29 + $0x18] sm:$0xf0]  ;;  %v4620_v27 = vld [vmem:[%s6291_s29 + $0x2d8] sm:$0xf] }
 0x10a   : > { %1542 = vmatpush.bf16.msrb.mxu3 %v4201_v35  ;;  %v5410_v35 = vld [vmem:[%s6291_s29 + $0x1f4] sm:$0xf0] }
 0x10b   : > { %1504 = vmatpush.bf16.msrb.mxu0 %v4001_v41  ;;  %v4326_v41 = vld [vmem:[%s6291_s29 + $0xa8] sm:$0xf0] }
 0x10c   : > { %1517 = vmatpush.bf16.msrb.mxu1 %v4065_v43  ;;  %v5458_v43 = vld [vmem:[%s6291_s29 + $0x374] sm:$0xf0]  ;;  %v4329_v50 = vor.u32 %v5365_v39, %v4326_v41  ;;  %v4758_v39 = vld [vmem:[%s6291_s29 + $0x408] sm:$0xf0] }
 0x10d   : > { %1530 = vmatpush.bf16.msrb.mxu2 %v4129_v48  ;;  %v5404_v48 = vld [vmem:[%s6291_s29 + $0x1c4] sm:$0xf0] }
 0x10e   : > { %1543 = vmatpush.bf16.msrb.mxu3 %v4193_v51  ;;  %1505 = vmatmul.bf16.vlgmr.msrb.gmra.mxu0 %v6467_v37  ;;  %v4756_v37 = vld [vmem:[%s6291_s29 + $0x3f0] sm:$0xf]  ;;  %v4685_v51 = vor.u32 %v5458_v43, %v4684_v13  ;;  %v4596_v43 = vld [vmem:[%s6291_s29 + $0x2a8] sm:$0xf] }
 0x10f   : > { %2436 = vmatpush.bf16.msra.mxu0 %v4421_v44  ;;  %1518 = vmatmul.bf16.vlgmr.msrb.gmra.mxu1 %v6479_v49  ;;  %v4348_v49 = vld [vmem:[%s6291_s29 + $0xc0] sm:$0xf]  ;;  %v4757_v12 = vor.u32 %v5476_v5, %v4756_v37  ;;  %v4493_v44 = vor.u32 %v5410_v35, %v4492_v34  ;;  %v4253_v5 = vor.u32 %v5350_v58, %v4252_v9  ;;  %v5425_v34 = vld [vmem:[%s6291_s29 + $0x274] sm:$0xf]  ;;  %v4566_v35 = vld [vmem:[%s6291_s29 + $0x288] sm:$0xf0] }
 0x110   : > { %2449 = vmatpush.bf16.msra.mxu1 %v4613_v47  ;;  %1531 = vmatmul.bf16.vlgmr.msrb.gmra.mxu2 %v6471_v40  ;;  %v4401_v40 = vor.u32 %v5383_v2, %v4398_v3  ;;  %v4349_v17 = vor.u32 %v5374_v7, %v4348_v49  ;;  %v4468_v47 = vld [vmem:[%s6291_s29 + $0x1b0] sm:$0xf]  ;;  %v4661_v2 = vor.u32 %v5452_v55, %v4660_v54  ;;  %v5353_v3 = vld [vmem:[%s6291_s29 + $0x34] sm:$0xf]  ;;  %v5446_v49 = vld [vmem:[%s6291_s29 + $0x314] sm:$0xf0] }
 0x111   : > { %2462 = vmatpush.bf16.msra.mxu2 %v4805_v14  ;;  %1544 = vmatmul.bf16.vlgmr.msrb.gmra.mxu3 %v6475_v45  ;;  %v4732_v45 = vld [vmem:[%s6291_s29 + $0x3c0] sm:$0xf]  ;;  %v4277_v14 = vor.u32 %v5356_v46, %v4276_v8  ;;  %v4469_v57 = vor.u32 %v5404_v48, %v4468_v47  ;;  %v4569_v8 = vor.u32 %v5425_v34, %v4566_v35  ;;  %v4380_v46 = vld [vmem:[%s6291_s29 + $0xf8] sm:$0xf]  ;;  %v5381_v47 = vld [vmem:[%s6291_s29 + $0x10c] sm:$0xf0] }
 0x112   : > { %2475 = vmatpush.bf16.msra.mxu3 %v4425_v0  ;;  %v4733_v25 = vor.u32 %v5470_v18, %v4732_v45  ;;  %v4305_v0 = vor.u32 %v5359_v52, %v4302_v53  ;;  %v4590_v45 = vld [vmem:[%s6291_s29 + $0x2b8] sm:$0xf0]  ;;  %v5479_v18 = vld [vmem:[%s6291_s29 + $0x424] sm:$0xf]  ;;  %v4572_v54 = vld [vmem:[%s6291_s29 + $0x278] sm:$0xf] }
 0x113   : > { %2437 = vmatpush.bf16.msra.mxu0 %v4397_v56  ;;  %v1559_v56 = vld [vmem:[%s6283_s2] sm:$0xff]  ;;  %v4785_v33 = vor.u32 %v5479_v18, %v4782_v20  ;;  %v4542_v9 = vld [vmem:[%s6291_s29 + $0x258] sm:$0xf0]  ;;  %v5429_v55 = vld [vmem:[%s6291_s29 + $0x28c] sm:$0xf0] }
 0x114   : > { %2450 = vmatpush.bf16.msra.mxu1 %v4589_v59  ;;  %v4444_v59 = vld [vmem:[%s6291_s29 + $0x180] sm:$0xf]  ;;  %v1707_v37 = vunpack.c.l.b16 %v1559_v56  ;;  %v1708_v7 = vunpack.c.h.b16 %v1559_v56  ;;  %v4734_v52 = vld [vmem:[%s6291_s29 + $0x3d8] sm:$0xf0]  ;;  %v5401_v20 = vld [vmem:[%s6291_s29 + $0x1b4] sm:$0xf] }
 0x115   : > { %2463 = vmatpush.bf16.msra.mxu2 %v4781_v1  ;;  %v4806_v1 = vld [vmem:[%s6291_s29 + $0x468] sm:$0xf0]  ;;  %v4445_v11 = vor.u32 %v5398_v60, %v4444_v59  ;;  %v5375_v58 = vld [vmem:[%s6291_s29 + $0xdc] sm:$0xf0]  ;;  %v5413_v60 = vld [vmem:[%s6291_s29 + $0x214] sm:$0xf] }
 0x116   : > { %2476 = vmatpush.bf16.msra.mxu3 %v4401_v40  ;;  %v4617_v40 = vor.u32 %v5437_v61, %v4614_v62  ;;  %v4809_v16 = vor.u32 %v5485_v63, %v4806_v1  ;;  %v6683_v29 = vpack.c.b16 %v1708_v7, %v1708_v7  ;;  %v4518_v61 = vld [vmem:[%s6291_s29 + $0x228] sm:$0xf0]  ;;  %v5461_v62 = vld [vmem:[%s6291_s29 + $0x394] sm:$0xf]  ;;  %v4494_v7 = vld [vmem:[%s6291_s29 + $0x1f8] sm:$0xf0] }
 0x117   : > { %2438 = vmatpush.bf16.msra.mxu0 %v4373_v4  ;;  %v4278_v4 = vld [vmem:[%s6291_s29 + $0x48] sm:$0xf0]  ;;  %v5363_v18 = vld [vmem:[%s6291_s29 + $0x7c] sm:$0xf0]  ;;  %v4284_v34 = vld [vmem:[%s6291_s29 + $0x38] sm:$0xf] }
 0x118   : > { %2451 = vmatpush.bf16.msra.mxu1 %v4565_v6  ;;  %v4636_v6 = vld [vmem:[%s6291_s29 + $0x300] sm:$0xf]  ;;  %v4710_v63 = vld [vmem:[%s6291_s29 + $0x3a8] sm:$0xf0]  ;;  %v5357_v35 = vld [vmem:[%s6291_s29 + $0x4c] sm:$0xf0] }
 0x119   : > { %2464 = vmatpush.bf16.msra.mxu2 %v4757_v12  ;;  %v4428_v12 = vld [vmem:[%s6291_s29 + $0x158] sm:$0xf]  ;;  %v4637_v21 = vor.u32 %v5446_v49, %v4636_v6  ;;  %v4713_v6 = vor.u32 %v5461_v62, %v4710_v63  ;;  %v5407_v49 = vld [vmem:[%s6291_s29 + $0x1e4] sm:$0xf]  ;;  %v5384_v62 = vld [vmem:[%s6291_s29 + $0x12c] sm:$0xf] }
 0x11a   : > { %2477 = vmatpush.bf16.msra.mxu3 %v4377_v24  ;;  %v6679_v24 = vpack.c.b16 %v1707_v37, %v1707_v37  ;;  %v4429_v26 = vor.u32 %v5393_v15, %v4428_v12  ;;  %v4332_v37 = vld [vmem:[%s6291_s29 + $0x98] sm:$0xf] }
 0x11b   : > { %2439 = vmatpush.bf16.msra.mxu0 %v4349_v17  ;;  %v5431_v17 = vld [vmem:[%s6291_s29 + $0x2a4] sm:$0xf]  ;;  %v4524_v15 = vld [vmem:[%s6291_s29 + $0x218] sm:$0xf] }
 0x11c   : > { %2452 = vmatpush.bf16.msra.mxu1 %v4541_v19  ;;  %v4281_v19 = vor.u32 %v5353_v3, %v4278_v4  ;;  %v4593_v30 = vor.u32 %v5431_v17, %v4590_v45  ;;  %v5423_v3 = vld [vmem:[%s6291_s29 + $0x25c] sm:$0xf0]  ;;  %v4521_v4 = vor.u32 %v5413_v60, %v4518_v61  ;;  %v4497_v17 = vor.u32 %v5407_v49, %v4494_v7  ;;  %v4308_v45 = vld [vmem:[%s6291_s29 + $0x68] sm:$0xf] }
 0x11d   : > { %2465 = vmatpush.bf16.msra.mxu2 %v4733_v25  ;;  %v1709_v25 = vunpack.c.l.b16 %v1560_v10  ;;  %v5455_v10 = vld [vmem:[%s6291_s29 + $0x364] sm:$0xf]  ;;  %v4788_v60 = vld [vmem:[%s6291_s29 + $0x428] sm:$0xf]  ;;  %v5483_v61 = vld [vmem:[%s6291_s29 + $0x43c] sm:$0xf0] }
 0x11e   : > { %2478 = vmatpush.bf16.msra.mxu3 %v4353_v36  ;;  %v4257_v36 = vor.u32 %v5347_v22, %v4254_v23  ;;  %v5449_v23 = vld [vmem:[%s6291_s29 + $0x334] sm:$0xf]  ;;  %v4789_v49 = vor.u32 %v5483_v61, %v4788_v60  ;;  %v5459_v60 = vld [vmem:[%s6291_s29 + $0x37c] sm:$0xf0]  ;;  %v5360_v61 = vld [vmem:[%s6291_s29 + $0x6c] sm:$0xf] }
 0x11f   : > { %2440 = vmatpush.bf16.msra.mxu0 %v4325_v28  ;;  %v5441_v28 = vld [vmem:[%s6291_s29 + $0x2ec] sm:$0xf0] }
 0x120   : > { %2453 = vmatpush.bf16.msra.mxu1 %v4517_v31  ;;  %v4404_v31 = vld [vmem:[%s6291_s29 + $0x128] sm:$0xf]  ;;  %v4621_v41 = vor.u32 %v5441_v28, %v4620_v27  ;;  %v4309_v28 = vor.u32 %v5363_v18, %v4308_v45  ;;  %v5378_v18 = vld [vmem:[%s6291_s29 + $0xfc] sm:$0xf] }
 0x121   : > { %2466 = vmatpush.bf16.msra.mxu2 %v4709_v38  ;;  %v5473_v38 = vld [vmem:[%s6291_s29 + $0x3f4] sm:$0xf]  ;;  %v4405_v13 = vor.u32 %v5387_v32, %v4404_v31  ;;  %v5411_v31 = vld [vmem:[%s6291_s29 + $0x1fc] sm:$0xf0] }
 0x122   : > { %2479 = vmatpush.bf16.msra.mxu3 %v4329_v50  ;;  %v4761_v48 = vor.u32 %v5473_v38, %v4758_v39  ;;  %v5419_v50 = vld [vmem:[%s6291_s29 + $0x244] sm:$0xf]  ;;  %v4446_v38 = vld [vmem:[%s6291_s29 + $0x198] sm:$0xf0] }
 0x123   : > { %2441 = vmatpush.bf16.msra.mxu0 %v4301_v42  ;;  %v6692_v42 = vpack.c.b16 %v1709_v25, %v1709_v25  ;;  %v4545_v56 = vor.u32 %v5419_v50, %v4542_v9  ;;  %v4662_v25 = vld [vmem:[%s6291_s29 + $0x348] sm:$0xf0]  ;;  %v5443_v39 = vld [vmem:[%s6291_s29 + $0x304] sm:$0xf]  ;;  %v4285_v50 = vor.u32 %v5357_v35, %v4284_v34  ;;  %v4476_v9 = vld [vmem:[%s6291_s29 + $0x1b8] sm:$0xf] }
 0x124   : > { %2454 = vmatpush.bf16.msra.mxu1 %v4493_v44  ;;  %v5435_v44 = vld [vmem:[%s6291_s29 + $0x2bc] sm:$0xf0]  ;;  %v4358_v34 = vld [vmem:[%s6291_s29 + $0xe0] sm:$0xf0] }
 0x125   : > { %2467 = vmatpush.bf16.msra.mxu2 %v4685_v51  ;;  %v5467_v51 = vld [vmem:[%s6291_s29 + $0x3c4] sm:$0xf]  ;;  %v4597_v53 = vor.u32 %v5435_v44, %v4596_v43  ;;  %v4812_v43 = vld [vmem:[%s6291_s29 + $0x458] sm:$0xf]  ;;  %v5489_v44 = vld [vmem:[%s6291_s29 + $0x46c] sm:$0xf0] }
 0x126   : > { %2480 = vmatpush.bf16.msra.mxu3 %v4305_v0  ;;  %v4737_v59 = vor.u32 %v5467_v51, %v4734_v52  ;;  %v4573_v0 = vor.u32 %v5429_v55, %v4572_v54  ;;  %v5405_v51 = vld [vmem:[%s6291_s29 + $0x1cc] sm:$0xf0]  ;;  %v4813_v55 = vor.u32 %v5489_v44, %v4812_v43  ;;  %v5420_v43 = vld [vmem:[%s6291_s29 + $0x24c] sm:$0xf]  ;;  %v4550_v44 = vld [vmem:[%s6291_s29 + $0x260] sm:$0xf0] }
 0x127   : > { %2442 = vmatpush.bf16.msra.mxu0 %v4277_v14  ;;  %v4381_v14 = vor.u32 %v5381_v47, %v4380_v46 }
 0x128   : > { %2455 = vmatpush.bf16.msra.mxu1 %v4469_v57  ;;  %v4356_v57 = vld [vmem:[%s6291_s29 + $0xc8] sm:$0xf] }
 0x129   : > { %2468 = vmatpush.bf16.msra.mxu2 %v4661_v2  ;;  %v4357_v1 = vor.u32 %v5375_v58, %v4356_v57  ;;  %v4548_v2 = vld [vmem:[%s6291_s29 + $0x248] sm:$0xf]  ;;  %v5438_v57 = vld [vmem:[%s6291_s29 + $0x2dc] sm:$0xf]  ;;  %v4622_v58 = vld [vmem:[%s6291_s29 + $0x2f0] sm:$0xf0] }
 0x12a   : > { %2481 = vmatpush.bf16.msra.mxu3 %v4281_v19 }
 0x12b   : > { %2443 = vmatpush.bf16.msra.mxu0 %v4253_v5  ;;  %v5369_v5 = vld [vmem:[%s6291_s29 + $0xac] sm:$0xf0] }
 0x12c   : > { %2456 = vmatpush.bf16.msra.mxu1 %v4445_v11  ;;  %v4686_v11 = vld [vmem:[%s6291_s29 + $0x378] sm:$0xf0]  ;;  %v4333_v12 = vor.u32 %v5369_v5, %v4332_v37  ;;  %v6727_v22 = vpop.f32.mrf.mxu1  ;;  %v4625_v37 = vor.u32 %v5438_v57, %v4622_v58 }
 0x12d   : > { %2469 = vmatpush.bf16.msra.mxu2 %v4637_v21  ;;  %v4689_v19 = vor.u32 %v5455_v10, %v4686_v11  ;;  %v4470_v21 = vld [vmem:[%s6291_s29 + $0x1c8] sm:$0xf0]  ;;  %v5486_v5 = vld [vmem:[%s6291_s29 + $0x45c] sm:$0xf]  ;;  %v4598_v11 = vld [vmem:[%s6291_s29 + $0x2c0] sm:$0xf0] }
 0x12e   : > { %2444 = vmatmul.bf16.vlgmr.msra.gmra.mxu0 %v6679_v24  ;;  %2482 = vmatpush.bf16.msra.mxu3 %v4257_v36  ;;  %v4473_v32 = vor.u32 %v5401_v20, %v4470_v21  ;;  %v4665_v36 = vor.u32 %v5449_v23, %v4662_v25  ;;  %v5432_v10 = vld [vmem:[%s6291_s29 + $0x2ac] sm:$0xf]  ;;  %v4790_v23 = vld [vmem:[%s6291_s29 + $0x440] sm:$0xf0] }
 0x12f   : > { %2488 = vmatpush.bf16.msrb.mxu0 %v4617_v40  ;;  %2457 = vmatmul.bf16.vlgmr.msra.gmra.mxu1 %v6683_v29  ;;  %v4549_v40 = vor.u32 %v5423_v3, %v4548_v2  ;;  %v4452_v3 = vld [vmem:[%s6291_s29 + $0x188] sm:$0xf]  ;;  %v4601_v21 = vor.u32 %v5432_v10, %v4598_v11  ;;  %v5453_v10 = vld [vmem:[%s6291_s29 + $0x34c] sm:$0xf0]  ;;  %v5354_v11 = vld [vmem:[%s6291_s29 + $0x3c] sm:$0xf] }
 0x130   : > { %2501 = vmatpush.bf16.msrb.mxu1 %v4809_v16  ;;  %2470 = vmatmul.bf16.vlgmr.msra.gmra.mxu2 %v6692_v42  ;;  %v5417_v16 = vld [vmem:[%s6291_s29 + $0x22c] sm:$0xf0] }
 0x131   : > { %2514 = vmatpush.bf16.msrb.mxu2 %v4429_v26  ;;  %2483 = vmatmul.bf16.vlgmr.msra.gmra.mxu3 %v6679_v24  ;;  %v1350_v26 = vpop.f32.mrf.mxu0  ;;  %v4525_v27 = vor.u32 %v5417_v16, %v4524_v15  ;;  %v4764_v15 = vld [vmem:[%s6291_s29 + $0x3f8] sm:$0xf]  ;;  %v5477_v16 = vld [vmem:[%s6291_s29 + $0x40c] sm:$0xf0] }
 0x132   : > { %2527 = vmatpush.bf16.msrb.mxu3 %v4621_v41  ;;  %v4638_v41 = vld [vmem:[%s6291_s29 + $0x318] sm:$0xf0]  ;;  %v4765_v25 = vor.u32 %v5477_v16, %v4764_v15  ;;  %v539_v16 = vld [vmem:[#allocation2] sm:$0xff] }
 0x133   : > { %2489 = vmatpush.bf16.msrb.mxu0 %v4593_v30  ;;  %v4500_v30 = vld [vmem:[%s6291_s29 + $0x1e8] sm:$0xf]  ;;  %v1376_v46 = vpop.f32.mrf.mxu2  ;;  %v4641_v54 = vor.u32 %v5443_v39, %v4638_v41  ;;  %v4766_v39 = vld [vmem:[%s6291_s29 + $0x410] sm:$0xf0] }
 0x134   : > { %2502 = vmatpush.bf16.msrb.mxu1 %v4785_v33  ;;  %v5395_v33 = vld [vmem:[%s6291_s29 + $0x184] sm:$0xf]  ;;  %v4501_v47 = vor.u32 %v5411_v31, %v4500_v30  ;;  %v4740_v31 = vld [vmem:[%s6291_s29 + $0x3c8] sm:$0xf] }
 0x135   : > { %2515 = vmatpush.bf16.msrb.mxu2 %v4405_v13  ;;  %v6739_v13 = vpop.f32.mrf.mxu3  ;;  %v4449_v52 = vor.u32 %v5395_v33, %v4446_v38  ;;  %v5372_v33 = vld [vmem:[%s6291_s29 + $0xcc] sm:$0xf]  ;;  %v5474_v38 = vld [vmem:[%s6291_s29 + $0x3fc] sm:$0xf] }
 0x136   : > { %2528 = vmatpush.bf16.msrb.mxu3 %v4597_v53  ;;  %v4260_v53 = vld [vmem:[%s6291_s29 + $0x8] sm:$0xf] }
 0x137   : > { %2490 = vmatpush.bf16.msrb.mxu0 %v4569_v8  ;;  %v5390_v8 = vld [vmem:[%s6291_s29 + $0x15c] sm:$0xf] }
 0x138   : > { %2503 = vmatpush.bf16.msrb.mxu1 %v4761_v48  ;;  %v4430_v48 = vld [vmem:[%s6291_s29 + $0x170] sm:$0xf0] }
 0x139   : > { %2516 = vmatpush.bf16.msrb.mxu2 %v4381_v14  ;;  %v5351_v14 = vld [vmem:[%s6291_s29 + $0x1c] sm:$0xf0]  ;;  %v1352_v63 = vpop.f32.mrf.mxu0 }
 0x13a   : > { %2529 = vmatpush.bf16.msrb.mxu3 %v4573_v0  ;;  %v4477_v0 = vor.u32 %v5405_v51, %v4476_v9  ;;  %v4261_v2 = vor.u32 %v5351_v14, %v4260_v53  ;;  %v4334_v9 = vld [vmem:[%s6291_s29 + $0xb0] sm:$0xf0]  ;;  %v4769_v51 = vor.u32 %v5474_v38, %v4766_v39  ;;  %v5468_v53 = vld [vmem:[%s6291_s29 + $0x3cc] sm:$0xf]  ;;  %v4742_v14 = vld [vmem:[%s6291_s29 + $0x3e0] sm:$0xf0] }
 0x13b   : > { %2491 = vmatpush.bf16.msrb.mxu0 %v4545_v56  ;;  %v1365_v56 = vpop.f32.mrf.mxu1  ;;  %v4745_v63 = vor.u32 %v5468_v53, %v4742_v14  ;;  %v5442_v38 = vld [vmem:[%s6291_s29 + $0x2f4] sm:$0xf0] }
 0x13c   : > { %2504 = vmatpush.bf16.msrb.mxu1 %v4737_v59  ;;  %v4433_v59 = vor.u32 %v5390_v8, %v4430_v48  ;;  %v5465_v48 = vld [vmem:[%s6291_s29 + $0x3ac] sm:$0xf0]  ;;  %v4526_v56 = vld [vmem:[%s6291_s29 + $0x230] sm:$0xf0]  ;;  %v5490_v53 = vld [vmem:[%s6291_s29 + $0x474] sm:$0xf0] }
 0x13d   : > { %2517 = vmatpush.bf16.msrb.mxu2 %v4357_v1  ;;  %v4406_v1 = vld [vmem:[%s6291_s29 + $0x140] sm:$0xf0]  ;;  %v1391_v7 = vpop.f32.mrf.mxu3 }
 0x13e   : > { %2530 = vmatpush.bf16.msrb.mxu3 %v4549_v40  ;;  %v1364_v40 = vadd.f32 %v6727_v22, %v1350_v26  ;;  %v5480_v22 = vld [vmem:[%s6291_s29 + $0x42c] sm:$0xf]  ;;  %v5426_v26 = vld [vmem:[%s6291_s29 + $0x27c] sm:$0xf]  ;;  %v4668_v7 = vld [vmem:[%s6291_s29 + $0x338] sm:$0xf] }
 0x13f   : > { %2492 = vmatpush.bf16.msrb.mxu0 %v4521_v4  ;;  %v5399_v4 = vld [vmem:[%s6291_s29 + $0x19c] sm:$0xf0]  ;;  %v4793_v35 = vor.u32 %v5480_v22, %v4790_v23  ;;  %v4644_v22 = vld [vmem:[%s6291_s29 + $0x308] sm:$0xf]  ;;  %v5402_v23 = vld [vmem:[%s6291_s29 + $0x1bc] sm:$0xf] }
 0x140   : > { %2505 = vmatpush.bf16.msrb.mxu1 %v4713_v6  ;;  %v4814_v6 = vld [vmem:[%s6291_s29 + $0x470] sm:$0xf0]  ;;  %v4453_v45 = vor.u32 %v5399_v4, %v4452_v3 }
 0x141   : > { %2518 = vmatpush.bf16.msrb.mxu2 %v4333_v12  ;;  %v4409_v12 = vor.u32 %v5384_v62, %v4406_v1  ;;  %v4817_v20 = vor.u32 %v5486_v5, %v4814_v6  ;;  %v4310_v62 = vld [vmem:[%s6291_s29 + $0x80] sm:$0xf0]  ;;  %v4718_v3 = vld [vmem:[%s6291_s29 + $0x3b0] sm:$0xf0]  ;;  %v5408_v5 = vld [vmem:[%s6291_s29 + $0x1ec] sm:$0xf] }
 0x142   : > { %2531 = vmatpush.bf16.msrb.mxu3 %v4525_v27  ;;  %v4574_v27 = vld [vmem:[%s6291_s29 + $0x290] sm:$0xf0]  ;;  %v4502_v6 = vld [vmem:[%s6291_s29 + $0x200] sm:$0xf0] }
 0x143   : > { %2493 = vmatpush.bf16.msrb.mxu0 %v4497_v17  ;;  %v1378_v17 = vpop.f32.mrf.mxu2 }
 0x144   : > { %2506 = vmatpush.bf16.msrb.mxu1 %v4689_v19  ;;  %v4382_v19 = vld [vmem:[%s6291_s29 + $0x110] sm:$0xf0]  ;;  %v4505_v17 = vor.u32 %v5408_v5, %v4502_v6  ;;  %v5382_v5 = vld [vmem:[%s6291_s29 + $0x114] sm:$0xf0] }
 0x145   : > { %2519 = vmatpush.bf16.msrb.mxu2 %v4309_v28  ;;  %v1377_v28 = vadd.f32 %v1376_v46, %v1364_v40  ;;  %v4385_v30 = vor.u32 %v5378_v18, %v4382_v19  ;;  %v4361_v46 = vor.u32 %v5372_v33, %v4358_v34  ;;  %v4286_v40 = vld [vmem:[%s6291_s29 + $0x50] sm:$0xf0]  ;;  %v4694_v18 = vld [vmem:[%s6291_s29 + $0x380] sm:$0xf0]  ;;  %v4436_v33 = vld [vmem:[%s6291_s29 + $0x160] sm:$0xf] }
 0x146   : > { %2532 = vmatpush.bf16.msrb.mxu3 %v4501_v47  ;;  %v4716_v47 = vld [vmem:[%s6291_s29 + $0x398] sm:$0xf] }
 0x147   : > { %2494 = vmatpush.bf16.msrb.mxu0 %v4473_v32  ;;  %v5471_v32 = vld [vmem:[%s6291_s29 + $0x3dc] sm:$0xf0]  ;;  %v1390_v8 = vadd.f32 %v6739_v13, %v1377_v28  ;;  %v5394_v34 = vld [vmem:[%s6291_s29 + $0x174] sm:$0xf0] }
 0x148   : > { %2507 = vmatpush.bf16.msrb.mxu1 %v4665_v36  ;;  %v4577_v36 = vor.u32 %v5426_v26, %v4574_v27  ;;  %v4741_v41 = vor.u32 %v5471_v32, %v4740_v31  ;;  %v4289_v27 = vor.u32 %v5354_v11, %v4286_v40  ;;  %v5447_v28 = vld [vmem:[%s6291_s29 + $0x31c] sm:$0xf0]  ;;  %v4262_v31 = vld [vmem:[%s6291_s29 + $0x20] sm:$0xf0]  ;;  %v5385_v40 = vld [vmem:[%s6291_s29 + $0x134] sm:$0xf] }
 0x149   : > { %2520 = vmatpush.bf16.msrb.mxu2 %v4285_v50  ;;  %v5366_v50 = vld [vmem:[%s6291_s29 + $0x9c] sm:$0xf] }
 0x14a   : > { %2533 = vmatpush.bf16.msrb.mxu3 %v4477_v0  ;;  %v4337_v58 = vor.u32 %v5366_v50, %v4334_v9  ;;  %v4437_v9 = vor.u32 %v5394_v34, %v4436_v33  ;;  %v5370_v33 = vld [vmem:[%s6291_s29 + $0xb4] sm:$0xf0]  ;;  %v4532_v34 = vld [vmem:[%s6291_s29 + $0x220] sm:$0xf] }
 0x14b   : > { %2495 = vmatpush.bf16.msrb.mxu0 %v4449_v52  ;;  %v4553_v52 = vor.u32 %v5420_v43, %v4550_v44  ;;  %v1402_v13 = vpop.f32.mrf.mxu0  ;;  %v5450_v43 = vld [vmem:[%s6291_s29 + $0x33c] sm:$0xf]  ;;  %v4670_v44 = vld [vmem:[%s6291_s29 + $0x350] sm:$0xf0] }
 0x14c   : > { %2508 = vmatpush.bf16.msrb.mxu1 %v4641_v54  ;;  %v4717_v54 = vor.u32 %v5465_v48, %v4716_v47  ;;  %v1403_v57 = vadd.f32 %v1402_v13, %v1390_v8  ;;  %v1415_v0 = vpop.f32.mrf.mxu1  ;;  %v5396_v47 = vld [vmem:[%s6291_s29 + $0x18c] sm:$0xf]  ;;  %v4454_v48 = vld [vmem:[%s6291_s29 + $0x1a0] sm:$0xf0]  ;;  %v5388_v13 = vld [vmem:[%s6291_s29 + $0x144] sm:$0xf0] }
 0x14d   : > { %2521 = vmatpush.bf16.msrb.mxu2 %v4261_v2  ;;  %v5462_v2 = vld [vmem:[%s6291_s29 + $0x39c] sm:$0xf] }
 0x14e   : > { %2496 = vmatmul.bf16.vlgmr.msrb.gmra.mxu0 %v6683_v29  ;;  %2534 = vmatpush.bf16.msrb.mxu3 %v4453_v45  ;;  %v1416_v4 = vadd.f32 %v1415_v0, %v1403_v57  ;;  %v5456_v45 = vld [vmem:[%s6291_s29 + $0x36c] sm:$0xf]  ;;  %v4457_v57 = vor.u32 %v5396_v47, %v4454_v48  ;;  %v4316_v48 = vld [vmem:[%s6291_s29 + $0x70] sm:$0xf] }
 0x14f   : > { %2540 = vmatpush.bf16.msra.mxu0 %v4813_v55  ;;  %2509 = vmatmul.bf16.vlgmr.msrb.gmra.mxu1 %v6692_v42  ;;  %v5414_v55 = vld [vmem:[%s6291_s29 + $0x21c] sm:$0xf] }
 0x150   : > { %2553 = vmatpush.bf16.msra.mxu1 %v4433_v59  ;;  %2522 = vmatmul.bf16.vlgmr.msrb.gmra.mxu2 %v6679_v24  ;;  %v4692_v59 = vld [vmem:[%s6291_s29 + $0x368] sm:$0xf]  ;;  %v4529_v1 = vor.u32 %v5414_v55, %v4526_v56  ;;  %v4673_v55 = vor.u32 %v5450_v43, %v4670_v44  ;;  %v4724_v44 = vld [vmem:[%s6291_s29 + $0x3a0] sm:$0xf] }
 0x151   : > { %2566 = vmatpush.bf16.msra.mxu2 %v4625_v37  ;;  %2535 = vmatmul.bf16.vlgmr.msrb.gmra.mxu3 %v6683_v29  ;;  %v4693_v37 = vor.u32 %v5459_v60, %v4692_v59  ;;  %v5436_v56 = vld [vmem:[%s6291_s29 + $0x2c4] sm:$0xf0]  ;;  %v4646_v59 = vld [vmem:[%s6291_s29 + $0x320] sm:$0xf0] }
 0x152   : > { %2579 = vmatpush.bf16.msra.mxu3 %v4817_v20 }
 0x153   : > { %2541 = vmatpush.bf16.msra.mxu0 %v4789_v49  ;;  %v4313_v49 = vor.u32 %v5360_v61, %v4310_v62  ;;  %v1428_v15 = vpop.f32.mrf.mxu2  ;;  %v1404_v26 = vpop.f32.mrf.mxu0  ;;  %v5391_v62 = vld [vmem:[%s6291_s29 + $0x164] sm:$0xf] }
 0x154   : > { %2554 = vmatpush.bf16.msra.mxu1 %v4409_v12  ;;  %v4721_v12 = vor.u32 %v5462_v2, %v4718_v3  ;;  %v1429_v19 = vadd.f32 %v1428_v15, %v1416_v4  ;;  %v1441_v20 = vpop.f32.mrf.mxu3  ;;  %v4796_v2 = vld [vmem:[%s6291_s29 + $0x430] sm:$0xf]  ;;  %v5484_v3 = vld [vmem:[%s6291_s29 + $0x444] sm:$0xf0]  ;;  %v4390_v26 = vld [vmem:[%s6291_s29 + $0x118] sm:$0xf0] }
 0x155   : > { %2567 = vmatpush.bf16.msra.mxu2 %v4601_v21  ;;  %v4669_v21 = vor.u32 %v5453_v10, %v4668_v7  ;;  %v5430_v7 = vld [vmem:[%s6291_s29 + $0x294] sm:$0xf0]  ;;  %v4797_v11 = vor.u32 %v5484_v3, %v4796_v2  ;;  %v5361_v2 = vld [vmem:[%s6291_s29 + $0x74] sm:$0xf]  ;;  %v4318_v3 = vld [vmem:[%s6291_s29 + $0x88] sm:$0xf0] }
 0x156   : > { %2580 = vmatpush.bf16.msra.mxu3 %v4793_v35  ;;  %v1442_v32 = vadd.f32 %v1441_v20, %v1429_v19  ;;  %v4628_v35 = vld [vmem:[%s6291_s29 + $0x2e0] sm:$0xf]  ;;  %v5376_v19 = vld [vmem:[%s6291_s29 + $0xe4] sm:$0xf0]  ;;  %v4556_v20 = vld [vmem:[%s6291_s29 + $0x250] sm:$0xf] }
 0x157   : > { %2542 = vmatpush.bf16.msra.mxu0 %v4765_v25  ;;  %v4478_v25 = vld [vmem:[%s6291_s29 + $0x1d0] sm:$0xf0]  ;;  %v4629_v14 = vor.u32 %v5442_v38, %v4628_v35  ;;  %v5418_v35 = vld [vmem:[%s6291_s29 + $0x234] sm:$0xf0] }
 0x158   : > { %2555 = vmatpush.bf16.msra.mxu1 %v4385_v30  ;;  %v5348_v30 = vld [vmem:[%s6291_s29 + $0xc] sm:$0xf]  ;;  %v4481_v39 = vor.u32 %v5402_v23, %v4478_v25  ;;  %v1549_v8 = vadd.f32 %v1442_v32, %v539_v16  ;;  %v4772_v16 = vld [vmem:[%s6291_s29 + $0x400] sm:$0xf]  ;;  %v5379_v25 = vld [vmem:[%s6291_s29 + $0x104] sm:$0xf]  ;;  %v4533_v47 = vor.u32 %v5418_v35, %v4532_v34 }
 0x159   : > { %2568 = vmatpush.bf16.msra.mxu2 %v4577_v36  ;;  %v4697_v36 = vor.u32 %v5456_v45, %v4694_v18  ;;  %v4265_v50 = vor.u32 %v5348_v30, %v4262_v31  ;;  %v4364_v18 = vld [vmem:[%s6291_s29 + $0xd0] sm:$0xf]  ;;  %v5472_v30 = vld [vmem:[%s6291_s29 + $0x3e4] sm:$0xf0]  ;;  %v4340_v32 = vld [vmem:[%s6291_s29 + $0xa0] sm:$0xf] }
 0x15a   : > { %2581 = vmatpush.bf16.msra.mxu3 %v4769_v51  ;;  %v4412_v51 = vld [vmem:[%s6291_s29 + $0x130] sm:$0xf]  ;;  %1551 = vst [vmem:[#allocation2] sm:$0xff] %v1549_v8  ;;  %v4341_v43 = vor.u32 %v5370_v33, %v4340_v32  ;;  %v5466_v8 = vld [vmem:[%s6291_s29 + $0x3b4] sm:$0xf0] }
 0x15b   : > { %2543 = vmatpush.bf16.msra.mxu0 %v4741_v41  ;;  %v1417_v41 = vpop.f32.mrf.mxu1  ;;  %v1430_v60 = vpop.f32.mrf.mxu2  ;;  %v4606_v32 = vld [vmem:[%s6291_s29 + $0x2c8] sm:$0xf0]  ;;  %v5481_v34 = vld [vmem:[%s6291_s29 + $0x434] sm:$0xf] }
 0x15c   : > { %2556 = vmatpush.bf16.msra.mxu1 %v4361_v46  ;;  %v4645_v46 = vor.u32 %v5447_v28, %v4644_v22  ;;  %v1443_v0 = vpop.f32.mrf.mxu3  ;;  %v4748_v28 = vld [vmem:[%s6291_s29 + $0x3d0] sm:$0xf]  ;;  %v4366_v41 = vld [vmem:[%s6291_s29 + $0xe8] sm:$0xf0]  ;;  %v5358_v60 = vld [vmem:[%s6291_s29 + $0x54] sm:$0xf0] }
 0x15d   : > { %2569 = vmatpush.bf16.msra.mxu2 %v4553_v52  ;;  %v4820_v52 = vld [vmem:[%s6291_s29 + $0x460] sm:$0xf]  ;;  %v4749_v38 = vor.u32 %v5472_v30, %v4748_v28  ;;  %v4798_v35 = vld [vmem:[%s6291_s29 + $0x448] sm:$0xf0] }
 0x15e   : > { %2582 = vmatpush.bf16.msra.mxu3 %v4745_v63  ;;  %v4821_v61 = vor.u32 %v5490_v53, %v4820_v52  ;;  %v4438_v63 = vld [vmem:[%s6291_s29 + $0x178] sm:$0xf0]  ;;  %v4725_v53 = vor.u32 %v5466_v8, %v4724_v44 }
 0x15f   : > { %2544 = vmatpush.bf16.msra.mxu0 %v4717_v54  ;;  %v4604_v54 = vld [vmem:[%s6291_s29 + $0x2b0] sm:$0xf]  ;;  %v4441_v10 = vor.u32 %v5391_v62, %v4438_v63  ;;  %v5406_v62 = vld [vmem:[%s6291_s29 + $0x1d4] sm:$0xf0] }
 0x160   : > { %2557 = vmatpush.bf16.msra.mxu1 %v4337_v58  ;;  %v5444_v58 = vld [vmem:[%s6291_s29 + $0x30c] sm:$0xf]  ;;  %v4605_v4 = vor.u32 %v5436_v56, %v4604_v54  ;;  %v4342_v54 = vld [vmem:[%s6291_s29 + $0xb8] sm:$0xf0]  ;;  %v4700_v56 = vld [vmem:[%s6291_s29 + $0x370] sm:$0xf] }
 0x161   : > { %2570 = vmatpush.bf16.msra.mxu2 %v4529_v1  ;;  %v4413_v1 = vor.u32 %v5388_v13, %v4412_v51  ;;  %v4649_v6 = vor.u32 %v5444_v58, %v4646_v59  ;;  %v5412_v51 = vld [vmem:[%s6291_s29 + $0x204] sm:$0xf0]  ;;  %v5367_v13 = vld [vmem:[%s6291_s29 + $0xa4] sm:$0xf]  ;;  %v4292_v59 = vld [vmem:[%s6291_s29 + $0x40] sm:$0xf] }
 0x162   : > { %2583 = vmatpush.bf16.msra.mxu3 %v4721_v12  ;;  %v4414_v12 = vld [vmem:[%s6291_s29 + $0x148] sm:$0xf0]  ;;  %v4345_v63 = vor.u32 %v5367_v13, %v4342_v54  ;;  %v5421_v13 = vld [vmem:[%s6291_s29 + $0x254] sm:$0xf] }
 0x163   : > { %2545 = vmatpush.bf16.msra.mxu0 %v4693_v37  ;;  %v4388_v37 = vld [vmem:[%s6291_s29 + $0x100] sm:$0xf]  ;;  %v4417_v22 = vor.u32 %v5385_v40, %v4414_v12  ;;  %v4460_v40 = vld [vmem:[%s6291_s29 + $0x190] sm:$0xf]  ;;  %v5400_v12 = vld [vmem:[%s6291_s29 + $0x1a4] sm:$0xf0] }
 0x164   : > { %2558 = vmatpush.bf16.msra.mxu1 %v4313_v49  ;;  %v4580_v49 = vld [vmem:[%s6291_s29 + $0x280] sm:$0xf]  ;;  %v4389_v15 = vor.u32 %v5382_v5, %v4388_v37  ;;  %v4268_v37 = vld [vmem:[%s6291_s29 + $0x10] sm:$0xf]  ;;  %v4558_v54 = vld [vmem:[%s6291_s29 + $0x268] sm:$0xf0] }
 0x165   : > { %2571 = vmatpush.bf16.msra.mxu2 %v4505_v17  ;;  %v5478_v17 = vld [vmem:[%s6291_s29 + $0x414] sm:$0xf0]  ;;  %v4581_v45 = vor.u32 %v5430_v7, %v4580_v49  ;;  %v4676_v5 = vld [vmem:[%s6291_s29 + $0x340] sm:$0xf] }
 0x166   : > { %2584 = vmatpush.bf16.msra.mxu3 %v4697_v36  ;;  %v4773_v23 = vor.u32 %v5478_v17, %v4772_v16  ;;  %v4393_v36 = vor.u32 %v5379_v25, %v4390_v26  ;;  %v4630_v16 = vld [vmem:[%s6291_s29 + $0x2f8] sm:$0xf0]  ;;  %v5487_v17 = vld [vmem:[%s6291_s29 + $0x464] sm:$0xf]  ;;  %v4652_v25 = vld [vmem:[%s6291_s29 + $0x310] sm:$0xf] }
 0x167   : > { %2546 = vmatpush.bf16.msra.mxu0 %v4669_v21  ;;  %v5424_v21 = vld [vmem:[%s6291_s29 + $0x264] sm:$0xf0] }
 0x168   : > { %2559 = vmatpush.bf16.msra.mxu1 %v4289_v27  ;;  %v4365_v27 = vor.u32 %v5376_v19, %v4364_v18  ;;  %v4557_v31 = vor.u32 %v5424_v21, %v4556_v20  ;;  %v4822_v18 = vld [vmem:[%s6291_s29 + $0x478] sm:$0xf0]  ;;  %v5355_v21 = vld [vmem:[%s6291_s29 + $0x44] sm:$0xf]  ;;  %v5448_v26 = vld [vmem:[%s6291_s29 + $0x324] sm:$0xf0] }
 0x169   : > { %2572 = vmatpush.bf16.msra.mxu2 %v4481_v39  ;;  %v5373_v39 = vld [vmem:[%s6291_s29 + $0xd4] sm:$0xf]  ;;  %v4825_v30 = vor.u32 %v5487_v17, %v4822_v18 }
 0x16a   : > { %2585 = vmatpush.bf16.msra.mxu3 %v4673_v55  ;;  %v4369_v52 = vor.u32 %v5373_v39, %v4366_v41  ;;  %v5349_v41 = vld [vmem:[%s6291_s29 + $0x14] sm:$0xf] }
 0x16b   : > { %2547 = vmatpush.bf16.msra.mxu0 %v4645_v46  ;;  %v6859_v46 = vpop.f32.mrf.mxu0 }
 0x16c   : > { %2560 = vmatpush.bf16.msra.mxu1 %v4265_v50  ;;  %v5364_v50 = vld [vmem:[%s6291_s29 + $0x84] sm:$0xf0] }
 0x16d   : > { %2573 = vmatpush.bf16.msra.mxu2 %v4457_v57  ;;  %v4317_v55 = vor.u32 %v5364_v50, %v4316_v48  ;;  %v5460_v57 = vld [vmem:[%s6291_s29 + $0x384] sm:$0xf0]  ;;  %v5427_v48 = vld [vmem:[%s6291_s29 + $0x284] sm:$0xf]  ;;  %v4582_v50 = vld [vmem:[%s6291_s29 + $0x298] sm:$0xf0] }
 0x16e   : > { %2548 = vmatmul.bf16.vlgmr.msra.gmra.mxu0 %v6692_v42  ;;  %2586 = vmatpush.bf16.msra.mxu3 %v4649_v6  ;;  %v4701_v0 = vor.u32 %v5460_v57, %v4700_v56  ;;  %v5454_v6 = vld [vmem:[%s6291_s29 + $0x354] sm:$0xf0]  ;;  %v4750_v56 = vld [vmem:[%s6291_s29 + $0x3e8] sm:$0xf0] }
 0x16f   : > { %2592 = vmatpush.bf16.msrb.mxu0 %v4437_v9  ;;  %2561 = vmatmul.bf16.vlgmr.msra.gmra.mxu1 %v6679_v24  ;;  %v4508_v9 = vld [vmem:[%s6291_s29 + $0x1f0] sm:$0xf]  ;;  %v4677_v19 = vor.u32 %v5454_v6, %v4676_v5  ;;  %v4510_v5 = vld [vmem:[%s6291_s29 + $0x208] sm:$0xf0]  ;;  %v5457_v6 = vld [vmem:[%s6291_s29 + $0x374] sm:$0xf] }
 0x170   : > { %2605 = vmatpush.bf16.msrb.mxu1 %v4629_v14  ;;  %2574 = vmatmul.bf16.vlgmr.msra.gmra.mxu2 %v6683_v29  ;;  %v6865_v14 = vpop.f32.mrf.mxu1  ;;  %v4509_v58 = vor.u32 %v5412_v51, %v4508_v9  ;;  %v5475_v9 = vld [vmem:[%s6291_s29 + $0x404] sm:$0xf]  ;;  %v4774_v51 = vld [vmem:[%s6291_s29 + $0x418] sm:$0xf0] }
 0x171   : > { %2618 = vmatpush.bf16.msrb.mxu2 %v4821_v61  ;;  %2587 = vmatmul.bf16.vlgmr.msra.gmra.mxu3 %v6692_v42  ;;  %v4484_v61 = vld [vmem:[%s6291_s29 + $0x1c0] sm:$0xf]  ;;  %v1468_v44 = vadd.f32 %v6865_v14, %v6859_v46  ;;  %v4585_v46 = vor.u32 %v5427_v48, %v4582_v50  ;;  %v4777_v14 = vor.u32 %v5475_v9, %v4774_v51 }
 0x172   : > { %2631 = vmatpush.bf16.msrb.mxu3 %v4441_v10  ;;  %v4485_v10 = vor.u32 %v5406_v62, %v4484_v61  ;;  %v4534_v61 = vld [vmem:[%s6291_s29 + $0x238] sm:$0xf0]  ;;  %v5463_v62 = vld [vmem:[%s6291_s29 + $0x3a4] sm:$0xf] }
 0x173   : > { %2593 = vmatpush.bf16.msrb.mxu0 %v4413_v1  ;;  %v1480_v1 = vpop.f32.mrf.mxu2  ;;  %v1456_v7 = vpop.f32.mrf.mxu0 }
 0x174   : > { %2606 = vmatpush.bf16.msrb.mxu1 %v4605_v4  ;;  %v4293_v4 = vor.u32 %v5358_v60, %v4292_v59  ;;  %v6880_v49 = vpop.f32.mrf.mxu3  ;;  %v5415_v60 = vld [vmem:[%s6291_s29 + $0x224] sm:$0xf] }
 0x175   : > { %2619 = vmatpush.bf16.msrb.mxu2 %v4797_v11  ;;  %v5352_v11 = vld [vmem:[%s6291_s29 + $0x24] sm:$0xf0] }
 0x176   : > { %2632 = vmatpush.bf16.msrb.mxu3 %v4417_v22  ;;  %v4294_v22 = vld [vmem:[%s6291_s29 + $0x58] sm:$0xf0] }
 0x177   : > { %2594 = vmatpush.bf16.msrb.mxu0 %v4389_v15  ;;  %v5439_v15 = vld [vmem:[%s6291_s29 + $0x2e4] sm:$0xf]  ;;  %v4297_v33 = vor.u32 %v5355_v21, %v4294_v22  ;;  %v540_v21 = vld [vmem:[#allocation2 + $0x8] sm:$0xff] }
 0x178   : > { %2607 = vmatpush.bf16.msrb.mxu1 %v4581_v45  ;;  %v4321_v45 = vor.u32 %v5361_v2, %v4318_v3  ;;  %v1469_v20 = vpop.f32.mrf.mxu1  ;;  %v4633_v28 = vor.u32 %v5439_v15, %v4630_v16  ;;  %v4537_v2 = vor.u32 %v5415_v60, %v4534_v61  ;;  %v4678_v15 = vld [vmem:[%s6291_s29 + $0x358] sm:$0xf0] }
 0x179   : > { %2620 = vmatpush.bf16.msrb.mxu2 %v4773_v23  ;;  %v4269_v23 = vor.u32 %v5352_v11, %v4268_v37  ;;  %v5409_v37 = vld [vmem:[%s6291_s29 + $0x1f4] sm:$0xf]  ;;  %v5403_v11 = vld [vmem:[%s6291_s29 + $0x1c4] sm:$0xf] }
 0x17a   : > { %2633 = vmatpush.bf16.msrb.mxu3 %v4393_v36  ;;  %v4653_v36 = vor.u32 %v5448_v26, %v4652_v25  ;;  %v4462_v25 = vld [vmem:[%s6291_s29 + $0x1a8] sm:$0xf0] }
 0x17b   : > { %2595 = vmatpush.bf16.msrb.mxu0 %v4365_v27  ;;  %v4461_v27 = vor.u32 %v5400_v12, %v4460_v40  ;;  %v4486_v40 = vld [vmem:[%s6291_s29 + $0x1d8] sm:$0xf0]  ;;  %v5451_v12 = vld [vmem:[%s6291_s29 + $0x344] sm:$0xf] }
 0x17c   : > { %2608 = vmatpush.bf16.msrb.mxu1 %v4557_v31  ;;  %v5433_v31 = vld [vmem:[%s6291_s29 + $0x2b4] sm:$0xf]  ;;  %v1495_v39 = vpop.f32.mrf.mxu3  ;;  %v4681_v22 = vor.u32 %v5451_v12, %v4678_v15 }
 0x17d   : > { %2621 = vmatpush.bf16.msrb.mxu2 %v4749_v38  ;;  %v1482_v38 = vpop.f32.mrf.mxu2  ;;  %v4609_v8 = vor.u32 %v5433_v31, %v4606_v32  ;;  %v1557_v15 = vld [vmem:[#allocation3 + $0x18] sm:$0xff] }
 0x17e   : > { %2634 = vmatpush.bf16.msrb.mxu3 %v4369_v52 }
 0x17f   : > { %2596 = vmatpush.bf16.msrb.mxu0 %v4341_v43  ;;  %v4270_v43 = vld [vmem:[%s6291_s29 + $0x28] sm:$0xf0] }
 0x180   : > { %2609 = vmatpush.bf16.msrb.mxu1 %v4533_v47  ;;  %v4801_v47 = vor.u32 %v5481_v34, %v4798_v35  ;;  %v4273_v52 = vor.u32 %v5349_v41, %v4270_v43  ;;  %v1553_v43 = vld [vmem:[#allocation3 + $0x28] sm:$0xff] }
 0x181   : > { %2622 = vmatpush.bf16.msrb.mxu2 %v4725_v53  ;;  %v1481_v53 = vadd.f32 %v1480_v1, %v1468_v44 }
 0x182   : > { %2635 = vmatpush.bf16.msrb.mxu3 %v4345_v63  ;;  %v4726_v63 = vld [vmem:[%s6291_s29 + $0x3b8] sm:$0xf0] }
 0x183   : > { %2597 = vmatpush.bf16.msrb.mxu0 %v4317_v55  ;;  %v5469_v55 = vld [vmem:[%s6291_s29 + $0x3d4] sm:$0xf]  ;;  %v1494_v57 = vadd.f32 %v6880_v49, %v1481_v53  ;;  %v4702_v49 = vld [vmem:[%s6291_s29 + $0x388] sm:$0xf0] }
 0x184   : > { %2610 = vmatpush.bf16.msrb.mxu1 %v4509_v58  ;;  %v4561_v58 = vor.u32 %v5421_v13, %v4558_v54  ;;  %v4753_v59 = vor.u32 %v5469_v55, %v4750_v56 }
 0x185   : > { %2623 = vmatpush.bf16.msrb.mxu2 %v4701_v0 }
 0x186   : > { %2636 = vmatpush.bf16.msrb.mxu3 %v4321_v45 }
 0x187   : > { %2598 = vmatpush.bf16.msrb.mxu0 %v4293_v4  ;;  %v4729_v4 = vor.u32 %v5463_v62, %v4726_v63 }
 0x188   : > { %2611 = vmatpush.bf16.msrb.mxu1 %v4485_v10  ;;  %v4705_v10 = vor.u32 %v5457_v6, %v4702_v49 }
 0x189   : > { %2624 = vmatpush.bf16.msrb.mxu2 %v4677_v19  ;;  %v4489_v19 = vor.u32 %v5403_v11, %v4486_v40 }
 0x18a   : > { %2637 = vmatpush.bf16.msrb.mxu3 %v4297_v33 }
 0x18b   : > { %2599 = vmatpush.bf16.msrb.mxu0 %v4269_v23  ;;  %v1506_v0 = vpop.f32.mrf.mxu0  ;;  %v5397_v23 = vld [vmem:[%s6291_s29 + $0x194] sm:$0xf] }
 0x18c   : > { %2612 = vmatpush.bf16.msrb.mxu1 %v4461_v27  ;;  %v1507_v1 = vadd.f32 %v1506_v0, %v1494_v57  ;;  %v1519_v3 = vpop.f32.mrf.mxu1  ;;  %v5445_v27 = vld [vmem:[%s6291_s29 + $0x314] sm:$0xf]  ;;  %v4465_v31 = vor.u32 %v5397_v23, %v4462_v25  ;;  %v1558_v25 = vld [vmem:[#allocation3 + $0x20] sm:$0xff] }
 0x18d   : > { %2625 = vmatpush.bf16.msrb.mxu2 %v4653_v36 }
 0x18e   : > { %2600 = vmatmul.bf16.vlgmr.msrb.gmra.mxu0 %v6679_v24  ;;  %2638 = vmatpush.bf16.msrb.mxu3 %v4273_v52  ;;  %v1520_v7 = vadd.f32 %v1519_v3, %v1507_v1 }
 0x18f   : > { %2644 = vmatpush.bf16.msra.mxu0 %v4633_v28  ;;  %2613 = vmatmul.bf16.vlgmr.msrb.gmra.mxu1 %v6683_v29  ;;  %v4654_v28 = vld [vmem:[%s6291_s29 + $0x328] sm:$0xf0] }
 0x190   : > { %2657 = vmatpush.bf16.msra.mxu1 %v4825_v30  ;;  %2626 = vmatmul.bf16.vlgmr.msrb.gmra.mxu2 %v6692_v42  ;;  %v4657_v32 = vor.u32 %v5445_v27, %v4654_v28 }
 0x191   : > { %2639 = vmatmul.bf16.vlgmr.msrb.gmra.mxu3 %v6679_v24  ;;  %v4513_v24 = vor.u32 %v5409_v37, %v4510_v5 }
 0x193   : > { %2645 = vmatpush.bf16.msra.mxu0 %v4609_v8  ;;  %v1532_v16 = vpop.f32.mrf.mxu2  ;;  %v1508_v17 = vpop.f32.mrf.mxu0 }
 0x194   : > { %2658 = vmatpush.bf16.msra.mxu1 %v4801_v47  ;;  %v1533_v45 = vadd.f32 %v1532_v16, %v1520_v7  ;;  %v1545_v18 = vpop.f32.mrf.mxu3  ;;  %v1521_v20 = vpop.f32.mrf.mxu1 }
 0x196   : > { %v1546_v26 = vadd.f32 %v1545_v18, %v1533_v45 }
 0x197   : > { %2646 = vmatpush.bf16.msra.mxu0 %v4585_v46  ;;  %v1554_v46 = vld [vmem:[#allocation3 + $0x10] sm:$0xff] }
 0x198   : > { %2659 = vmatpush.bf16.msra.mxu1 %v4777_v14  ;;  %v1550_v30 = vadd.f32 %v1546_v26, %v540_v21 }
 0x19a   : > { %1552 = vst [vmem:[#allocation2 + $0x8] sm:$0xff] %v1550_v30 }
 0x19b   : > { %2647 = vmatpush.bf16.msra.mxu0 %v4561_v58  ;;  %v1534_v33 = vpop.f32.mrf.mxu2 }
 0x19c   : > { %2660 = vmatpush.bf16.msra.mxu1 %v4753_v59  ;;  %v1547_v34 = vpop.f32.mrf.mxu3  ;;  %v1555_v59 = vld [vmem:[#allocation3 + $0x8] sm:$0xff] }
 0x19f   : > { %2648 = vmatpush.bf16.msra.mxu0 %v4537_v2 }
 0x1a0   : > { %2661 = vmatpush.bf16.msra.mxu1 %v4729_v4  ;;  %v1556_v4 = vld [vmem:[#allocation3] sm:$0xff] }
 0x1a3   : > { %2649 = vmatpush.bf16.msra.mxu0 %v4513_v24 }
 0x1a4   : > { %2662 = vmatpush.bf16.msra.mxu1 %v4705_v10 }
 0x1a7   : > { %2650 = vmatpush.bf16.msra.mxu0 %v4489_v19 }
 0x1a8   : > { %2663 = vmatpush.bf16.msra.mxu1 %v4681_v22 }
 0x1ab   : > { %2651 = vmatpush.bf16.msra.mxu0 %v4465_v31  ;;  %v2445_v35 = vpop.f32.mrf.mxu0 }
 0x1ac   : > { %2664 = vmatpush.bf16.msra.mxu1 %v4657_v32  ;;  %v2458_v36 = vpop.f32.mrf.mxu1 }
 0x1ad   : > { %v2459_v38 = vadd.f32 %v2458_v36, %v2445_v35 }
 0x1ae   : > { %2652 = vmatmul.bf16.vlgmr.msra.gmra.mxu0 %v6683_v29 }
 0x1af   : > { %2665 = vmatmul.bf16.vlgmr.msra.gmra.mxu1 %v6692_v42 }
 0x1b3   : > { %v2447_v39 = vpop.f32.mrf.mxu0  ;;  %v2471_v44 = vpop.f32.mrf.mxu2 }
 0x1b4   : > { %v2460_v41 = vpop.f32.mrf.mxu1  ;;  %v2472_v8 = vadd.f32 %v2471_v44, %v2459_v38  ;;  %v2484_v47 = vpop.f32.mrf.mxu3 }
 0x1b6   : > { %v2670_v48 = vadd.f32 %v2472_v8, %v1553_v43 }
 0x1b8   : > { %2676 = vst [vmem:[#allocation3 + $0x28] sm:$0xff] %v2670_v48 }
 0x1bb   : > { %v2473_v50 = vpop.f32.mrf.mxu2 }
 0x1bc   : > { %v2486_v9 = vpop.f32.mrf.mxu3 }
 0x1cb   : > { %v2497_v51 = vpop.f32.mrf.mxu0 }
 0x1cc   : > { %v2498_v52 = vadd.f32 %v2497_v51, %v2484_v47  ;;  %v2510_v53 = vpop.f32.mrf.mxu1 }
 0x1ce   : > { %v2511_v29 = vadd.f32 %v2510_v53, %v2498_v52 }
 0x1d0   : > { %v2671_v14 = vadd.f32 %v2511_v29, %v1554_v46 }
 0x1d2   : > { %2677 = vst [vmem:[#allocation3 + $0x10] sm:$0xff] %v2671_v14 }
 0x1d3   : > { %v2499_v42 = vpop.f32.mrf.mxu0  ;;  %v2523_v54 = vpop.f32.mrf.mxu2 }
 0x1d4   : > { %v2512_v13 = vpop.f32.mrf.mxu1  ;;  %v2536_v55 = vpop.f32.mrf.mxu3 }
 0x1d5   : > { %v2537_v58 = vadd.f32 %v2536_v55, %v2523_v54 }
 0x1db   : > { %v2525_v56 = vpop.f32.mrf.mxu2 }
 0x1dc   : > { %v2538_v57 = vpop.f32.mrf.mxu3 }
 0x1eb   : > { %v2549_v60 = vpop.f32.mrf.mxu0 }
 0x1ec   : > { %v2550_v61 = vadd.f32 %v2549_v60, %v2537_v58  ;;  %v2562_v62 = vpop.f32.mrf.mxu1 }
 0x1ee   : > { %v2672_v63 = vadd.f32 %v2550_v61, %v1555_v59 }
 0x1f0   : > { %2678 = vst [vmem:[#allocation3 + $0x8] sm:$0xff] %v2672_v63 }
 0x1f3   : > { %v2551_v0 = vpop.f32.mrf.mxu0  ;;  %v2575_v2 = vpop.f32.mrf.mxu2 }
 0x1f4   : > { %v2564_v1 = vpop.f32.mrf.mxu1  ;;  %v2576_v3 = vadd.f32 %v2575_v2, %v2562_v62  ;;  %v2588_v37 = vpop.f32.mrf.mxu3 }
 0x1f6   : > { %v2589_v5 = vadd.f32 %v2588_v37, %v2576_v3 }
 0x1f8   : > { %v2673_v6 = vadd.f32 %v2589_v5, %v1556_v4 }
 0x1fa   : > { %2679 = vst [vmem:[#allocation3] sm:$0xff] %v2673_v6 }
 0x1fb   : > { %v2577_v49 = vpop.f32.mrf.mxu2 }
 0x1fc   : > { %v2590_v7 = vpop.f32.mrf.mxu3 }
 0x20b   : > { %v2601_v24 = vpop.f32.mrf.mxu0 }
 0x20c   : > { %v2614_v10 = vpop.f32.mrf.mxu1 }
 0x20d   : > { %v2615_v11 = vadd.f32 %v2614_v10, %v2601_v24 }
 0x213   : > { %v2603_v40 = vpop.f32.mrf.mxu0  ;;  %v2627_v16 = vpop.f32.mrf.mxu2 }
 0x214   : > { %v2616_v12 = vpop.f32.mrf.mxu1  ;;  %v2628_v17 = vadd.f32 %v2627_v16, %v2615_v11  ;;  %v2640_v18 = vpop.f32.mrf.mxu3 }
 0x216   : > { %v2674_v45 = vadd.f32 %v2628_v17, %v1557_v15 }
 0x218   : > { %2680 = vst [vmem:[#allocation3 + $0x18] sm:$0xff] %v2674_v45 }
 0x21b   : > { %v2629_v19 = vpop.f32.mrf.mxu2 }
 0x21c   : > { %v2642_v20 = vpop.f32.mrf.mxu3 }
 0x22b   : > { %v2653_v21 = vpop.f32.mrf.mxu0 }
 0x22c   : > { %v2654_v22 = vadd.f32 %v2653_v21, %v2640_v18  ;;  %v2666_v23 = vpop.f32.mrf.mxu1 }
 0x22e   : > { %v2667_v26 = vadd.f32 %v2666_v23, %v2654_v22 }
 0x230   : > { %v2675_v27 = vadd.f32 %v2667_v26, %v1558_v25  ;;  %2685 = sbr.rel (%p4826_p1) target bundleno = 1080 (0x438), region = 96 }
 0x232   : > { %2681 = vst [vmem:[#allocation3 + $0x20] sm:$0xff] %v2675_v27 }
 0x233   : > { %v2655_v28 = vpop.f32.mrf.mxu0 }
 0x234   : > { %v2668_v30 = vpop.f32.mrf.mxu1 }
 0x235   : > { %v4885_v31 = vld [vmem:[#allocation13 + $0x70] sm:$0xf]  ;;  %v5506_v32 = vld [vmem:[#allocation13 + $0x74] sm:$0xf0]  ;;  %v4877_v8 = vld [vmem:[#allocation13 + $0x60] sm:$0xf] }
 0x236   : > { %v4949_v33 = vld [vmem:[#allocation13 + $0xf0] sm:$0xf]  ;;  %v4886_v34 = vor.u32 %v5506_v32, %v4885_v31  ;;  %v5522_v35 = vld [vmem:[#allocation13 + $0xf4] sm:$0xf0]  ;;  %v5504_v48 = vld [vmem:[#allocation13 + $0x64] sm:$0xf0] }
 0x237   : > { %v5013_v36 = vld [vmem:[#allocation13 + $0x170] sm:$0xf]  ;;  %v5538_v38 = vld [vmem:[#allocation13 + $0x174] sm:$0xf0]  ;;  %v4950_v39 = vor.u32 %v5522_v35, %v4949_v33  ;;  %v4941_v50 = vld [vmem:[#allocation13 + $0xe0] sm:$0xf]  ;;  %v4878_v51 = vor.u32 %v5504_v48, %v4877_v8 }
 0x238   : > { %v5014_v41 = vor.u32 %v5538_v38, %v5013_v36  ;;  %v5077_v43 = vld [vmem:[#allocation13 + $0x1f0] sm:$0xf]  ;;  %v5554_v44 = vld [vmem:[#allocation13 + $0x1f4] sm:$0xf0]  ;;  %3316 = vmatpush.bf16.msra.mxu0 %v4886_v34  ;;  %v5520_v9 = vld [vmem:[#allocation13 + $0xe4] sm:$0xf0] }
 0x239   : > { %v5078_v47 = vor.u32 %v5554_v44, %v5077_v43  ;;  %3329 = vmatpush.bf16.msra.mxu1 %v4950_v39  ;;  %v4942_v52 = vor.u32 %v5520_v9, %v4941_v50  ;;  %v5005_v53 = vld [vmem:[#allocation13 + $0x160] sm:$0xf]  ;;  %v5536_v46 = vld [vmem:[#allocation13 + $0x164] sm:$0xf0]  ;;  %v4869_v13 = vld [vmem:[#allocation13 + $0x50] sm:$0xf] }
 0x23a   : > { %3342 = vmatpush.bf16.msra.mxu2 %v5014_v41  ;;  %v5069_v29 = vld [vmem:[#allocation13 + $0x1e0] sm:$0xf]  ;;  %v5006_v14 = vor.u32 %v5536_v46, %v5005_v53  ;;  %v5552_v42 = vld [vmem:[#allocation13 + $0x1e4] sm:$0xf0]  ;;  %v5502_v54 = vld [vmem:[#allocation13 + $0x54] sm:$0xf0] }
 0x23b   : > { %3355 = vmatpush.bf16.msra.mxu3 %v5078_v47  ;;  %v5070_v55 = vor.u32 %v5552_v42, %v5069_v29  ;;  %v4933_v56 = vld [vmem:[#allocation13 + $0xd0] sm:$0xf]  ;;  %v5518_v57 = vld [vmem:[#allocation13 + $0xd4] sm:$0xf0]  ;;  %v4870_v59 = vor.u32 %v5502_v54, %v4869_v13  ;;  %v4861_v1 = vld [vmem:[#allocation13 + $0x40] sm:$0xf] }
 0x23c   : > { %v4997_v58 = vld [vmem:[#allocation13 + $0x150] sm:$0xf]  ;;  %3317 = vmatpush.bf16.msra.mxu0 %v4878_v51  ;;  %v5534_v60 = vld [vmem:[#allocation13 + $0x154] sm:$0xf0]  ;;  %v4934_v63 = vor.u32 %v5518_v57, %v4933_v56  ;;  %v5500_v2 = vld [vmem:[#allocation13 + $0x44] sm:$0xf0] }
 0x23d   : > { %v5061_v61 = vld [vmem:[#allocation13 + $0x1d0] sm:$0xf]  ;;  %v5550_v62 = vld [vmem:[#allocation13 + $0x1d4] sm:$0xf0]  ;;  %3330 = vmatpush.bf16.msra.mxu1 %v4942_v52  ;;  %v4998_v0 = vor.u32 %v5534_v60, %v4997_v58  ;;  %v4925_v3 = vld [vmem:[#allocation13 + $0xc0] sm:$0xf]  ;;  %v4862_v24 = vor.u32 %v5500_v2, %v4861_v1 }
 0x23e   : > { %3343 = vmatpush.bf16.msra.mxu2 %v5006_v14  ;;  %v5062_v4 = vor.u32 %v5550_v62, %v5061_v61  ;;  %v5516_v37 = vld [vmem:[#allocation13 + $0xc4] sm:$0xf0]  ;;  %v4989_v5 = vld [vmem:[#allocation13 + $0x140] sm:$0xf]  ;;  %v4853_v40 = vld [vmem:[#allocation13 + $0x30] sm:$0xf] }
 0x23f   : > { %3356 = vmatpush.bf16.msra.mxu3 %v5070_v55  ;;  %v5532_v6 = vld [vmem:[#allocation13 + $0x144] sm:$0xf0]  ;;  %v5053_v49 = vld [vmem:[#allocation13 + $0x1c0] sm:$0xf]  ;;  %v4926_v10 = vor.u32 %v5516_v37, %v4925_v3  ;;  %v5498_v12 = vld [vmem:[#allocation13 + $0x34] sm:$0xf0] }
 0x240   : > { %v5548_v7 = vld [vmem:[#allocation13 + $0x1c4] sm:$0xf0]  ;;  %3318 = vmatpush.bf16.msra.mxu0 %v4870_v59  ;;  %v4990_v11 = vor.u32 %v5532_v6, %v4989_v5  ;;  %v4917_v15 = vld [vmem:[#allocation13 + $0xb0] sm:$0xf]  ;;  %v5514_v17 = vld [vmem:[#allocation13 + $0xb4] sm:$0xf0]  ;;  %v4854_v21 = vor.u32 %v5498_v12, %v4853_v40 }
 0x241   : > { %3331 = vmatpush.bf16.msra.mxu1 %v4934_v63  ;;  %v5054_v16 = vor.u32 %v5548_v7, %v5053_v49  ;;  %v4981_v45 = vld [vmem:[#allocation13 + $0x130] sm:$0xf]  ;;  %v5530_v18 = vld [vmem:[#allocation13 + $0x134] sm:$0xf0]  ;;  %v4918_v22 = vor.u32 %v5514_v17, %v4917_v15  ;;  %v4845_v25 = vld [vmem:[#allocation13 + $0x20] sm:$0xf] }
 0x242   : > { %3344 = vmatpush.bf16.msra.mxu2 %v4998_v0  ;;  %v5045_v19 = vld [vmem:[#allocation13 + $0x1b0] sm:$0xf]  ;;  %v5546_v20 = vld [vmem:[#allocation13 + $0x1b4] sm:$0xf0]  ;;  %v4982_v23 = vor.u32 %v5530_v18, %v4981_v45  ;;  %v5496_v26 = vld [vmem:[#allocation13 + $0x24] sm:$0xf0] }
 0x243   : > { %3357 = vmatpush.bf16.msra.mxu3 %v5062_v4  ;;  %v4909_v27 = vld [vmem:[#allocation13 + $0xa0] sm:$0xf]  ;;  %v5046_v28 = vor.u32 %v5546_v20, %v5045_v19  ;;  %v5512_v30 = vld [vmem:[#allocation13 + $0xa4] sm:$0xf0]  ;;  %v4846_v35 = vor.u32 %v5496_v26, %v4845_v25  ;;  %v4837_v39 = vld [vmem:[#allocation13 + $0x10] sm:$0xf] }
 0x244   : > { %3319 = vmatpush.bf16.msra.mxu0 %v4862_v24  ;;  %v4973_v31 = vld [vmem:[#allocation13 + $0x120] sm:$0xf]  ;;  %v5528_v32 = vld [vmem:[#allocation13 + $0x124] sm:$0xf0]  ;;  %v4910_v36 = vor.u32 %v5512_v30, %v4909_v27  ;;  %v5494_v41 = vld [vmem:[#allocation13 + $0x14] sm:$0xf0] }
 0x245   : > { %3332 = vmatpush.bf16.msra.mxu1 %v4926_v10  ;;  %v5037_v33 = vld [vmem:[#allocation13 + $0x1a0] sm:$0xf]  ;;  %v5544_v34 = vld [vmem:[#allocation13 + $0x1a4] sm:$0xf0]  ;;  %v4974_v38 = vor.u32 %v5528_v32, %v4973_v31  ;;  %v4901_v43 = vld [vmem:[#allocation13 + $0x90] sm:$0xf]  ;;  %v4838_v51 = vor.u32 %v5494_v41, %v4837_v39 }
 0x246   : > { %3345 = vmatpush.bf16.msra.mxu2 %v4990_v11  ;;  %v5038_v44 = vor.u32 %v5544_v34, %v5037_v33  ;;  %v5510_v8 = vld [vmem:[#allocation13 + $0x94] sm:$0xf0]  ;;  %v4965_v47 = vld [vmem:[#allocation13 + $0x110] sm:$0xf]  ;;  %v4829_v52 = vld [vmem:[#allocation13] sm:$0xf] }
 0x247   : > { %3358 = vmatpush.bf16.msra.mxu3 %v5054_v16  ;;  %v5526_v48 = vld [vmem:[#allocation13 + $0x114] sm:$0xf0]  ;;  %v5029_v50 = vld [vmem:[#allocation13 + $0x190] sm:$0xf]  ;;  %v5492_v53 = vld [vmem:[#allocation13 + $0x4] sm:$0xf0]  ;;  %v4902_v46 = vor.u32 %v5510_v8, %v4901_v43 }
 0x248   : > { %3320 = vmatpush.bf16.msra.mxu0 %v4854_v21  ;;  %v5542_v9 = vld [vmem:[#allocation13 + $0x194] sm:$0xf0]  ;;  %v4966_v29 = vor.u32 %v5526_v48, %v4965_v47  ;;  %v4893_v14 = vld [vmem:[#allocation13 + $0x80] sm:$0xf]  ;;  %v5508_v42 = vld [vmem:[#allocation13 + $0x84] sm:$0xf0]  ;;  %v4830_v61 = vor.u32 %v5492_v53, %v4829_v52 }
 0x249   : > { %3333 = vmatpush.bf16.msra.mxu1 %v4918_v22  ;;  %v4957_v13 = vld [vmem:[#allocation13 + $0x100] sm:$0xf]  ;;  %v5030_v54 = vor.u32 %v5542_v9, %v5029_v50  ;;  %v5524_v55 = vld [vmem:[#allocation13 + $0x104] sm:$0xf0]  ;;  %v5141_v58 = vld [vmem:[#allocation13 + $0x270] sm:$0xf]  ;;  %v4894_v1 = vor.u32 %v5508_v42, %v4893_v14 }
 0x24a   : > { %3346 = vmatpush.bf16.msra.mxu2 %v4982_v23  ;;  %v5021_v56 = vld [vmem:[#allocation13 + $0x180] sm:$0xf]  ;;  %v5540_v57 = vld [vmem:[#allocation13 + $0x184] sm:$0xf0]  ;;  %v5570_v59 = vld [vmem:[#allocation13 + $0x274] sm:$0xf0]  ;;  %v4958_v2 = vor.u32 %v5524_v55, %v4957_v13 }
 0x24b   : > { %3359 = vmatpush.bf16.msra.mxu3 %v5046_v28  ;;  %v5205_v60 = vld [vmem:[#allocation13 + $0x2f0] sm:$0xf]  ;;  %v5586_v62 = vld [vmem:[#allocation13 + $0x2f4] sm:$0xf0]  ;;  %v5505_v63 = vld [vmem:[#allocation13 + $0x74] sm:$0xf]  ;;  %v5022_v37 = vor.u32 %v5540_v57, %v5021_v56  ;;  %v5142_v5 = vor.u32 %v5570_v59, %v5141_v58 }
 0x24c   : > { %3321 = vmatpush.bf16.msra.mxu0 %v4846_v35  ;;  %v4887_v0 = vld [vmem:[#allocation13 + $0x78] sm:$0xf0]  ;;  %v5521_v3 = vld [vmem:[#allocation13 + $0xf4] sm:$0xf]  ;;  %v5206_v6 = vor.u32 %v5586_v62, %v5205_v60  ;;  %v5133_v7 = vld [vmem:[#allocation13 + $0x260] sm:$0xf] }
 0x24d   : > { %3334 = vmatpush.bf16.msra.mxu1 %v4910_v36  ;;  %v4951_v4 = vld [vmem:[#allocation13 + $0xf8] sm:$0xf0]  ;;  %v4890_v49 = vor.u32 %v5505_v63, %v4887_v0  ;;  %v5568_v24 = vld [vmem:[#allocation13 + $0x264] sm:$0xf0]  ;;  %v5197_v10 = vld [vmem:[#allocation13 + $0x2e0] sm:$0xf] }
 0x24e   : > { %3347 = vmatpush.bf16.msra.mxu2 %v4974_v38  ;;  %v4954_v11 = vor.u32 %v5521_v3, %v4951_v4  ;;  %v5584_v40 = vld [vmem:[#allocation13 + $0x2e4] sm:$0xf0]  ;;  %v5503_v12 = vld [vmem:[#allocation13 + $0x64] sm:$0xf]  ;;  %v4879_v15 = vld [vmem:[#allocation13 + $0x68] sm:$0xf0]  ;;  %v5134_v45 = vor.u32 %v5568_v24, %v5133_v7 }
 0x24f   : > { %3360 = vmatpush.bf16.msra.mxu3 %v5038_v44  ;;  %v5519_v16 = vld [vmem:[#allocation13 + $0xe4] sm:$0xf]  ;;  %v4943_v17 = vld [vmem:[#allocation13 + $0xe8] sm:$0xf0]  ;;  %v5125_v18 = vld [vmem:[#allocation13 + $0x250] sm:$0xf]  ;;  %v5198_v21 = vor.u32 %v5584_v40, %v5197_v10  ;;  %v4882_v22 = vor.u32 %v5503_v12, %v4879_v15 }
 0x250   : > { %3322 = vmatpush.bf16.msra.mxu0 %v4838_v51  ;;  %v5566_v19 = vld [vmem:[#allocation13 + $0x254] sm:$0xf0]  ;;  %v5189_v20 = vld [vmem:[#allocation13 + $0x2d0] sm:$0xf]  ;;  %v5501_v25 = vld [vmem:[#allocation13 + $0x54] sm:$0xf]  ;;  %v4946_v27 = vor.u32 %v5519_v16, %v4943_v17 }
 0x251   : > { %3335 = vmatpush.bf16.msra.mxu1 %v4902_v46  ;;  %v5582_v23 = vld [vmem:[#allocation13 + $0x2d4] sm:$0xf0]  ;;  %v4871_v26 = vld [vmem:[#allocation13 + $0x58] sm:$0xf0]  ;;  %v5517_v28 = vld [vmem:[#allocation13 + $0xd4] sm:$0xf]  ;;  %v5126_v35 = vor.u32 %v5566_v19, %v5125_v18 }
 0x252   : > { %3348 = vmatpush.bf16.msra.mxu2 %v4966_v29  ;;  %v2698_v30 = vld [vmem:[#allocation3 + $0x8] sm:$0xff]  ;;  %v4935_v32 = vld [vmem:[#allocation13 + $0xd8] sm:$0xf0]  ;;  %v5190_v36 = vor.u32 %v5582_v23, %v5189_v20  ;;  %v5564_v38 = vld [vmem:[#allocation13 + $0x244] sm:$0xf0]  ;;  %v4874_v43 = vor.u32 %v5501_v25, %v4871_v26  ;;  %vm3549_vm6 = vcmask 64512  }
 0x253   : > { %3361 = vmatpush.bf16.msra.mxu3 %v5030_v54  ;;  %v6933_v31 = vld [vmem:[#allocation16] sm:$0x3f]  ;;  %v5580_v44 = vld [vmem:[#allocation13 + $0x2c4] sm:$0xf0]  ;;  %v2699_v48 = vld [vmem:[#allocation3] sm:$0xff]  ;;  %v4938_v51 = vor.u32 %v5517_v28, %v4935_v32 }
 0x254   : > { %3323 = vmatpush.bf16.msra.mxu0 %v4830_v61  ;;  %v5117_v33 = vld [vmem:[#allocation13 + $0x240] sm:$0xf]  ;;  %v2706_v34 = vperm.slane %v6933_v31, 2  ;;  %v2704_v47 = vperm.slane %v6933_v31, 0  ;;  %v2707_v50 = vperm.slane %v6933_v31, 3  ;;  %v2697_v9 = vld [vmem:[#allocation3 + $0x10] sm:$0xff] }
 0x255   : > { %3336 = vmatpush.bf16.msra.mxu1 %v4894_v1  ;;  %v5181_v39 = vld [vmem:[#allocation13 + $0x2c0] sm:$0xf]  ;;  %v5499_v52 = vld [vmem:[#allocation13 + $0x44] sm:$0xf]  ;;  %v4863_v53 = vld [vmem:[#allocation13 + $0x48] sm:$0xf0]  ;;  %v5118_v54 = vor.u32 %v5564_v38, %v5117_v33 }
 0x256   : > { %3349 = vmatpush.bf16.msra.mxu2 %v4958_v2  ;;  %v2696_v41 = vld [vmem:[#allocation3 + $0x28] sm:$0xff]  ;;  %v2718_v8 = vadd.f32 %v2706_v34, %v2698_v30  ;;  %v2705_v46 = vperm.slane %v6933_v31, 1  ;;  %v4927_v14 = vld [vmem:[#allocation13 + $0xc8] sm:$0xf0]  ;;  %v2719_v13 = vadd.f32 %v2707_v50, %v2699_v48  ;;  %v5182_v56 = vor.u32 %v5580_v44, %v5181_v39  ;;  %v5109_v58 = vld [vmem:[#allocation13 + $0x230] sm:$0xf] }
 0x257   : > { %3362 = vmatpush.bf16.msra.mxu3 %v5022_v37  ;;  %v5515_v29 = vld [vmem:[#allocation13 + $0xc4] sm:$0xf]  ;;  %v2716_v42 = vadd.f32 %v2704_v47, %v2696_v41  ;;  %v4866_v57 = vor.u32 %v5499_v52, %v4863_v53  ;;  %v5562_v59 = vld [vmem:[#allocation13 + $0x234] sm:$0xf0]  ;;  %v5173_v60 = vld [vmem:[#allocation13 + $0x2b0] sm:$0xf] }
 0x258   : > { %3368 = vmatpush.bf16.msrb.mxu0 %v5142_v5  ;;  %5700 = vtanh.f32 %v2718_v8  ;;  %v2717_v55 = vadd.f32 %v2705_v46, %v2697_v9  ;;  %v4930_v61 = vor.u32 %v5515_v29, %v4927_v14  ;;  %v5578_v62 = vld [vmem:[#allocation13 + $0x2b4] sm:$0xf0]  ;;  %v5497_v63 = vld [vmem:[#allocation13 + $0x34] sm:$0xf]  ;;  %v4855_v0 = vld [vmem:[#allocation13 + $0x38] sm:$0xf0]  ;;  %v5110_v3 = vor.u32 %v5562_v59, %v5109_v58 }
 0x259   : > { %3381 = vmatpush.bf16.msrb.mxu1 %v5206_v6  ;;  %5702 = vtanh.f32 %v2716_v42  ;;  %v5513_v1 = vld [vmem:[#allocation13 + $0xb4] sm:$0xf]  ;;  %v4919_v2 = vld [vmem:[#allocation13 + $0xb8] sm:$0xf0]  ;;  %v5174_v37 = vor.u32 %v5578_v62, %v5173_v60  ;;  %v4858_v5 = vor.u32 %v5497_v63, %v4855_v0  ;;  %v5101_v6 = vld [vmem:[#allocation13 + $0x220] sm:$0xf] }
 0x25a   : > { %3394 = vmatpush.bf16.msrb.mxu2 %v4890_v49  ;;  %5704 = vtanh.f32 %v2719_v13  ;;  %v5560_v49 = vld [vmem:[#allocation13 + $0x224] sm:$0xf0]  ;;  %v5165_v7 = vld [vmem:[#allocation13 + $0x2a0] sm:$0xf]  ;;  %v4922_v24 = vor.u32 %v5513_v1, %v4919_v2  ;;  %v5495_v40 = vld [vmem:[#allocation13 + $0x24] sm:$0xf] }
 0x25b   : > { %3407 = vmatpush.bf16.msrb.mxu3 %v4954_v11  ;;  %5706 = vtanh.f32 %v2717_v55  ;;  %v5576_v11 = vld [vmem:[#allocation13 + $0x2a4] sm:$0xf0]  ;;  %v4847_v12 = vld [vmem:[#allocation13 + $0x28] sm:$0xf0]  ;;  %v5511_v16 = vld [vmem:[#allocation13 + $0xa4] sm:$0xf]  ;;  %v5102_v18 = vor.u32 %v5560_v49, %v5101_v6 }
 0x25c   : > { %3369 = vmatpush.bf16.msrb.mxu0 %v5134_v45  ;;  %v4911_v17 = vld [vmem:[#allocation13 + $0xa8] sm:$0xf0]  ;;  %v5093_v20 = vld [vmem:[#allocation13 + $0x210] sm:$0xf]  ;;  %v4850_v23 = vor.u32 %v5495_v40, %v4847_v12  ;;  %v5558_v26 = vld [vmem:[#allocation13 + $0x214] sm:$0xf0] }
 0x25d   : > { %3382 = vmatpush.bf16.msrb.mxu1 %v5198_v21  ;;  %v2700_v28 = vld [vmem:[#allocation3 + $0x18] sm:$0xff]  ;;  %v4914_v30 = vor.u32 %v5511_v16, %v4911_v17  ;;  %v5574_v33 = vld [vmem:[#allocation13 + $0x294] sm:$0xf0]  ;;  %v4903_v38 = vld [vmem:[#allocation13 + $0x98] sm:$0xf0]  ;;  %v2708_v39 = vperm.slane %v6933_v31, 4 }
 0x25e   : > { %3395 = vmatpush.bf16.msrb.mxu2 %v4882_v22  ;;  %v5701_v4 = vpop.eup %5700  ;;  %v5166_v22 = vor.u32 %v5576_v11, %v5165_v7  ;;  %v5493_v34 = vld [vmem:[#allocation13 + $0x14] sm:$0xf]  ;;  %v2701_v41 = vld [vmem:[#allocation3 + $0x20] sm:$0xff]  ;;  %v5085_v44 = vld [vmem:[#allocation13 + $0x200] sm:$0xf]  ;;  %v2709_v47 = vperm.slane %v6933_v31, 5 }
 0x25f   : > { %3408 = vmatpush.bf16.msrb.mxu3 %v4946_v27  ;;  %v6939_v10 = vpack.c.bf16 %v5701_v4, %v5701_v4  ;;  %v5703_v15 = vpop.eup %5702  ;;  %v5157_v27 = vld [vmem:[#allocation13 + $0x290] sm:$0xf]  ;;  %v5556_v8 = vld [vmem:[#allocation13 + $0x204] sm:$0xf0]  ;;  %v5149_v9 = vld [vmem:[#allocation13 + $0x280] sm:$0xf]  ;;  %v2720_v53 = vadd.f32 %v2708_v39, %v2700_v28 }
 0x260   : > { %3370 = vmatpush.bf16.msrb.mxu0 %v5126_v35  ;;  %v5705_v45 = vpop.eup %5704  ;;  %v6942_v19 = vpack.c.bf16 %v5703_v15, %v5703_v15  ;;  %v4839_v35 = vld [vmem:[#allocation13 + $0x18] sm:$0xf0]  ;;  %v5158_v48 = vor.u32 %v5574_v33, %v5157_v27  ;;  %v5491_v52 = vld [vmem:[#allocation13 + $0x4] sm:$0xf]  ;;  %v4831_v29 = vld [vmem:[#allocation13 + $0x8] sm:$0xf0]  ;;  %v2721_v13 = vadd.f32 %v2709_v47, %v2701_v41  ;;  %v5086_v31 = vor.u32 %v5556_v8, %v5085_v44 }
 0x261   : > { %3383 = vmatpush.bf16.msrb.mxu1 %v5190_v36  ;;  %3350 = vmatmul.bf16.vlgmr.msra.gmra.mxu2 %v6939_v10  ;;  %v5707_v21 = vpop.eup %5706  ;;  %v6944_v25 = vpack.c.bf16 %v5705_v45, %v5705_v45  ;;  %v5509_v36 = vld [vmem:[#allocation13 + $0x94] sm:$0xf]  ;;  %v4842_v50 = vor.u32 %v5493_v34, %v4839_v35  ;;  %v5507_v14 = vld [vmem:[#allocation13 + $0x84] sm:$0xf]  ;;  %v4895_v42 = vld [vmem:[#allocation13 + $0x88] sm:$0xf0]  ;;  %5708 = vtanh.f32 %v2720_v53 }
 0x262   : > { %3396 = vmatpush.bf16.msrb.mxu2 %v4874_v43  ;;  %3324 = vmatmul.bf16.vlgmr.msra.gmra.mxu0 %v6942_v19  ;;  %v6947_v32 = vpack.c.bf16 %v5707_v21, %v5707_v21  ;;  %v5094_v43 = vor.u32 %v5558_v26, %v5093_v20  ;;  %v4906_v46 = vor.u32 %v5509_v36, %v4903_v38  ;;  %v5015_v55 = vld [vmem:[#allocation13 + $0x178] sm:$0xf0]  ;;  %v5569_v58 = vld [vmem:[#allocation13 + $0x274] sm:$0xf]  ;;  %5710 = vtanh.f32 %v2721_v13  ;;  %v5535_v4 = vld [vmem:[#allocation13 + $0x164] sm:$0xf] }
 0x263   : > { %3409 = vmatpush.bf16.msrb.mxu3 %v4938_v51  ;;  %v5572_v51 = vld [vmem:[#allocation13 + $0x284] sm:$0xf0]  ;;  %v5143_v59 = vld [vmem:[#allocation13 + $0x278] sm:$0xf0]  ;;  %v5585_v62 = vld [vmem:[#allocation13 + $0x2f4] sm:$0xf]  ;;  %v4898_v0 = vor.u32 %v5507_v14, %v4895_v42 }
 0x264   : > { %3371 = vmatpush.bf16.msrb.mxu0 %v5118_v54  ;;  %3363 = vmatmul.bf16.vlgmr.msra.gmra.mxu3 %v6944_v25  ;;  %v5537_v54 = vld [vmem:[#allocation13 + $0x174] sm:$0xf]  ;;  %v5150_v60 = vor.u32 %v5572_v51, %v5149_v9  ;;  %v5207_v63 = vld [vmem:[#allocation13 + $0x2f8] sm:$0xf0]  ;;  %v5071_v49 = vld [vmem:[#allocation13 + $0x1e8] sm:$0xf0] }
 0x265   : > { %3384 = vmatpush.bf16.msrb.mxu1 %v5182_v56  ;;  %v5553_v56 = vld [vmem:[#allocation13 + $0x1f4] sm:$0xf]  ;;  %v5018_v1 = vor.u32 %v5537_v54, %v5015_v55  ;;  %v5210_v6 = vor.u32 %v5585_v62, %v5207_v63  ;;  %v5567_v7 = vld [vmem:[#allocation13 + $0x264] sm:$0xf]  ;;  %v5199_v12 = vld [vmem:[#allocation13 + $0x2e8] sm:$0xf0] }
 0x266   : > { %3397 = vmatpush.bf16.msrb.mxu2 %v4866_v57  ;;  %3337 = vmatmul.bf16.vlgmr.msra.gmra.mxu1 %v6947_v32  ;;  %v5079_v57 = vld [vmem:[#allocation13 + $0x1f8] sm:$0xf0]  ;;  %v5583_v40 = vld [vmem:[#allocation13 + $0x2e4] sm:$0xf]  ;;  %v5549_v21 = vld [vmem:[#allocation13 + $0x1d4] sm:$0xf] }
 0x267   : > { %3410 = vmatpush.bf16.msrb.mxu3 %v4930_v61  ;;  %v4834_v61 = vor.u32 %v5491_v52, %v4831_v29  ;;  %v5082_v2 = vor.u32 %v5553_v56, %v5079_v57  ;;  %v5709_v11 = vpop.eup %5708  ;;  %v4999_v20 = vld [vmem:[#allocation13 + $0x158] sm:$0xf0]  ;;  %v5565_v26 = vld [vmem:[#allocation13 + $0x254] sm:$0xf]  ;;  %v5531_v39 = vld [vmem:[#allocation13 + $0x144] sm:$0xf] }
 0x268   : > { %3372 = vmatpush.bf16.msrb.mxu0 %v5110_v3  ;;  %v5146_v3 = vor.u32 %v5569_v58, %v5143_v59  ;;  %v5711_v15 = vpop.eup %5710  ;;  %v5127_v27 = vld [vmem:[#allocation13 + $0x258] sm:$0xf0]  ;;  %v6954_v28 = vpack.c.bf16 %v5709_v11, %v5709_v11  ;;  %v4991_v41 = vld [vmem:[#allocation13 + $0x148] sm:$0xf0]  ;;  %v5563_v8 = vld [vmem:[#allocation13 + $0x244] sm:$0xf] }
 0x269   : > { %3385 = vmatpush.bf16.msrb.mxu1 %v5174_v37  ;;  %v5007_v37 = vld [vmem:[#allocation13 + $0x168] sm:$0xf0]  ;;  %v5191_v33 = vld [vmem:[#allocation13 + $0x2d8] sm:$0xf0]  ;;  %v6956_v34 = vpack.c.bf16 %v5711_v15, %v5711_v15  ;;  %v5130_v38 = vor.u32 %v5565_v26, %v5127_v27  ;;  %v4994_v9 = vor.u32 %v5531_v39, %v4991_v41  ;;  %v5529_v53 = vld [vmem:[#allocation13 + $0x134] sm:$0xf] }
 0x26a   : > { %3398 = vmatpush.bf16.msrb.mxu2 %v4858_v5  ;;  %v5551_v5 = vld [vmem:[#allocation13 + $0x1e4] sm:$0xf]  ;;  %v5010_v16 = vor.u32 %v5535_v4, %v5007_v37  ;;  %v5055_v44 = vld [vmem:[#allocation13 + $0x1c8] sm:$0xf0]  ;;  %v5545_v29 = vld [vmem:[#allocation13 + $0x1b4] sm:$0xf] }
 0x26b   : > { %3411 = vmatpush.bf16.msrb.mxu3 %v4922_v24  ;;  %v5135_v24 = vld [vmem:[#allocation13 + $0x268] sm:$0xf0]  ;;  %v5074_v17 = vor.u32 %v5551_v5, %v5071_v49  ;;  %v5047_v42 = vld [vmem:[#allocation13 + $0x1b8] sm:$0xf0]  ;;  %v5561_v13 = vld [vmem:[#allocation13 + $0x234] sm:$0xf] }
 0x26c   : > { %3373 = vmatpush.bf16.msrb.mxu0 %v5102_v18  ;;  %v5138_v45 = vor.u32 %v5567_v7, %v5135_v24  ;;  %v5533_v18 = vld [vmem:[#allocation13 + $0x154] sm:$0xf]  ;;  %v5119_v47 = vld [vmem:[#allocation13 + $0x248] sm:$0xf0]  ;;  %v5111_v54 = vld [vmem:[#allocation13 + $0x238] sm:$0xf0] }
 0x26d   : > { %3386 = vmatpush.bf16.msrb.mxu1 %v5166_v22  ;;  %v5202_v22 = vor.u32 %v5583_v40, %v5199_v12  ;;  %v5002_v35 = vor.u32 %v5533_v18, %v4999_v20  ;;  %v5122_v52 = vor.u32 %v5563_v8, %v5119_v47  ;;  %v5577_v55 = vld [vmem:[#allocation13 + $0x2b4] sm:$0xf]  ;;  %v5114_v57 = vor.u32 %v5561_v13, %v5111_v54  ;;  %v5527_v58 = vld [vmem:[#allocation13 + $0x124] sm:$0xf]  ;;  %v4975_v59 = vld [vmem:[#allocation13 + $0x128] sm:$0xf0] }
 0x26e   : > { %3399 = vmatpush.bf16.msrb.mxu2 %v4850_v23  ;;  %v5063_v23 = vld [vmem:[#allocation13 + $0x1d8] sm:$0xf0]  ;;  %v5039_v62 = vld [vmem:[#allocation13 + $0x1a8] sm:$0xf0]  ;;  %v5559_v63 = vld [vmem:[#allocation13 + $0x224] sm:$0xf] }
 0x26f   : > { %3412 = vmatpush.bf16.msrb.mxu3 %v4914_v30  ;;  %v5581_v30 = vld [vmem:[#allocation13 + $0x2d4] sm:$0xf]  ;;  %v5066_v36 = vor.u32 %v5549_v21, %v5063_v23  ;;  %v5031_v24 = vld [vmem:[#allocation13 + $0x198] sm:$0xf0]  ;;  %v5523_v18 = vld [vmem:[#allocation13 + $0x104] sm:$0xf] }
 0x270   : > { %3374 = vmatpush.bf16.msrb.mxu0 %v5094_v43  ;;  %v5547_v43 = vld [vmem:[#allocation13 + $0x1c4] sm:$0xf]  ;;  %v5525_v5 = vld [vmem:[#allocation13 + $0x114] sm:$0xf]  ;;  %v5095_v40 = vld [vmem:[#allocation13 + $0x218] sm:$0xf0] }
 0x271   : > { %3387 = vmatpush.bf16.msrb.mxu1 %v5158_v48  ;;  %v5579_v48 = vld [vmem:[#allocation13 + $0x2c4] sm:$0xf]  ;;  %v5058_v51 = vor.u32 %v5547_v43, %v5055_v44  ;;  %v5541_v49 = vld [vmem:[#allocation13 + $0x194] sm:$0xf]  ;;  %v5159_v15 = vld [vmem:[#allocation13 + $0x298] sm:$0xf0] }
 0x272   : > { %3400 = vmatpush.bf16.msrb.mxu2 %v4842_v50  ;;  %v5183_v50 = vld [vmem:[#allocation13 + $0x2c8] sm:$0xf0]  ;;  %v5557_v11 = vld [vmem:[#allocation13 + $0x214] sm:$0xf]  ;;  %v5539_v21 = vld [vmem:[#allocation13 + $0x184] sm:$0xf] }
 0x273   : > { %3413 = vmatpush.bf16.msrb.mxu3 %v4906_v46  ;;  %v4983_v46 = vld [vmem:[#allocation13 + $0x138] sm:$0xf0]  ;;  %v5186_v14 = vor.u32 %v5579_v48, %v5183_v50  ;;  %v5573_v12 = vld [vmem:[#allocation13 + $0x294] sm:$0xf]  ;;  %v4959_v20 = vld [vmem:[#allocation13 + $0x108] sm:$0xf0] }
 0x274   : > { %3375 = vmatpush.bf16.msrb.mxu0 %v5086_v31  ;;  %v4986_v56 = vor.u32 %v5529_v53, %v4983_v46  ;;  %v5050_v31 = vor.u32 %v5545_v29, %v5047_v42  ;;  %v5023_v23 = vld [vmem:[#allocation13 + $0x188] sm:$0xf0]  ;;  %v5555_v26 = vld [vmem:[#allocation13 + $0x204] sm:$0xf]  ;;  %v2830_v53 = vld [vmem:[#allocation17] sm:$0x3] }
 0x275   : > { %3388 = vmatpush.bf16.msrb.mxu1 %v5150_v60  ;;  %v5543_v60 = vld [vmem:[#allocation13 + $0x1a4] sm:$0xf]  ;;  %v5087_v27 = vld [vmem:[#allocation13 + $0x208] sm:$0xf0]  ;;  %v2832_v29 = vperm.slane %v2830_v53, 0  ;;  %v2833_v13 = vperm.slane %v2830_v53, 1 }
 0x276   : > { %3401 = vmatpush.bf16.msrb.mxu2 %v4834_v61  ;;  %v5042_v4 = vor.u32 %v5543_v60, %v5039_v62  ;;  %v2688_v60 = vld [vmem:[#allocation14] sm:$0x3] }
 0x277   : > { %3414 = vmatpush.bf16.msrb.mxu3 %v4898_v0  ;;  %3376 = vmatmul.bf16.vlgmr.msrb.gmra.mxu0 %v6954_v28  ;;  %v5103_v0 = vld [vmem:[#allocation13 + $0x228] sm:$0xf0] }
 0x278   : > { %3420 = vmatpush.bf16.msra.mxu0 %v5018_v1  ;;  %3389 = vmatmul.bf16.vlgmr.msrb.gmra.mxu1 %v6956_v34  ;;  %v5575_v1 = vld [vmem:[#allocation13 + $0x2a4] sm:$0xf]  ;;  %v5106_v37 = vor.u32 %v5559_v63, %v5103_v0 }
 0x279   : > { %3433 = vmatpush.bf16.msra.mxu1 %v5082_v2  ;;  %3402 = vmatmul.bf16.vlgmr.msrb.gmra.mxu2 %v6942_v19  ;;  %v5194_v19 = vor.u32 %v5581_v30, %v5191_v33  ;;  %v5167_v2 = vld [vmem:[#allocation13 + $0x2a8] sm:$0xf0]  ;;  %v5571_v30 = vld [vmem:[#allocation13 + $0x284] sm:$0xf] }
 0x27a   : > { %3446 = vmatpush.bf16.msra.mxu2 %v5146_v3  ;;  %3415 = vmatmul.bf16.vlgmr.msrb.gmra.mxu3 %v6947_v32  ;;  %v5175_v32 = vld [vmem:[#allocation13 + $0x2b8] sm:$0xf0]  ;;  %v4978_v3 = vor.u32 %v5527_v58, %v4975_v59  ;;  %v5170_v7 = vor.u32 %v5575_v1, %v5167_v2  ;;  %v5151_v33 = vld [vmem:[#allocation13 + $0x288] sm:$0xf0] }
 0x27b   : > { %3459 = vmatpush.bf16.msra.mxu3 %v5210_v6  ;;  %v5178_v61 = vor.u32 %v5577_v55, %v5175_v32  ;;  %v4967_v6 = vld [vmem:[#allocation13 + $0x118] sm:$0xf0]  ;;  %v5154_v39 = vor.u32 %v5571_v30, %v5151_v33 }
 0x27c   : > { %3421 = vmatpush.bf16.msra.mxu0 %v5010_v16  ;;  %v4970_v16 = vor.u32 %v5525_v5, %v4967_v6  ;;  %v2686_v5 = vld [vmem:[#allocation2] sm:$0xff]  ;;  %v2687_v6 = vld [vmem:[#allocation2 + $0x8] sm:$0xff] }
 0x27d   : > { %3434 = vmatpush.bf16.msra.mxu1 %v5074_v17  ;;  %v5034_v17 = vor.u32 %v5541_v49, %v5031_v24 }
 0x27e   : > { %3447 = vmatpush.bf16.msra.mxu2 %v5138_v45  ;;  %v5098_v45 = vor.u32 %v5557_v11, %v5095_v40 }
 0x27f   : > { %3460 = vmatpush.bf16.msra.mxu3 %v5202_v22  ;;  %v5162_v22 = vor.u32 %v5573_v12, %v5159_v15 }
 0x280   : > { %3422 = vmatpush.bf16.msra.mxu0 %v5002_v35  ;;  %v4962_v35 = vor.u32 %v5523_v18, %v4959_v20 }
 0x281   : > { %3435 = vmatpush.bf16.msra.mxu1 %v5066_v36  ;;  %v5026_v36 = vor.u32 %v5539_v21, %v5023_v23 }
 0x282   : > { %3448 = vmatpush.bf16.msra.mxu2 %v5130_v38  ;;  %v5090_v38 = vor.u32 %v5555_v26, %v5087_v27 }
 0x283   : > { %3461 = vmatpush.bf16.msra.mxu3 %v5194_v19 }
 0x284   : > { %3423 = vmatpush.bf16.msra.mxu0 %v4994_v9 }
 0x285   : > { %3436 = vmatpush.bf16.msra.mxu1 %v5058_v51 }
 0x286   : > { %3449 = vmatpush.bf16.msra.mxu2 %v5122_v52 }
 0x287   : > { %3462 = vmatpush.bf16.msra.mxu3 %v5186_v14 }
 0x288   : > { %3424 = vmatpush.bf16.msra.mxu0 %v4986_v56 }
 0x289   : > { %3437 = vmatpush.bf16.msra.mxu1 %v5050_v31 }
 0x28a   : > { %3450 = vmatpush.bf16.msra.mxu2 %v5114_v57 }
 0x28b   : > { %3463 = vmatpush.bf16.msra.mxu3 %v5178_v61 }
 0x28c   : > { %3425 = vmatpush.bf16.msra.mxu0 %v4978_v3  ;;  %v2690_v3 = vperm.slane %v2688_v60, 0 }
 0x28d   : > { %3438 = vmatpush.bf16.msra.mxu1 %v5042_v4  ;;  %v2691_v4 = vperm.slane %v2688_v60, 1 }
 0x28e   : > { %3451 = vmatpush.bf16.msra.mxu2 %v5106_v37  ;;  %v2694_v11 = vadd.f32 %v2690_v3, %v2686_v5 }
 0x28f   : > { %3464 = vmatpush.bf16.msra.mxu3 %v5170_v7  ;;  %v2695_v40 = vadd.f32 %v2691_v4, %v2687_v6 }
 0x290   : > { %3426 = vmatpush.bf16.msra.mxu0 %v4970_v16 }
 0x291   : > { %3439 = vmatpush.bf16.msra.mxu1 %v5034_v17  ;;  %v3472_v17 = vmul.f32 %v2694_v11, %v2694_v11 }
 0x292   : > { %3452 = vmatpush.bf16.msra.mxu2 %v5098_v45  ;;  %v3473_v45 = vmul.f32 %v2695_v40, %v2695_v40 }
 0x293   : > { %3465 = vmatpush.bf16.msra.mxu3 %v5162_v22 }
 0x294   : > { %3427 = vmatpush.bf16.msra.mxu0 %v4962_v35  ;;  %v3474_v18 = vadd.f32 %v3473_v45, %v3472_v17 }
 0x295   : > { %3440 = vmatpush.bf16.msra.mxu1 %v5026_v36 }
 0x296   : > { %3453 = vmatpush.bf16.msra.mxu2 %v5090_v38 }
 0x297   : > { %3466 = vmatpush.bf16.msra.mxu3 %v5154_v39  ;;  %3428 = vmatmul.bf16.vlgmr.msra.gmra.mxu0 %v6939_v10 }
 0x298   : > { %3441 = vmatmul.bf16.vlgmr.msra.gmra.mxu1 %v6944_v25 }
 0x299   : > { %3454 = vmatmul.bf16.vlgmr.msra.gmra.mxu2 %v6954_v28 }
 0x29a   : > { %3467 = vmatmul.bf16.vlgmr.msra.gmra.mxu3 %v6956_v34 }
 0x2df   : > { %v3325_v41 = vpop.f32.mrf.mxu0 }
 0x2e0   : > { %v3326_v28 = vadd.f32 %v3325_v41, %v2832_v29 }
 0x2e3   : > { %v3338_v43 = vpop.f32.mrf.mxu1 }
 0x2e4   : > { %v3351_v19 = vpop.f32.mrf.mxu2  ;;  %v3339_v34 = vadd.f32 %v3338_v43, %v3326_v28 }
 0x2e6   : > { %v3352_v54 = vadd.f32 %v3351_v19, %v3339_v34 }
 0x2e7   : > { %v3364_v44 = vpop.f32.mrf.mxu3  ;;  %v3327_v8 = vpop.f32.mrf.mxu0 }
 0x2e8   : > { %v3365_v32 = vadd.f32 %v3364_v44, %v3352_v54  ;;  %v3488_v8 = vstv %s3487_s15 }
 0x2eb   : > { %v3340_v47 = vpop.f32.mrf.mxu1 }
 0x2ec   : > { %v3353_v48 = vpop.f32.mrf.mxu2 }
 0x2ef   : > { %v3366_v50 = vpop.f32.mrf.mxu3 }
 0x2f4   : > { %v3377_v9 = vpop.f32.mrf.mxu0 }
 0x2f5   : > { %v3390_v51 = vpop.f32.mrf.mxu1  ;;  %v3378_v59 = vadd.f32 %v3377_v9, %v3365_v32 }
 0x2f7   : > { %v3391_v63 = vadd.f32 %v3390_v51, %v3378_v59 }
 0x2f9   : > { %v3490_v7 = vmul.f32 %v3391_v63, %v3391_v63 }
 0x2fc   : > { %v3403_v52 = vpop.f32.mrf.mxu2  ;;  %v3379_v10 = vpop.f32.mrf.mxu0 }
 0x2fd   : > { %v3416_v46 = vpop.f32.mrf.mxu3  ;;  %v3392_v25 = vpop.f32.mrf.mxu1  ;;  %v3404_v55 = vadd.f32 %v3403_v52, %v2833_v13 }
 0x2ff   : > { %v3417_v56 = vadd.f32 %v3416_v46, %v3404_v55 }
 0x304   : > { %v3405_v14 = vpop.f32.mrf.mxu2 }
 0x305   : > { %v3418_v42 = vpop.f32.mrf.mxu3 }
 0x314   : > { %v3429_v31 = vpop.f32.mrf.mxu0 }
 0x315   : > { %v3442_v57 = vpop.f32.mrf.mxu1  ;;  %v3430_v58 = vadd.f32 %v3429_v31, %v3417_v56 }
 0x317   : > { %v3443_v61 = vadd.f32 %v3442_v57, %v3430_v58 }
 0x31c   : > { %v3455_v62 = vpop.f32.mrf.mxu2  ;;  %v3431_v2 = vpop.f32.mrf.mxu0 }
 0x31d   : > { %v3456_v0 = vadd.f32 %v3455_v62, %v3443_v61  ;;  %v3468_v1 = vpop.f32.mrf.mxu3  ;;  %v3444_v37 = vpop.f32.mrf.mxu1 }
 0x31f   : > { %v3469_v49 = vadd.f32 %v3468_v1, %v3456_v0 }
 0x321   : > { %v3491_v24 = vmul.f32 %v3469_v49, %v3469_v49 }
 0x323   : > { %v3492_v12 = vadd.f32 %v3491_v24, %v3490_v7 }
 0x324   : > { %v3457_v15 = vpop.f32.mrf.mxu2 }
 0x325   : > { %v3470_v16 = vpop.f32.mrf.mxu3  ;;  %3493 = vadd.xlane.f32.xlu0 %v3492_v12 }
 0x32d   : > { %3475 = vadd.xlane.f32.xlu0 %v3474_v18 }
 0x398   : > { %v3494_v20 = vpop.xlane.xlu0 %3493 }
 0x399   : > { %5712 = vrsqrt.f32 %v3494_v20  ;;  %vm3501_vm1 = vweird.f32 %v3494_v20 }
 0x39f   : > { %v5713_v21 = vpop.eup %5712 }
 0x3a0   : > { %v3496_v22 = vmul.f32 %v5713_v21, %v3494_v20  ;;  %v3476_v23 = vpop.xlane.xlu0 %3475  ;;  %vm3502_vm0 = vweird.f32 %v5713_v21 }
 0x3a1   : > { %5714 = vrsqrt.f32 %v3476_v23  ;;  %vm3503_vm2 = vmor %vm3501_vm1, %vm3502_vm0  ;;  %vm3483_vm4 = vweird.f32 %v3476_v23 }
 0x3a2   : > { %v3497_v26 = vmul.f32 %v5713_v21, %v3496_v22 }
 0x3a4   : > { %v3498_v27 = vmul.f32 0.5, %v3497_v26 }
 0x3a6   : > { %v3499_v30 = vsub.f32 1.5, %v3498_v27 }
 0x3a7   : > { %v5715_v33 = vpop.eup %5714 }
 0x3a8   : > { %v3500_v35 = vmul.f32 %v5713_v21, %v3499_v30  ;;  %v3478_v36 = vmul.f32 %v5715_v33, %v3476_v23  ;;  %vm3484_vm3 = vweird.f32 %v5715_v33 }
 0x3a9   : > { %vm3485_vm5 = vmor %vm3483_vm4, %vm3484_vm3 }
 0x3aa   : > { %v3504_v38 = vsel %vm3503_vm2, %v5713_v21, %v3500_v35  ;;  %v3479_v39 = vmul.f32 %v5715_v33, %v3478_v36 }
 0x3ab   : > { %v3507_v41 = vmul.f32 %v3504_v38, %v3391_v63  ;;  %v3508_v43 = vmul.f32 %v3504_v38, %v3469_v49 }
 0x3ac   : > { %v3480_v19 = vmul.f32 0.5, %v3479_v39 }
 0x3ad   : > { %3524 = vmatpush.xpose.msrb.mxu0 %v3507_v41  ;;  %3544 = vmatpush.xpose.msrb.mxu1 %v3508_v43 }
 0x3ae   : > { %v3481_v44 = vsub.f32 1.5, %v3480_v19 }
 0x3b0   : > { %v3482_v47 = vmul.f32 %v5715_v33, %v3481_v44 }
 0x3b2   : > { %v3486_v48 = vsel %vm3485_vm5, %v5715_v33, %v3482_v47 }
 0x3b3   : > { %v3489_v50 = vmul.f32 %v3488_v8, %v3486_v48 }
 0x3b5   : > { %v3505_v9 = vmul.f32 %v3489_v50, %v2694_v11  ;;  %v3506_v51 = vmul.f32 %v3489_v50, %v2695_v40 }
 0x3b7   : > { %3525 = vmatmul.f32.vlgmr.msrb.gmra.mxu0 %v3505_v9  ;;  %3545 = vmatmul.f32.vlgmr.msrb.gmra.mxu1 %v3506_v51 }
 0x434   : > { %v3526_v52 = vpop.f32.mrf.mxu0  ;;  %v3546_v53 = vpop.f32.mrf.mxu1 }
 0x435   : > { %v3547_v46 = vadd.f32 %v3546_v53, %v3526_v52 }
 0x437   : > { %3550 = vst.msk [vmem:[#allocation19] sm:$0xff] %vm3549_vm6, %v3547_v46 }
 0x438 PF: > { %p5656_p4 = scmp.eq.s32.totalorder %s6126_s0, 1  ;;  %s6053_s10 = smov [#allocation19]  }
 0x439   : > { %s3557_s6 = sshll.u32 %s6053_s10, 4  ;;  %s3559_s16 = sshll.u32 %s6991_s9, 4  ;;  %s3558_s6 = int_to_ptr.vmem [resolvable:$true] %s3557_s6  ;;  %s3560_s16 = int_to_ptr.hbm [resolvable:$true] %s3559_s16 }
 0x43a   : > { %5617 = dma.vmem_to_hbm [thread:$0]  (%p5656_p4), %s3558_s6, 128, %s3560_s16, [#allocation7]  }
 0x43b   : > { %6025 = dma.done.wait (%p5656_p4), [#allocation7], 128  }
 0x43c   : > { %6027 = vsyncadd (%p5656_p4), [#allocation7], 4294967168 }
 0x43d PF: > { %s7011_s23 = sld [smem:[#allocation27_spill]]  ;;  %p29_p5 = scmp.ge.s32.totalorder %s6163_s30, 4  }
 0x43e   : > { %s7012_s13 = sld [smem:[#allocation28_spill]]  ;;  %s7013_s11 = smov %s6034_s12 }
 0x43f   : > { %s7015_s14 = smov %s6163_s30  ;;  %31 = sbr.rel (!%p29_p5) target bundleno = 15 (0xf), region = 154 }
 0x443   : > { %s7014_s12 = smov %s7011_s23 }
 0x444   :  { %3573 = vsyncpa [#allocation6], 1 }
 0x445   :  { %3575 = vsyncpa [#allocation6 + $0x1], 1 }
 0x446   :  { %3576 = vsyncpa [#allocation9], 1 }
 0x447   :  { %3578 = vsyncpa [#allocation9 + $0x1], 1 }
 0x448   :  { %3579 = vsyncpa [#allocation12], 1 }
 0x449   :  { %3581 = vsyncpa [#allocation12 + $0x1], 1 }
 0x44a   :  { %3582 = vsyncpa [#allocation15], 1 }
 0x44b   :  { %3583 = vsyncpa [#allocation18], 1 }
 0x44c   :  { %3584 = vsyncpa [#allocation7], 1 }
 0x44d   :  { %3586 = vsyncpa [#allocation7 + $0x1], 1 }

</bundles_post_ra>
